<compile_context>
chip_gen: v6e
topology: v6e:2x2x1
jax: 0.10.0
libtpu: 0.0.40
codegen_flags: <defaults>
</compile_context>

<pallas_src>
import jax
import jax.numpy as jnp
from jax import lax
from jax.experimental import pallas as pl
from jax.experimental.pallas import tpu as pltpu

# ----------------------------- synthetic hyper-params (small) ----------------
# TODO(synk): upstream weights come from ChatterboxTTS.from_pretrained(); we use
# deterministic synthetic parameters of the same structure at small sizes.
DIM = 256                 # hp.n_channels
N_HEADS = 2               # perceiver num_attn_heads
HEAD_DIM = DIM // N_HEADS
SPK_DIM = 128             # hp.speaker_embed_size
TEXT_VOCAB = 64
SPEECH_VOCAB = 80
START_SPEECH_TOKEN = 72   # hp.start_speech_token (must be < SPEECH_VOCAB)
MAX_TEXT_LEN = 32
MAX_SPEECH_LEN = 64
N_QUERY = 32              # perceiver pre_attention_query_token
LN_EPS = 1e-5
N_COND = 1 + N_QUERY + 1  # speaker + perceiver + emotion rows


# ------------- kernel 2: fused text+speech embedding gather + pos add --------
def _embed2_kernel(t_ids_ref, t_pos_ref, s_ids_ref, s_pos_ref,
                   t_tbl_ref, t_ptbl_ref, s_tbl_ref, s_ptbl_ref,
                   t_o_ref, s_o_ref):
    # Gather all rows at once via one-hot @ table (exact row selection on the MXU);
    # all four tables are fully VMEM-resident (<= 80 KiB each).
    def gather_add(ids, pos, tbl_ref, ptbl_ref, o_ref):
        n = o_ref.shape[0]
        v, vp = tbl_ref.shape[0], ptbl_ref.shape[0]
        oh = (lax.broadcasted_iota(jnp.int32, (n, v), 1) == ids).astype(jnp.float32)
        ohp = (lax.broadcasted_iota(jnp.int32, (n, vp), 1) == pos).astype(jnp.float32)
        out = jnp.dot(oh, tbl_ref[...], preferred_element_type=jnp.float32)
        out = out + jnp.dot(ohp, ptbl_ref[...], preferred_element_type=jnp.float32)
        o_ref[...] = out.astype(o_ref.dtype)

    gather_add(t_ids_ref[...], t_pos_ref[...], t_tbl_ref, t_ptbl_ref, t_o_ref)
    gather_add(s_ids_ref[...], s_pos_ref[...], s_tbl_ref, s_ptbl_ref, s_o_ref)


def embed_text_speech(text_ids, speech_ids, text_tbl, text_pos_tbl,
                      speech_tbl, speech_pos_tbl):
    """out_text[b,t] = text_tbl[ids[b,t]] + text_pos_tbl[t]; same for speech."""
    bt, tt = text_ids.shape
    bs, ts = speech_ids.shape
    d = text_tbl.shape[1]
    t_ids = text_ids.reshape(bt * tt, 1).astype(jnp.int32)
    t_pos = jnp.tile(jnp.arange(tt, dtype=jnp.int32), (bt,)).reshape(bt * tt, 1)
    s_ids = speech_ids.reshape(bs * ts, 1).astype(jnp.int32)
    s_pos = jnp.tile(jnp.arange(ts, dtype=jnp.int32), (bs,)).reshape(bs * ts, 1)
    t_out, s_out = pl.pallas_call(
        _embed2_kernel,
        out_shape=(jax.ShapeDtypeStruct((bt * tt, d), text_tbl.dtype),
                   jax.ShapeDtypeStruct((bs * ts, d), speech_tbl.dtype)),
    )(t_ids, t_pos, s_ids, s_pos, text_tbl, text_pos_tbl, speech_tbl, speech_pos_tbl)
    return t_out.reshape(bt, tt, d), s_out.reshape(bs, ts, d)


# ------------- kernel 1: fully fused conditioning encoder --------------------
def _cond_enc_kernel(tok_ref, query_ref, spk_ref, emo_ref, vecs_ref,
                     speech_tbl_ref, pos_tbl_ref, w_qkv_ref, wo_ref, spkr_w_ref,
                     o_ref):
    d, hd = DIM, HEAD_DIM

    # Packed small parameter vectors, one aligned (8, D) tile -> one DMA.
    vecs = vecs_ref[...].astype(jnp.float32)
    ln_g, ln_b = vecs[0:1], vecs[1:2]
    b_q, b_k, b_v = vecs[2:3], vecs[3:4], vecs[4:5]
    bo, spkr_b, emo_w = vecs[5:6], vecs[6:7], vecs[7:8]

    # Large weights arrive pre-cast to bf16 (MXU-native), f32 accumulation.
    w_qkv = w_qkv_ref[...]        # (3D, D) = [Wq; Wk; Wv]
    wo = wo_ref[...]              # (D, D)
    spkr_w = spkr_w_ref[...]      # (D, SPK_DIM)

    def layernorm(x):             # f32 in/out, shared gamma/beta (AttentionBlock2.norm)
        mean = jnp.mean(x, axis=-1, keepdims=True)
        xc = x - mean
        var = jnp.mean(xc * xc, axis=-1, keepdims=True)
        return xc * lax.rsqrt(var + LN_EPS) * ln_g + ln_b

    def matmul_nt(x_f32, w_bf16):  # x:(M,K) f32, w:(N,K) bf16 -> (M,N) f32  (x @ W.T)
        return lax.dot_general(x_f32.astype(jnp.bfloat16), w_bf16,
                               (((1,), (1,)), ((), ())),
                               preferred_element_type=jnp.float32)

    def attend(q, k, v):
        # Per-head softmax attention with the output projection accumulated per head
        # (head_h @ Wo[:, h*hd:(h+1)*hd].T) -> no lane-axis concatenate relayout.
        # TODO(synk): upstream AttentionQKV(flash=True) uses F.scaled_dot_product_attention;
        # this is the mathematically-equivalent explicit softmax path.
        acc = None
        for hh in range(N_HEADS):                       # static unroll (H=2)
            sl = slice(hh * hd, (hh + 1) * hd)
            s = lax.dot_general(q[:, sl].astype(jnp.bfloat16),
                                k[:, sl].astype(jnp.bfloat16),
                                (((1,), (1,)), ((), ())),
                                preferred_element_type=jnp.float32) * (hd ** -0.5)
            s = s - jnp.max(s, axis=-1, keepdims=True)  # f32 softmax
            p = jnp.exp(s)
            p = p * pl.reciprocal(jnp.sum(p, axis=-1, keepdims=True), approx=True)
            head = lax.dot_general(p.astype(jnp.bfloat16),
                                   v[:, sl].astype(jnp.bfloat16),
                                   (((1,), (0,)), ((), ())),
                                   preferred_element_type=jnp.float32)
            contrib = lax.dot_general(head.astype(jnp.bfloat16), wo[:, sl],
                                      (((1,), (1,)), ((), ())),
                                      preferred_element_type=jnp.float32)
            acc = contrib if acc is None else acc + contrib
        return acc + bo

    # --- cond prompt embedding, computed in-kernel (no HBM intermediate) -----
    # h[t] = speech_emb[tok[t]] + speech_pos_emb[t]   (LearnedPositionEmbeddings)
    tc = tok_ref.shape[1]
    tok_ids = tok_ref[0]                                          # (TC, 1) int32
    oh = (lax.broadcasted_iota(jnp.int32, (tc, SPEECH_VOCAB), 1) == tok_ids
          ).astype(jnp.float32)
    h = jnp.dot(oh, speech_tbl_ref[...], preferred_element_type=jnp.float32)
    h = h + pos_tbl_ref[...].astype(jnp.float32)                  # (TC, D) f32

    # --- perceiver: cross-attend learned query to prompt, then self-attend ---
    query = query_ref[0].astype(jnp.float32)                      # (NQ, D)
    qn = layernorm(query)
    hn = layernorm(h)
    q1 = matmul_nt(qn, w_qkv[0:d]) + b_q                          # (NQ, D)
    kv1 = matmul_nt(hn, w_qkv[d:3 * d])                           # (TC, 2D)
    k1 = kv1[:, 0:d] + b_k
    v1 = kv1[:, d:2 * d] + b_v
    pre = query + attend(q1, k1, v1)                              # residual

    # self-attention fast path: single LayerNorm + one fused (NQ,D)x(D,3D) QKV matmul
    pn = layernorm(pre)
    qkv = matmul_nt(pn, w_qkv)                                    # (NQ, 3D)
    q2 = qkv[:, 0:d] + b_q
    k2 = qkv[:, d:2 * d] + b_k
    v2 = qkv[:, 2 * d:3 * d] + b_v
    prompt = pre + attend(q2, k2, v2)                             # (NQ, D)

    # --- speaker embedding projection: nn.Linear(SPK_DIM -> D) ---------------
    spk_row = matmul_nt(spk_ref[0].astype(jnp.float32), spkr_w) + spkr_b   # (1, D)

    # --- emotion_adv_fc = nn.Linear(1, D, bias=False) on a scalar ------------
    emo_row = emo_ref[0].astype(jnp.float32) * emo_w                       # (1, D)

    # one lane-dense (N_COND, D) slab: [speaker | perceiver | emotion]
    o_ref[0] = jnp.concatenate([spk_row, prompt, emo_row], axis=0).astype(o_ref.dtype)


def prepare_params(p):
    """One-time (outside jit) prep: fuse Wq|Wk|Wv, pack the small (D,) vectors into
    one aligned (8, D) tile, and pre-cast large weights to bf16 (halves weight DMA)."""
    ce = p["cond_enc"]
    attn = ce["perceiver"]["attn"]
    w_qkv = jnp.concatenate([attn["wq"], attn["wk"], attn["wv"]], axis=0)
    vecs = jnp.stack([attn["ln_g"], attn["ln_b"], attn["bq"], attn["bk"], attn["bv"],
                      attn["bo"], ce["spkr_b"], ce["emo_w"][:, 0]], axis=0)
    prep = dict(
        query=ce["perceiver"]["query"].astype(jnp.float32),   # (1, NQ, D)
        vecs=vecs.astype(jnp.float32),                        # (8, D)
        w_qkv=w_qkv.astype(jnp.bfloat16),                     # (3D, D)
        wo=attn["wo"].astype(jnp.bfloat16),                   # (D, D)
        spkr_w=ce["spkr_w"].astype(jnp.bfloat16),             # (D, SPK_DIM)
    )
    return dict(p, _prep=prep)


def cond_enc_fused(prep, cond_prompt_speech_tokens, speech_tbl, speech_pos_tbl,
                   speaker_emb, emotion_adv):
    """Returns the full conditioning slab (bc, 1+N_QUERY+1, D) in reference order."""
    bc, tc = cond_prompt_speech_tokens.shape
    d = DIM
    tok = cond_prompt_speech_tokens.reshape(bc, tc, 1).astype(jnp.int32)
    spk = speaker_emb.reshape(bc, 1, SPK_DIM)
    emo = jnp.reshape(emotion_adv, (bc, 1, 1))
    const2 = lambda b: (0, 0)

    return pl.pallas_call(
        _cond_enc_kernel,
        grid=(bc,),
        in_specs=[
            pl.BlockSpec((1, tc, 1), lambda b: (b, 0, 0)),        # prompt token ids
            pl.BlockSpec((1, N_QUERY, d), lambda b: (0, 0, 0)),   # learned query
            pl.BlockSpec((1, 1, SPK_DIM), lambda b: (b, 0, 0)),   # speaker embedding
            pl.BlockSpec((1, 1, 1), lambda b: (b, 0, 0)),         # emotion_adv scalar
            pl.BlockSpec((8, d), const2),                         # packed small vectors
            pl.BlockSpec((SPEECH_VOCAB, d), const2),              # speech emb table
            pl.BlockSpec((tc, d), const2),                        # speech pos table[:tc]
            pl.BlockSpec((3 * d, d), const2),                     # Wq|Wk|Wv (bf16)
            pl.BlockSpec((d, d), const2),                         # Wo (bf16)
            pl.BlockSpec((d, SPK_DIM), const2),                   # speaker proj W (bf16)
        ],
        out_specs=pl.BlockSpec((1, N_COND, d), lambda b: (b, 0, 0)),
        out_shape=jax.ShapeDtypeStruct((bc, N_COND, d), jnp.float32),
        # batch blocks are disjoint -> parallel (v7x shards across both TensorCores;
        # no-op on v5e/v6e).  With bc=1 the grid has a single step.
        compiler_params=pltpu.CompilerParams(dimension_semantics=("parallel",)),
    )(tok, prep["query"], spk, emo, prep["vecs"],
      speech_tbl, speech_pos_tbl, prep["w_qkv"], prep["wo"], prep["spkr_w"])


# ----------------------------- SpeechEncoder.forward -------------------------
def speech_encoder_forward(params, speaker_emb, cond_prompt_speech_tokens,
                           emotion_adv, text_tokens_ids, speech_input_ids):
    text_tokens_ids = jnp.atleast_2d(text_tokens_ids)
    speech_input_ids = jnp.atleast_2d(speech_input_ids)
    cond_prompt_speech_tokens = jnp.atleast_2d(cond_prompt_speech_tokens)

    speech_tbl, speech_pos_tbl = params["speech_emb"], params["speech_pos_emb"]
    text_tbl, text_pos_tbl = params["text_emb"], params["text_pos_emb"]

    # launch 1: prompt embedding + perceiver + speaker proj + emotion, fully fused
    cond = cond_enc_fused(params["_prep"], cond_prompt_speech_tokens,
                          speech_tbl, speech_pos_tbl, speaker_emb, emotion_adv)
    len_cond = cond.shape[1]

    # launch 2: text + speech token/positional embeddings (hp.input_pos_emb == "learned")
    text_e, speech_e = embed_text_speech(text_tokens_ids, speech_input_ids,
                                         text_tbl, text_pos_tbl,
                                         speech_tbl, speech_pos_tbl)

    b = text_e.shape[0]
    if cond.shape[0] != b:      # cond_emb.expand(text batch, -1, -1)
        cond = jnp.broadcast_to(cond, (b,) + cond.shape[1:])

    # BOS token: compile-time-constant indices -> plain JAX row add (no kernel launch).
    # Reference hard-codes torch.cat([bos_embed, bos_embed]) (batch 2); we broadcast to
    # the text batch, which is identical for B == 2 and robust otherwise.
    bos = (speech_tbl[START_SPEECH_TOKEN] + speech_pos_tbl[0]).reshape(1, 1, DIM)
    bos = jnp.broadcast_to(bos, (b, 1, DIM))

    # single concatenate assembles cond | text | speech | bos
    inputs_embeds = jnp.concatenate([cond, text_e, speech_e, bos], axis=1)
    return inputs_embeds, len_cond


# ----------------------------- deterministic synthetic parameters ------------
def init_params(key):
    ks = iter(jax.random.split(key, 32))

    def nrm(shape, std=0.02):
        return (std * jax.random.normal(next(ks), shape)).astype(jnp.float32)

    attn = dict(
        ln_g=jnp.ones((DIM,), jnp.float32), ln_b=jnp.zeros((DIM,), jnp.float32),
        wq=nrm((DIM, DIM)), bq=jnp.zeros((DIM,), jnp.float32),
        wk=nrm((DIM, DIM)), bk=jnp.zeros((DIM,), jnp.float32),
        wv=nrm((DIM, DIM)), bv=jnp.zeros((DIM,), jnp.float32),
        wo=nrm((DIM, DIM)), bo=jnp.zeros((DIM,), jnp.float32),
    )
    return dict(
        text_emb=nrm((TEXT_VOCAB, DIM)),
        speech_emb=nrm((SPEECH_VOCAB, DIM)),
        text_pos_emb=nrm((MAX_TEXT_LEN, DIM)),
        speech_pos_emb=nrm((MAX_SPEECH_LEN, DIM)),
        cond_enc=dict(
            spkr_w=nrm((DIM, SPK_DIM)), spkr_b=jnp.zeros((DIM,), jnp.float32),
            emo_w=nrm((DIM, 1)),
            perceiver=dict(query=nrm((1, N_QUERY, DIM), std=0.1), attn=attn),
        ),
    )


if __name__ == "__main__":
    key = jax.random.PRNGKey(0)
    pkey, k0, k1, k2, k3 = jax.random.split(key, 5)
    params = prepare_params(init_params(pkey))

    B = 2                      # text/speech batch
    TC, TT, TS = 16, 8, 8      # cond-prompt / text / speech lengths
    speaker_emb = jax.random.normal(k0, (1, SPK_DIM), dtype=jnp.float32)
    cond_prompt_speech_tokens = jax.random.randint(k1, (1, TC), 0, SPEECH_VOCAB)
    emotion_adv = 0.5 * jnp.ones((1, 1, 1), dtype=jnp.float32)
    text_tokens_ids = jax.random.randint(k2, (B, TT), 0, TEXT_VOCAB)
    speech_input_ids = jax.random.randint(k3, (B, TS), 0, SPEECH_VOCAB)

    fwd = jax.jit(speech_encoder_forward)
    inputs_embeds, len_cond = fwd(params, speaker_emb, cond_prompt_speech_tokens,
                                  emotion_adv, text_tokens_ids, speech_input_ids)
    jax.block_until_ready(inputs_embeds)

    expected_len_cond = 1 + N_QUERY + 1                 # speaker + perceiver + emotion
    expected_seq = expected_len_cond + TT + TS + 1      # cond + text + speech + BOS
    assert int(len_cond) == expected_len_cond, len_cond
    assert inputs_embeds.shape == (B, expected_seq, DIM), inputs_embeds.shape
    assert inputs_embeds.dtype == jnp.float32
    assert bool(jnp.all(jnp.isfinite(inputs_embeds)))
    print("KERNEL_OK")
</pallas_src>

<mosaic_0001>
module attributes {stable_mosaic.version = 11 : i64} {
  func.func @_embed2_kernel(%arg0: memref<16x1xi32, #tpu.memory_space<vmem>>, %arg1: memref<16x1xi32, #tpu.memory_space<vmem>>, %arg2: memref<16x1xi32, #tpu.memory_space<vmem>>, %arg3: memref<16x1xi32, #tpu.memory_space<vmem>>, %arg4: memref<64x256xf32, #tpu.memory_space<vmem>>, %arg5: memref<32x256xf32, #tpu.memory_space<vmem>>, %arg6: memref<80x256xf32, #tpu.memory_space<vmem>>, %arg7: memref<64x256xf32, #tpu.memory_space<vmem>>, %arg8: memref<16x256xf32, #tpu.memory_space<vmem>>, %arg9: memref<16x256xf32, #tpu.memory_space<vmem>>) attributes {dimension_semantics = [], scalar_prefetch = 0 : i64, scratch_operands = 0 : i64, tpu.core_type = #tpu.core_type<tc>} {
    %c0 = arith.constant 0 : index
    %c0_0 = arith.constant 0 : index
    %0 = vector.load %arg0[%c0, %c0_0] : memref<16x1xi32, #tpu.memory_space<vmem>>, vector<16x1xi32>
    %c0_1 = arith.constant 0 : index
    %c0_2 = arith.constant 0 : index
    %1 = vector.load %arg1[%c0_1, %c0_2] : memref<16x1xi32, #tpu.memory_space<vmem>>, vector<16x1xi32>
    %2 = tpu.iota {dimensions = array<i32: 1>} : vector<16x64xi32>
    %3 = vector.broadcast %0 : vector<16x1xi32> to vector<16x64xi32>
    %4 = arith.cmpi eq, %2, %3 : vector<16x64xi32>
    %5 = arith.extui %4 : vector<16x64xi1> to vector<16x64xi32>
    %6 = arith.sitofp %5 : vector<16x64xi32> to vector<16x64xf32>
    %7 = tpu.iota {dimensions = array<i32: 1>} : vector<16x32xi32>
    %8 = vector.broadcast %1 : vector<16x1xi32> to vector<16x32xi32>
    %9 = arith.cmpi eq, %7, %8 : vector<16x32xi32>
    %10 = arith.extui %9 : vector<16x32xi1> to vector<16x32xi32>
    %11 = arith.sitofp %10 : vector<16x32xi32> to vector<16x32xf32>
    %c0_3 = arith.constant 0 : index
    %c0_4 = arith.constant 0 : index
    %12 = vector.load %arg4[%c0_3, %c0_4] : memref<64x256xf32, #tpu.memory_space<vmem>>, vector<64x256xf32>
    %cst = arith.constant dense<0.000000e+00> : vector<16x256xf32>
    %13 = tpu.matmul %6, %12, %cst {dimension_numbers = #tpu.dot_dimension_numbers<[1], [0], [0], [1], [0, 0, 1, 1], [], []>} : vector<16x64xf32>, vector<64x256xf32>, vector<16x256xf32> -> vector<16x256xf32>
    %c0_5 = arith.constant 0 : index
    %c0_6 = arith.constant 0 : index
    %14 = vector.load %arg5[%c0_5, %c0_6] : memref<32x256xf32, #tpu.memory_space<vmem>>, vector<32x256xf32>
    %cst_7 = arith.constant dense<0.000000e+00> : vector<16x256xf32>
    %15 = tpu.matmul %11, %14, %cst_7 {dimension_numbers = #tpu.dot_dimension_numbers<[1], [0], [0], [1], [0, 0, 1, 1], [], []>} : vector<16x32xf32>, vector<32x256xf32>, vector<16x256xf32> -> vector<16x256xf32>
    %16 = arith.addf %13, %15 : vector<16x256xf32>
    %c0_8 = arith.constant 0 : index
    %c0_9 = arith.constant 0 : index
    %17 = vector.load %arg8[%c0_8, %c0_9] : memref<16x256xf32, #tpu.memory_space<vmem>>, vector<16x256xf32>
    tpu.vector_store %arg8[%c0_8, %c0_9], %16 {strides = array<i32>} : memref<16x256xf32, #tpu.memory_space<vmem>>, vector<16x256xf32>,
    %c0_10 = arith.constant 0 : index
    %c0_11 = arith.constant 0 : index
    %18 = vector.load %arg2[%c0_10, %c0_11] : memref<16x1xi32, #tpu.memory_space<vmem>>, vector<16x1xi32>
    %c0_12 = arith.constant 0 : index
    %c0_13 = arith.constant 0 : index
    %19 = vector.load %arg3[%c0_12, %c0_13] : memref<16x1xi32, #tpu.memory_space<vmem>>, vector<16x1xi32>
    %20 = tpu.iota {dimensions = array<i32: 1>} : vector<16x80xi32>
    %21 = vector.broadcast %18 : vector<16x1xi32> to vector<16x80xi32>
    %22 = arith.cmpi eq, %20, %21 : vector<16x80xi32>
    %23 = arith.extui %22 : vector<16x80xi1> to vector<16x80xi32>
    %24 = arith.sitofp %23 : vector<16x80xi32> to vector<16x80xf32>
    %25 = tpu.iota {dimensions = array<i32: 1>} : vector<16x64xi32>
    %26 = vector.broadcast %19 : vector<16x1xi32> to vector<16x64xi32>
    %27 = arith.cmpi eq, %25, %26 : vector<16x64xi32>
    %28 = arith.extui %27 : vector<16x64xi1> to vector<16x64xi32>
    %29 = arith.sitofp %28 : vector<16x64xi32> to vector<16x64xf32>
    %c0_14 = arith.constant 0 : index
    %c0_15 = arith.constant 0 : index
    %30 = vector.load %arg6[%c0_14, %c0_15] : memref<80x256xf32, #tpu.memory_space<vmem>>, vector<80x256xf32>
    %cst_16 = arith.constant dense<0.000000e+00> : vector<16x256xf32>
    %31 = tpu.matmul %24, %30, %cst_16 {dimension_numbers = #tpu.dot_dimension_numbers<[1], [0], [0], [1], [0, 0, 1, 1], [], []>} : vector<16x80xf32>, vector<80x256xf32>, vector<16x256xf32> -> vector<16x256xf32>
    %c0_17 = arith.constant 0 : index
    %c0_18 = arith.constant 0 : index
    %32 = vector.load %arg7[%c0_17, %c0_18] : memref<64x256xf32, #tpu.memory_space<vmem>>, vector<64x256xf32>
    %cst_19 = arith.constant dense<0.000000e+00> : vector<16x256xf32>
    %33 = tpu.matmul %29, %32, %cst_19 {dimension_numbers = #tpu.dot_dimension_numbers<[1], [0], [0], [1], [0, 0, 1, 1], [], []>} : vector<16x64xf32>, vector<64x256xf32>, vector<16x256xf32> -> vector<16x256xf32>
    %34 = arith.addf %31, %33 : vector<16x256xf32>
    %c0_20 = arith.constant 0 : index
    %c0_21 = arith.constant 0 : index
    %35 = vector.load %arg9[%c0_20, %c0_21] : memref<16x256xf32, #tpu.memory_space<vmem>>, vector<16x256xf32>
    tpu.vector_store %arg9[%c0_20, %c0_21], %34 {strides = array<i32>} : memref<16x256xf32, #tpu.memory_space<vmem>>, vector<16x256xf32>,
    return
  }
}

module attributes {stable_mosaic.version = 11 : i64} {
  func.func @_cond_enc_kernel(%arg0: i32, %arg1: memref<1x16x1xi32, #tpu.memory_space<vmem>>, %arg2: memref<1x32x256xf32, #tpu.memory_space<vmem>>, %arg3: memref<1x1x128xf32, #tpu.memory_space<vmem>>, %arg4: memref<1x1x1xf32, #tpu.memory_space<vmem>>, %arg5: memref<8x256xf32, #tpu.memory_space<vmem>>, %arg6: memref<80x256xf32, #tpu.memory_space<vmem>>, %arg7: memref<16x256xf32, #tpu.memory_space<vmem>>, %arg8: memref<768x256xbf16, #tpu.memory_space<vmem>>, %arg9: memref<256x256xbf16, #tpu.memory_space<vmem>>, %arg10: memref<256x128xbf16, #tpu.memory_space<vmem>>, %arg11: memref<1x34x256xf32, #tpu.memory_space<vmem>>) attributes {dimension_semantics = [#tpu.dimension_semantics<parallel>], iteration_bounds = array<i64: 1>, scalar_prefetch = 0 : i64, scratch_operands = 0 : i64, tpu.core_type = #tpu.core_type<tc>, window_params = [{transform_indices = @transform_0, window_bounds = array<i64: 1, 16, 1>}, {pipeline_mode = #tpu.pipeline_mode<synchronous>, transform_indices = @transform_1, window_bounds = array<i64: 1, 32, 256>}, {transform_indices = @transform_2, window_bounds = array<i64: 1, 1, 128>}, {transform_indices = @transform_3, window_bounds = array<i64: 1, 1, 1>}, {pipeline_mode = #tpu.pipeline_mode<synchronous>, transform_indices = @transform_4, window_bounds = array<i64: 8, 256>}, {pipeline_mode = #tpu.pipeline_mode<synchronous>, transform_indices = @transform_5, window_bounds = array<i64: 80, 256>}, {transform_indices = @transform_6, window_bounds = array<i64: 16, 256>}, {pipeline_mode = #tpu.pipeline_mode<synchronous>, transform_indices = @transform_7, window_bounds = array<i64: 768, 256>}, {pipeline_mode = #tpu.pipeline_mode<synchronous>, transform_indices = @transform_8, window_bounds = array<i64: 256, 256>}, {pipeline_mode = #tpu.pipeline_mode<synchronous>, transform_indices = @transform_9, window_bounds = array<i64: 256, 128>}, {transform_indices = @transform_10, window_bounds = array<i64: 1, 34, 256>}]} {
    %c0 = arith.constant 0 : index
    %c0_0 = arith.constant 0 : index
    %0 = vector.load %arg5[%c0, %c0_0] : memref<8x256xf32, #tpu.memory_space<vmem>>, vector<8x256xf32>
    %1 = vector.extract_strided_slice %0 {offsets = [0, 0], sizes = [1, 256], strides = [1, 1]} : vector<8x256xf32> to vector<1x256xf32>
    %2 = vector.extract_strided_slice %0 {offsets = [1, 0], sizes = [1, 256], strides = [1, 1]} : vector<8x256xf32> to vector<1x256xf32>
    %3 = vector.extract_strided_slice %0 {offsets = [2, 0], sizes = [1, 256], strides = [1, 1]} : vector<8x256xf32> to vector<1x256xf32>
    %4 = vector.extract_strided_slice %0 {offsets = [3, 0], sizes = [1, 256], strides = [1, 1]} : vector<8x256xf32> to vector<1x256xf32>
    %5 = vector.extract_strided_slice %0 {offsets = [4, 0], sizes = [1, 256], strides = [1, 1]} : vector<8x256xf32> to vector<1x256xf32>
    %6 = vector.extract_strided_slice %0 {offsets = [5, 0], sizes = [1, 256], strides = [1, 1]} : vector<8x256xf32> to vector<1x256xf32>
    %7 = vector.extract_strided_slice %0 {offsets = [6, 0], sizes = [1, 256], strides = [1, 1]} : vector<8x256xf32> to vector<1x256xf32>
    %8 = vector.extract_strided_slice %0 {offsets = [7, 0], sizes = [1, 256], strides = [1, 1]} : vector<8x256xf32> to vector<1x256xf32>
    %c0_1 = arith.constant 0 : index
    %c0_2 = arith.constant 0 : index
    %9 = vector.load %arg8[%c0_1, %c0_2] : memref<768x256xbf16, #tpu.memory_space<vmem>>, vector<768x256xbf16>
    %c0_3 = arith.constant 0 : index
    %c0_4 = arith.constant 0 : index
    %10 = vector.load %arg9[%c0_3, %c0_4] : memref<256x256xbf16, #tpu.memory_space<vmem>>, vector<256x256xbf16>
    %c0_5 = arith.constant 0 : index
    %c0_6 = arith.constant 0 : index
    %11 = vector.load %arg10[%c0_5, %c0_6] : memref<256x128xbf16, #tpu.memory_space<vmem>>, vector<256x128xbf16>
    %c0_7 = arith.constant 0 : index
    %c0_8 = arith.constant 0 : index
    %c0_9 = arith.constant 0 : index
    %12 = vector.load %arg1[%c0_7, %c0_8, %c0_9] : memref<1x16x1xi32, #tpu.memory_space<vmem>>, vector<1x16x1xi32>
    %13 = vector.shape_cast %12 : vector<1x16x1xi32> to vector<16x1xi32>
    %14 = tpu.iota {dimensions = array<i32: 1>} : vector<16x80xi32>
    %15 = vector.broadcast %13 : vector<16x1xi32> to vector<16x80xi32>
    %16 = arith.cmpi eq, %14, %15 : vector<16x80xi32>
    %17 = arith.extui %16 : vector<16x80xi1> to vector<16x80xi32>
    %18 = arith.sitofp %17 : vector<16x80xi32> to vector<16x80xf32>
    %c0_10 = arith.constant 0 : index
    %c0_11 = arith.constant 0 : index
    %19 = vector.load %arg6[%c0_10, %c0_11] : memref<80x256xf32, #tpu.memory_space<vmem>>, vector<80x256xf32>
    %cst = arith.constant dense<0.000000e+00> : vector<16x256xf32>
    %20 = tpu.matmul %18, %19, %cst {dimension_numbers = #tpu.dot_dimension_numbers<[1], [0], [0], [1], [0, 0, 1, 1], [], []>} : vector<16x80xf32>, vector<80x256xf32>, vector<16x256xf32> -> vector<16x256xf32>
    %c0_12 = arith.constant 0 : index
    %c0_13 = arith.constant 0 : index
    %21 = vector.load %arg7[%c0_12, %c0_13] : memref<16x256xf32, #tpu.memory_space<vmem>>, vector<16x256xf32>
    %22 = arith.addf %20, %21 : vector<16x256xf32>
    %c0_14 = arith.constant 0 : index
    %c0_15 = arith.constant 0 : index
    %c0_16 = arith.constant 0 : index
    %23 = vector.load %arg2[%c0_14, %c0_15, %c0_16] : memref<1x32x256xf32, #tpu.memory_space<vmem>>, vector<1x32x256xf32>
    %24 = vector.shape_cast %23 : vector<1x32x256xf32> to vector<32x256xf32>
    %cst_17 = arith.constant dense<0.000000e+00> : vector<32xf32>
    %25 = vector.multi_reduction <add>, %24, %cst_17 [1] : vector<32x256xf32> to vector<32xf32>
    %26 = vector.shape_cast %25 : vector<32xf32> to vector<32x1xf32>
    %cst_18 = arith.constant 2.560000e+02 : f32
    %27 = vector.broadcast %cst_18 : f32 to vector<32x1xf32>
    %28 = arith.divf %26, %27 : vector<32x1xf32>
    %29 = vector.broadcast %28 : vector<32x1xf32> to vector<32x256xf32>
    %30 = arith.subf %24, %29 : vector<32x256xf32>
    %31 = arith.mulf %30, %30 : vector<32x256xf32>
    %cst_19 = arith.constant dense<0.000000e+00> : vector<32xf32>
    %32 = vector.multi_reduction <add>, %31, %cst_19 [1] : vector<32x256xf32> to vector<32xf32>
    %33 = vector.shape_cast %32 : vector<32xf32> to vector<32x1xf32>
    %cst_20 = arith.constant 2.560000e+02 : f32
    %34 = vector.broadcast %cst_20 : f32 to vector<32x1xf32>
    %35 = arith.divf %33, %34 : vector<32x1xf32>
    %cst_21 = arith.constant 9.99999974E-6 : f32
    %36 = vector.broadcast %cst_21 : f32 to vector<32x1xf32>
    %37 = arith.addf %35, %36 : vector<32x1xf32>
    %38 = math.rsqrt %37 : vector<32x1xf32>
    %39 = vector.broadcast %38 : vector<32x1xf32> to vector<32x256xf32>
    %40 = arith.mulf %30, %39 : vector<32x256xf32>
    %41 = vector.broadcast %1 : vector<1x256xf32> to vector<32x256xf32>
    %42 = arith.mulf %40, %41 : vector<32x256xf32>
    %43 = vector.broadcast %2 : vector<1x256xf32> to vector<32x256xf32>
    %44 = arith.addf %42, %43 : vector<32x256xf32>
    %cst_22 = arith.constant dense<0.000000e+00> : vector<16xf32>
    %45 = vector.multi_reduction <add>, %22, %cst_22 [1] : vector<16x256xf32> to vector<16xf32>
    %46 = vector.shape_cast %45 : vector<16xf32> to vector<16x1xf32>
    %cst_23 = arith.constant 2.560000e+02 : f32
    %47 = vector.broadcast %cst_23 : f32 to vector<16x1xf32>
    %48 = arith.divf %46, %47 : vector<16x1xf32>
    %49 = vector.broadcast %48 : vector<16x1xf32> to vector<16x256xf32>
    %50 = arith.subf %22, %49 : vector<16x256xf32>
    %51 = arith.mulf %50, %50 : vector<16x256xf32>
    %cst_24 = arith.constant dense<0.000000e+00> : vector<16xf32>
    %52 = vector.multi_reduction <add>, %51, %cst_24 [1] : vector<16x256xf32> to vector<16xf32>
    %53 = vector.shape_cast %52 : vector<16xf32> to vector<16x1xf32>
    %cst_25 = arith.constant 2.560000e+02 : f32
    %54 = vector.broadcast %cst_25 : f32 to vector<16x1xf32>
    %55 = arith.divf %53, %54 : vector<16x1xf32>
    %cst_26 = arith.constant 9.99999974E-6 : f32
    %56 = vector.broadcast %cst_26 : f32 to vector<16x1xf32>
    %57 = arith.addf %55, %56 : vector<16x1xf32>
    %58 = math.rsqrt %57 : vector<16x1xf32>
    %59 = vector.broadcast %58 : vector<16x1xf32> to vector<16x256xf32>
    %60 = arith.mulf %50, %59 : vector<16x256xf32>
    %61 = vector.broadcast %1 : vector<1x256xf32> to vector<16x256xf32>
    %62 = arith.mulf %60, %61 : vector<16x256xf32>
    %63 = vector.broadcast %2 : vector<1x256xf32> to vector<16x256xf32>
    %64 = arith.addf %62, %63 : vector<16x256xf32>
    %65 = vector.extract_strided_slice %9 {offsets = [0, 0], sizes = [256, 256], strides = [1, 1]} : vector<768x256xbf16> to vector<256x256xbf16>
    %66 = arith.truncf %44 : vector<32x256xf32> to vector<32x256xbf16>
    %cst_27 = arith.constant dense<0.000000e+00> : vector<32x256xf32>
    %67 = tpu.matmul %66, %65, %cst_27 {dimension_numbers = #tpu.dot_dimension_numbers<[1], [1], [0], [0], [0, 0, 1, 0], [], []>} : vector<32x256xbf16>, vector<256x256xbf16>, vector<32x256xf32> -> vector<32x256xf32>
    %68 = vector.broadcast %3 : vector<1x256xf32> to vector<32x256xf32>
    %69 = arith.addf %67, %68 : vector<32x256xf32>
    %70 = vector.extract_strided_slice %9 {offsets = [256, 0], sizes = [512, 256], strides = [1, 1]} : vector<768x256xbf16> to vector<512x256xbf16>
    %71 = arith.truncf %64 : vector<16x256xf32> to vector<16x256xbf16>
    %cst_28 = arith.constant dense<0.000000e+00> : vector<16x512xf32>
    %72 = tpu.matmul %71, %70, %cst_28 {dimension_numbers = #tpu.dot_dimension_numbers<[1], [1], [0], [0], [0, 0, 1, 0], [], []>} : vector<16x256xbf16>, vector<512x256xbf16>, vector<16x512xf32> -> vector<16x512xf32>
    %73 = vector.extract_strided_slice %72 {offsets = [0, 0], sizes = [16, 256], strides = [1, 1]} : vector<16x512xf32> to vector<16x256xf32>
    %74 = vector.broadcast %4 : vector<1x256xf32> to vector<16x256xf32>
    %75 = arith.addf %73, %74 : vector<16x256xf32>
    %76 = vector.extract_strided_slice %72 {offsets = [0, 256], sizes = [16, 256], strides = [1, 1]} : vector<16x512xf32> to vector<16x256xf32>
    %77 = vector.broadcast %5 : vector<1x256xf32> to vector<16x256xf32>
    %78 = arith.addf %76, %77 : vector<16x256xf32>
    %79 = vector.extract_strided_slice %69 {offsets = [0, 0], sizes = [32, 128], strides = [1, 1]} : vector<32x256xf32> to vector<32x128xf32>
    %80 = arith.truncf %79 : vector<32x128xf32> to vector<32x128xbf16>
    %81 = vector.extract_strided_slice %75 {offsets = [0, 0], sizes = [16, 128], strides = [1, 1]} : vector<16x256xf32> to vector<16x128xf32>
    %82 = arith.truncf %81 : vector<16x128xf32> to vector<16x128xbf16>
    %cst_29 = arith.constant dense<0.000000e+00> : vector<32x16xf32>
    %83 = tpu.matmul %80, %82, %cst_29 {dimension_numbers = #tpu.dot_dimension_numbers<[1], [1], [0], [0], [0, 0, 1, 0], [], []>} : vector<32x128xbf16>, vector<16x128xbf16>, vector<32x16xf32> -> vector<32x16xf32>
    %cst_30 = arith.constant 0.0883883461 : f32
    %84 = vector.broadcast %cst_30 : f32 to vector<32x16xf32>
    %85 = arith.mulf %83, %84 : vector<32x16xf32>
    %cst_31 = arith.constant dense<0xFF800000> : vector<32xf32>
    %86 = vector.multi_reduction <maximumf>, %85, %cst_31 [1] : vector<32x16xf32> to vector<32xf32>
    %87 = vector.shape_cast %86 : vector<32xf32> to vector<32x1xf32>
    %88 = vector.broadcast %87 : vector<32x1xf32> to vector<32x16xf32>
    %89 = arith.subf %85, %88 : vector<32x16xf32>
    %90 = math.exp %89 : vector<32x16xf32>
    %cst_32 = arith.constant dense<0.000000e+00> : vector<32xf32>
    %91 = vector.multi_reduction <add>, %90, %cst_32 [1] : vector<32x16xf32> to vector<32xf32>
    %92 = vector.shape_cast %91 : vector<32xf32> to vector<32x1xf32>
    %93 = tpu.reciprocal %92 {approx = true} : vector<32x1xf32> -> vector<32x1xf32>
    %94 = vector.broadcast %93 : vector<32x1xf32> to vector<32x16xf32>
    %95 = arith.mulf %90, %94 : vector<32x16xf32>
    %96 = arith.truncf %95 : vector<32x16xf32> to vector<32x16xbf16>
    %97 = vector.extract_strided_slice %78 {offsets = [0, 0], sizes = [16, 128], strides = [1, 1]} : vector<16x256xf32> to vector<16x128xf32>
    %98 = arith.truncf %97 : vector<16x128xf32> to vector<16x128xbf16>
    %cst_33 = arith.constant dense<0.000000e+00> : vector<32x128xf32>
    %99 = tpu.matmul %96, %98, %cst_33 {dimension_numbers = #tpu.dot_dimension_numbers<[1], [0], [0], [1], [0, 0, 1, 1], [], []>} : vector<32x16xbf16>, vector<16x128xbf16>, vector<32x128xf32> -> vector<32x128xf32>
    %100 = arith.truncf %99 : vector<32x128xf32> to vector<32x128xbf16>
    %101 = vector.extract_strided_slice %10 {offsets = [0, 0], sizes = [256, 128], strides = [1, 1]} : vector<256x256xbf16> to vector<256x128xbf16>
    %cst_34 = arith.constant dense<0.000000e+00> : vector<32x256xf32>
    %102 = tpu.matmul %100, %101, %cst_34 {dimension_numbers = #tpu.dot_dimension_numbers<[1], [1], [0], [0], [0, 0, 1, 0], [], []>} : vector<32x128xbf16>, vector<256x128xbf16>, vector<32x256xf32> -> vector<32x256xf32>
    %103 = vector.extract_strided_slice %69 {offsets = [0, 128], sizes = [32, 128], strides = [1, 1]} : vector<32x256xf32> to vector<32x128xf32>
    %104 = arith.truncf %103 : vector<32x128xf32> to vector<32x128xbf16>
    %105 = vector.extract_strided_slice %75 {offsets = [0, 128], sizes = [16, 128], strides = [1, 1]} : vector<16x256xf32> to vector<16x128xf32>
    %106 = arith.truncf %105 : vector<16x128xf32> to vector<16x128xbf16>
    %cst_35 = arith.constant dense<0.000000e+00> : vector<32x16xf32>
    %107 = tpu.matmul %104, %106, %cst_35 {dimension_numbers = #tpu.dot_dimension_numbers<[1], [1], [0], [0], [0, 0, 1, 0], [], []>} : vector<32x128xbf16>, vector<16x128xbf16>, vector<32x16xf32> -> vector<32x16xf32>
    %cst_36 = arith.constant 0.0883883461 : f32
    %108 = vector.broadcast %cst_36 : f32 to vector<32x16xf32>
    %109 = arith.mulf %107, %108 : vector<32x16xf32>
    %cst_37 = arith.constant dense<0xFF800000> : vector<32xf32>
    %110 = vector.multi_reduction <maximumf>, %109, %cst_37 [1] : vector<32x16xf32> to vector<32xf32>
    %111 = vector.shape_cast %110 : vector<32xf32> to vector<32x1xf32>
    %112 = vector.broadcast %111 : vector<32x1xf32> to vector<32x16xf32>
    %113 = arith.subf %109, %112 : vector<32x16xf32>
    %114 = math.exp %113 : vector<32x16xf32>
    %cst_38 = arith.constant dense<0.000000e+00> : vector<32xf32>
    %115 = vector.multi_reduction <add>, %114, %cst_38 [1] : vector<32x16xf32> to vector<32xf32>
    %116 = vector.shape_cast %115 : vector<32xf32> to vector<32x1xf32>
    %117 = tpu.reciprocal %116 {approx = true} : vector<32x1xf32> -> vector<32x1xf32>
    %118 = vector.broadcast %117 : vector<32x1xf32> to vector<32x16xf32>
    %119 = arith.mulf %114, %118 : vector<32x16xf32>
    %120 = arith.truncf %119 : vector<32x16xf32> to vector<32x16xbf16>
    %121 = vector.extract_strided_slice %78 {offsets = [0, 128], sizes = [16, 128], strides = [1, 1]} : vector<16x256xf32> to vector<16x128xf32>
    %122 = arith.truncf %121 : vector<16x128xf32> to vector<16x128xbf16>
    %cst_39 = arith.constant dense<0.000000e+00> : vector<32x128xf32>
    %123 = tpu.matmul %120, %122, %cst_39 {dimension_numbers = #tpu.dot_dimension_numbers<[1], [0], [0], [1], [0, 0, 1, 1], [], []>} : vector<32x16xbf16>, vector<16x128xbf16>, vector<32x128xf32> -> vector<32x128xf32>
    %124 = arith.truncf %123 : vector<32x128xf32> to vector<32x128xbf16>
    %125 = vector.extract_strided_slice %10 {offsets = [0, 128], sizes = [256, 128], strides = [1, 1]} : vector<256x256xbf16> to vector<256x128xbf16>
    %cst_40 = arith.constant dense<0.000000e+00> : vector<32x256xf32>
    %126 = tpu.matmul %124, %125, %cst_40 {dimension_numbers = #tpu.dot_dimension_numbers<[1], [1], [0], [0], [0, 0, 1, 0], [], []>} : vector<32x128xbf16>, vector<256x128xbf16>, vector<32x256xf32> -> vector<32x256xf32>
    %127 = arith.addf %102, %126 : vector<32x256xf32>
    %128 = vector.broadcast %6 : vector<1x256xf32> to vector<32x256xf32>
    %129 = arith.addf %127, %128 : vector<32x256xf32>
    %130 = arith.addf %24, %129 : vector<32x256xf32>
    %cst_41 = arith.constant dense<0.000000e+00> : vector<32xf32>
    %131 = vector.multi_reduction <add>, %130, %cst_41 [1] : vector<32x256xf32> to vector<32xf32>
    %132 = vector.shape_cast %131 : vector<32xf32> to vector<32x1xf32>
    %cst_42 = arith.constant 2.560000e+02 : f32
    %133 = vector.broadcast %cst_42 : f32 to vector<32x1xf32>
    %134 = arith.divf %132, %133 : vector<32x1xf32>
    %135 = vector.broadcast %134 : vector<32x1xf32> to vector<32x256xf32>
    %136 = arith.subf %130, %135 : vector<32x256xf32>
    %137 = arith.mulf %136, %136 : vector<32x256xf32>
    %cst_43 = arith.constant dense<0.000000e+00> : vector<32xf32>
    %138 = vector.multi_reduction <add>, %137, %cst_43 [1] : vector<32x256xf32> to vector<32xf32>
    %139 = vector.shape_cast %138 : vector<32xf32> to vector<32x1xf32>
    %cst_44 = arith.constant 2.560000e+02 : f32
    %140 = vector.broadcast %cst_44 : f32 to vector<32x1xf32>
    %141 = arith.divf %139, %140 : vector<32x1xf32>
    %cst_45 = arith.constant 9.99999974E-6 : f32
    %142 = vector.broadcast %cst_45 : f32 to vector<32x1xf32>
    %143 = arith.addf %141, %142 : vector<32x1xf32>
    %144 = math.rsqrt %143 : vector<32x1xf32>
    %145 = vector.broadcast %144 : vector<32x1xf32> to vector<32x256xf32>
    %146 = arith.mulf %136, %145 : vector<32x256xf32>
    %147 = vector.broadcast %1 : vector<1x256xf32> to vector<32x256xf32>
    %148 = arith.mulf %146, %147 : vector<32x256xf32>
    %149 = vector.broadcast %2 : vector<1x256xf32> to vector<32x256xf32>
    %150 = arith.addf %148, %149 : vector<32x256xf32>
    %151 = arith.truncf %150 : vector<32x256xf32> to vector<32x256xbf16>
    %cst_46 = arith.constant dense<0.000000e+00> : vector<32x768xf32>
    %152 = tpu.matmul %151, %9, %cst_46 {dimension_numbers = #tpu.dot_dimension_numbers<[1], [1], [0], [0], [0, 0, 1, 0], [], []>} : vector<32x256xbf16>, vector<768x256xbf16>, vector<32x768xf32> -> vector<32x768xf32>
    %153 = vector.extract_strided_slice %152 {offsets = [0, 0], sizes = [32, 256], strides = [1, 1]} : vector<32x768xf32> to vector<32x256xf32>
    %154 = vector.broadcast %3 : vector<1x256xf32> to vector<32x256xf32>
    %155 = arith.addf %153, %154 : vector<32x256xf32>
    %156 = vector.extract_strided_slice %152 {offsets = [0, 256], sizes = [32, 256], strides = [1, 1]} : vector<32x768xf32> to vector<32x256xf32>
    %157 = vector.broadcast %4 : vector<1x256xf32> to vector<32x256xf32>
    %158 = arith.addf %156, %157 : vector<32x256xf32>
    %159 = vector.extract_strided_slice %152 {offsets = [0, 512], sizes = [32, 256], strides = [1, 1]} : vector<32x768xf32> to vector<32x256xf32>
    %160 = vector.broadcast %5 : vector<1x256xf32> to vector<32x256xf32>
    %161 = arith.addf %159, %160 : vector<32x256xf32>
    %162 = vector.extract_strided_slice %155 {offsets = [0, 0], sizes = [32, 128], strides = [1, 1]} : vector<32x256xf32> to vector<32x128xf32>
    %163 = arith.truncf %162 : vector<32x128xf32> to vector<32x128xbf16>
    %164 = vector.extract_strided_slice %158 {offsets = [0, 0], sizes = [32, 128], strides = [1, 1]} : vector<32x256xf32> to vector<32x128xf32>
    %165 = arith.truncf %164 : vector<32x128xf32> to vector<32x128xbf16>
    %cst_47 = arith.constant dense<0.000000e+00> : vector<32x32xf32>
    %166 = tpu.matmul %163, %165, %cst_47 {dimension_numbers = #tpu.dot_dimension_numbers<[1], [1], [0], [0], [0, 0, 1, 0], [], []>} : vector<32x128xbf16>, vector<32x128xbf16>, vector<32x32xf32> -> vector<32x32xf32>
    %cst_48 = arith.constant 0.0883883461 : f32
    %167 = vector.broadcast %cst_48 : f32 to vector<32x32xf32>
    %168 = arith.mulf %166, %167 : vector<32x32xf32>
    %cst_49 = arith.constant dense<0xFF800000> : vector<32xf32>
    %169 = vector.multi_reduction <maximumf>, %168, %cst_49 [1] : vector<32x32xf32> to vector<32xf32>
    %170 = vector.shape_cast %169 : vector<32xf32> to vector<32x1xf32>
    %171 = vector.broadcast %170 : vector<32x1xf32> to vector<32x32xf32>
    %172 = arith.subf %168, %171 : vector<32x32xf32>
    %173 = math.exp %172 : vector<32x32xf32>
    %cst_50 = arith.constant dense<0.000000e+00> : vector<32xf32>
    %174 = vector.multi_reduction <add>, %173, %cst_50 [1] : vector<32x32xf32> to vector<32xf32>
    %175 = vector.shape_cast %174 : vector<32xf32> to vector<32x1xf32>
    %176 = tpu.reciprocal %175 {approx = true} : vector<32x1xf32> -> vector<32x1xf32>
    %177 = vector.broadcast %176 : vector<32x1xf32> to vector<32x32xf32>
    %178 = arith.mulf %173, %177 : vector<32x32xf32>
    %179 = arith.truncf %178 : vector<32x32xf32> to vector<32x32xbf16>
    %180 = vector.extract_strided_slice %161 {offsets = [0, 0], sizes = [32, 128], strides = [1, 1]} : vector<32x256xf32> to vector<32x128xf32>
    %181 = arith.truncf %180 : vector<32x128xf32> to vector<32x128xbf16>
    %cst_51 = arith.constant dense<0.000000e+00> : vector<32x128xf32>
    %182 = tpu.matmul %179, %181, %cst_51 {dimension_numbers = #tpu.dot_dimension_numbers<[1], [0], [0], [1], [0, 0, 1, 1], [], []>} : vector<32x32xbf16>, vector<32x128xbf16>, vector<32x128xf32> -> vector<32x128xf32>
    %183 = arith.truncf %182 : vector<32x128xf32> to vector<32x128xbf16>
    %184 = vector.extract_strided_slice %10 {offsets = [0, 0], sizes = [256, 128], strides = [1, 1]} : vector<256x256xbf16> to vector<256x128xbf16>
    %cst_52 = arith.constant dense<0.000000e+00> : vector<32x256xf32>
    %185 = tpu.matmul %183, %184, %cst_52 {dimension_numbers = #tpu.dot_dimension_numbers<[1], [1], [0], [0], [0, 0, 1, 0], [], []>} : vector<32x128xbf16>, vector<256x128xbf16>, vector<32x256xf32> -> vector<32x256xf32>
    %186 = vector.extract_strided_slice %155 {offsets = [0, 128], sizes = [32, 128], strides = [1, 1]} : vector<32x256xf32> to vector<32x128xf32>
    %187 = arith.truncf %186 : vector<32x128xf32> to vector<32x128xbf16>
    %188 = vector.extract_strided_slice %158 {offsets = [0, 128], sizes = [32, 128], strides = [1, 1]} : vector<32x256xf32> to vector<32x128xf32>
    %189 = arith.truncf %188 : vector<32x128xf32> to vector<32x128xbf16>
    %cst_53 = arith.constant dense<0.000000e+00> : vector<32x32xf32>
    %190 = tpu.matmul %187, %189, %cst_53 {dimension_numbers = #tpu.dot_dimension_numbers<[1], [1], [0], [0], [0, 0, 1, 0], [], []>} : vector<32x128xbf16>, vector<32x128xbf16>, vector<32x32xf32> -> vector<32x32xf32>
    %cst_54 = arith.constant 0.0883883461 : f32
    %191 = vector.broadcast %cst_54 : f32 to vector<32x32xf32>
    %192 = arith.mulf %190, %191 : vector<32x32xf32>
    %cst_55 = arith.constant dense<0xFF800000> : vector<32xf32>
    %193 = vector.multi_reduction <maximumf>, %192, %cst_55 [1] : vector<32x32xf32> to vector<32xf32>
    %194 = vector.shape_cast %193 : vector<32xf32> to vector<32x1xf32>
    %195 = vector.broadcast %194 : vector<32x1xf32> to vector<32x32xf32>
    %196 = arith.subf %192, %195 : vector<32x32xf32>
    %197 = math.exp %196 : vector<32x32xf32>
    %cst_56 = arith.constant dense<0.000000e+00> : vector<32xf32>
    %198 = vector.multi_reduction <add>, %197, %cst_56 [1] : vector<32x32xf32> to vector<32xf32>
    %199 = vector.shape_cast %198 : vector<32xf32> to vector<32x1xf32>
    %200 = tpu.reciprocal %199 {approx = true} : vector<32x1xf32> -> vector<32x1xf32>
    %201 = vector.broadcast %200 : vector<32x1xf32> to vector<32x32xf32>
    %202 = arith.mulf %197, %201 : vector<32x32xf32>
    %203 = arith.truncf %202 : vector<32x32xf32> to vector<32x32xbf16>
    %204 = vector.extract_strided_slice %161 {offsets = [0, 128], sizes = [32, 128], strides = [1, 1]} : vector<32x256xf32> to vector<32x128xf32>
    %205 = arith.truncf %204 : vector<32x128xf32> to vector<32x128xbf16>
    %cst_57 = arith.constant dense<0.000000e+00> : vector<32x128xf32>
    %206 = tpu.matmul %203, %205, %cst_57 {dimension_numbers = #tpu.dot_dimension_numbers<[1], [0], [0], [1], [0, 0, 1, 1], [], []>} : vector<32x32xbf16>, vector<32x128xbf16>, vector<32x128xf32> -> vector<32x128xf32>
    %207 = arith.truncf %206 : vector<32x128xf32> to vector<32x128xbf16>
    %208 = vector.extract_strided_slice %10 {offsets = [0, 128], sizes = [256, 128], strides = [1, 1]} : vector<256x256xbf16> to vector<256x128xbf16>
    %cst_58 = arith.constant dense<0.000000e+00> : vector<32x256xf32>
    %209 = tpu.matmul %207, %208, %cst_58 {dimension_numbers = #tpu.dot_dimension_numbers<[1], [1], [0], [0], [0, 0, 1, 0], [], []>} : vector<32x128xbf16>, vector<256x128xbf16>, vector<32x256xf32> -> vector<32x256xf32>
    %210 = arith.addf %185, %209 : vector<32x256xf32>
    %211 = vector.broadcast %6 : vector<1x256xf32> to vector<32x256xf32>
    %212 = arith.addf %210, %211 : vector<32x256xf32>
    %213 = arith.addf %130, %212 : vector<32x256xf32>
    %c0_59 = arith.constant 0 : index
    %c0_60 = arith.constant 0 : index
    %c0_61 = arith.constant 0 : index
    %214 = vector.load %arg3[%c0_59, %c0_60, %c0_61] : memref<1x1x128xf32, #tpu.memory_space<vmem>>, vector<1x1x128xf32>
    %215 = vector.shape_cast %214 : vector<1x1x128xf32> to vector<1x128xf32>
    %216 = arith.truncf %215 : vector<1x128xf32> to vector<1x128xbf16>
    %cst_62 = arith.constant dense<0.000000e+00> : vector<1x256xf32>
    %217 = tpu.matmul %216, %11, %cst_62 {dimension_numbers = #tpu.dot_dimension_numbers<[1], [1], [0], [0], [0, 0, 1, 0], [], []>} : vector<1x128xbf16>, vector<256x128xbf16>, vector<1x256xf32> -> vector<1x256xf32>
    %218 = arith.addf %217, %7 : vector<1x256xf32>
    %c0_63 = arith.constant 0 : index
    %c0_64 = arith.constant 0 : index
    %c0_65 = arith.constant 0 : index
    %219 = vector.load %arg4[%c0_63, %c0_64, %c0_65] : memref<1x1x1xf32, #tpu.memory_space<vmem>>, vector<1x1x1xf32>
    %220 = vector.shape_cast %219 : vector<1x1x1xf32> to vector<1x1xf32>
    %221 = vector.broadcast %220 : vector<1x1xf32> to vector<1x256xf32>
    %222 = arith.mulf %221, %8 : vector<1x256xf32>
    %223 = tpu.concatenate %218, %213, %222 in 0 : vector<1x256xf32>, vector<32x256xf32>, vector<1x256xf32> -> vector<34x256xf32>
    %c0_66 = arith.constant 0 : index
    %c0_67 = arith.constant 0 : index
    %c0_68 = arith.constant 0 : index
    %224 = vector.load %arg11[%c0_66, %c0_67, %c0_68] : memref<1x34x256xf32, #tpu.memory_space<vmem>>, vector<1x34x256xf32>
    %225 = vector.shape_cast %224 : vector<1x34x256xf32> to vector<34x256xf32>
    %226 = vector.shape_cast %223 : vector<34x256xf32> to vector<1x34x256xf32>
    tpu.vector_store %arg11[%c0_66, %c0_67, %c0_68], %226 {strides = array<i32>} : memref<1x34x256xf32, #tpu.memory_space<vmem>>, vector<1x34x256xf32>,
    return
  }
  func.func @transform_0(%arg0: i32) -> (i32, i32, i32) {
    %c0_i32 = arith.constant 0 : i32
    %c0_i32_0 = arith.constant 0 : i32
    %c0_i32_1 = arith.constant 0 : i32
    return %arg0, %c0_i32, %c0_i32_0 : i32, i32, i32
  }
  func.func @transform_1(%arg0: i32) -> (i32, i32, i32) {
    %c0_i32 = arith.constant 0 : i32
    %c0_i32_0 = arith.constant 0 : i32
    %c0_i32_1 = arith.constant 0 : i32
    %c0_i32_2 = arith.constant 0 : i32
    return %c0_i32, %c0_i32_0, %c0_i32_1 : i32, i32, i32
  }
  func.func @transform_2(%arg0: i32) -> (i32, i32, i32) {
    %c0_i32 = arith.constant 0 : i32
    %c0_i32_0 = arith.constant 0 : i32
    %c0_i32_1 = arith.constant 0 : i32
    return %arg0, %c0_i32, %c0_i32_0 : i32, i32, i32
  }
  func.func @transform_3(%arg0: i32) -> (i32, i32, i32) {
    %c0_i32 = arith.constant 0 : i32
    %c0_i32_0 = arith.constant 0 : i32
    %c0_i32_1 = arith.constant 0 : i32
    return %arg0, %c0_i32, %c0_i32_0 : i32, i32, i32
  }
  func.func @transform_4(%arg0: i32) -> (i32, i32) {
    %c0_i32 = arith.constant 0 : i32
    %c0_i32_0 = arith.constant 0 : i32
    %c0_i32_1 = arith.constant 0 : i32
    return %c0_i32, %c0_i32_0 : i32, i32
  }
  func.func @transform_5(%arg0: i32) -> (i32, i32) {
    %c0_i32 = arith.constant 0 : i32
    %c0_i32_0 = arith.constant 0 : i32
    %c0_i32_1 = arith.constant 0 : i32
    return %c0_i32, %c0_i32_0 : i32, i32
  }
  func.func @transform_6(%arg0: i32) -> (i32, i32) {
    %c0_i32 = arith.constant 0 : i32
    %c0_i32_0 = arith.constant 0 : i32
    %c0_i32_1 = arith.constant 0 : i32
    return %c0_i32, %c0_i32_0 : i32, i32
  }
  func.func @transform_7(%arg0: i32) -> (i32, i32) {
    %c0_i32 = arith.constant 0 : i32
    %c0_i32_0 = arith.constant 0 : i32
    %c0_i32_1 = arith.constant 0 : i32
    return %c0_i32, %c0_i32_0 : i32, i32
  }
  func.func @transform_8(%arg0: i32) -> (i32, i32) {
    %c0_i32 = arith.constant 0 : i32
    %c0_i32_0 = arith.constant 0 : i32
    %c0_i32_1 = arith.constant 0 : i32
    return %c0_i32, %c0_i32_0 : i32, i32
  }
  func.func @transform_9(%arg0: i32) -> (i32, i32) {
    %c0_i32 = arith.constant 0 : i32
    %c0_i32_0 = arith.constant 0 : i32
    %c0_i32_1 = arith.constant 0 : i32
    return %c0_i32, %c0_i32_0 : i32, i32
  }
  func.func @transform_10(%arg0: i32) -> (i32, i32, i32) {
    %c0_i32 = arith.constant 0 : i32
    %c0_i32_0 = arith.constant 0 : i32
    %c0_i32_1 = arith.constant 0 : i32
    return %arg0, %c0_i32, %c0_i32_0 : i32, i32, i32
  }
}

</mosaic_0001>

<bundles_post_ra>
// kernel: tile.0
= control target key start
LH: loop header
LB: loop body
LE: loop exit
PB: predicated region body
PF: predicated region fallthrough
CT: control target
= control target key end

     0   :  { %s67_s8 = smov 125   ;;  %vm8_vm0 = vcmask 7168   ;;  %s68_s11 = smov 126   ;;  %s118_s0 = inlined_call_operand.vmem [shape: s32[2,8], index: 0, kind: input, shape index: {}]   ;;  %s119_s1 = inlined_call_operand.vmem [shape: s32[16,1], index: 1, kind: output, shape index: {}]  }
   0x1   :  { %v5_v0 = vld [vmem:[%s118_s0] sm:$0x3]  ;;  %s66_s0 = smov 127   ;;  %s69_s12 = smov 124  }
   0x2   :  { %6 = vst [vmem:[#allocation0] sm:$0x3] %v5_v0  ;;  %s70_s13 = smov 123   ;;  %s71_s14 = smov 122  }
   0x3   :  { %s72_s15 = smov 121  }
   0x9   :  { %v10_v1 = vld [vmem:[#allocation0] sm:$0x3]  }
   0xa   :  { %v22_v2 = vld [vmem:[#allocation0] sm:$0x3]   ;;  %11 = vrot.lane.b32.xlu0 %v10_v1, %s66_s0 }
   0xb   :  { %23 = vrot.lane.b32.xlu1 %v22_v2, %s67_s8  ;;  %v16_v3 = vld [vmem:[#allocation0] sm:$0x3]  }
   0xc   :  { %v28_v4 = vld [vmem:[#allocation0] sm:$0x3]  }
   0xd   :  { %v7_v5 = vld [vmem:[#allocation0] sm:$0x3]  }
   0xe   :  { %9 = vst.msk [vmem:[%s119_s1] ss:$8 sm:$0x3] %vm8_vm0, %v7_v5   ;;  %17 = vrot.lane.b32.xlu0 %v16_v3, %s68_s11  ;;  %v34_v6 = vld [vmem:[#allocation0] sm:$0x3]  }
   0xf   :  { %29 = vrot.lane.b32.xlu1 %v28_v4, %s69_s12  ;;  %v40_v7 = vld [vmem:[#allocation0] sm:$0x3]  }
  0x10   :  { %v46_v8 = vld [vmem:[#allocation0] sm:$0x3]  }
  0x12   :  { %35 = vrot.lane.b32.xlu0 %v34_v6, %s70_s13 }
  0x13   :  { %41 = vrot.lane.b32.xlu1 %v40_v7, %s71_s14 }
  0x16   :  { %47 = vrot.lane.b32.xlu0 %v46_v8, %s72_s15 }
  0x7c   :  { %v12_v9 = vpop.permute.xlu0 %11  }
  0x7d   :  { %v24_v10 = vpop.permute.xlu1 %23   ;;  %52 = vst.msk [vmem:[%s119_s1 + $0x1] ss:$8 sm:$0x3] %vm8_vm0, %v12_v9  }
  0x7e   :  { %54 = vst.msk [vmem:[%s119_s1 + $0x3] ss:$8 sm:$0x3] %vm8_vm0, %v24_v10  }
  0x80   :  { %v18_v11 = vpop.permute.xlu0 %17  }
  0x81   :  { %v30_v12 = vpop.permute.xlu1 %29   ;;  %53 = vst.msk [vmem:[%s119_s1 + $0x2] ss:$8 sm:$0x3] %vm8_vm0, %v18_v11  }
  0x82   :  { %55 = vst.msk [vmem:[%s119_s1 + $0x4] ss:$8 sm:$0x3] %vm8_vm0, %v30_v12  }
  0x84   :  { %v36_v13 = vpop.permute.xlu0 %35  }
  0x85   :  { %v42_v14 = vpop.permute.xlu1 %41   ;;  %56 = vst.msk [vmem:[%s119_s1 + $0x5] ss:$8 sm:$0x3] %vm8_vm0, %v36_v13  }
  0x86   :  { %57 = vst.msk [vmem:[%s119_s1 + $0x6] ss:$8 sm:$0x3] %vm8_vm0, %v42_v14  }
  0x88   :  { %v48_v15 = vpop.permute.xlu0 %47  }
  0x89   :  { %58 = vst.msk [vmem:[%s119_s1 + $0x7] ss:$8 sm:$0x3] %vm8_vm0, %v48_v15  }

// kernel: speech_encoder_forward.3
= control target key start
LH: loop header
LB: loop body
LE: loop exit
PB: predicated region body
PF: predicated region fallthrough
CT: control target
= control target key end

     0   :  { %15 = vsyncpa [#allocation3], 0  ;;  %s802_s0 = inlined_call_operand.vmem [shape: s32[16,1], index: 0, kind: input, shape index: {}]   ;;  %s803_s1 = inlined_call_operand.vmem [shape: s32[16,1], index: 1, kind: input, shape index: {}, may-alias: {1,3}]   ;;  %s804_s2 = inlined_call_operand.vmem [shape: s32[16,1], index: 2, kind: input, shape index: {}]   ;;  %s805_s3 = inlined_call_operand.vmem [shape: s32[16,1], index: 3, kind: input, shape index: {}, may-alias: {1,3}]   ;;  %s806_s4 = inlined_call_operand.hbm [shape: f32[64,256], index: 4, kind: input, shape index: {}]   ;;  %s807_s5 = inlined_call_operand.vmem [shape: f32[32,256], index: 5, kind: input, shape index: {}]   ;;  %s808_s6 = inlined_call_operand.hbm [shape: f32[80,256], index: 6, kind: input, shape index: {}]   ;;  %s809_s7 = inlined_call_operand.hbm [shape: f32[64,256], index: 7, kind: input, shape index: {}]   ;;  %s810_s8 = inlined_call_operand.vmem [shape: f32[16,256], index: 8, kind: output, shape index: {0}]   ;;  %s811_s9 = inlined_call_operand.vmem [shape: f32[16,256], index: 9, kind: output, shape index: {1}]  }
   0x1   :  { %16 = vsyncpa [#allocation5], 0  ;;  %s632_s30 = smov [#allocation4]   ;;  %s633_s11 = smov [#allocation2]  }
   0x2   :  { %s44_s10 = sshll.u32 %s632_s30, 4  ;;  %s30_s12 = sshll.u32 %s633_s11, 4  ;;  %s45_s10 = int_to_ptr.vmem [resolvable:$true] %s44_s10  ;;  %s31_s12 = int_to_ptr.vmem [resolvable:$true] %s30_s12 }
   0x3   :  { %s576_s13 = scalar_lea.vmem %s45_s10, 2560  ;;  %p581_p1 = scmp.lt.s32.totalorder %s45_s10, %s45_s10 }
   0x4   :  { %p577_p0 = scmp.ne.s32.totalorder %s45_s10, %s576_s13  ;;  %p582_p2 = scmp.lt.s32.totalorder %s576_s13, %s576_s13 }
   0x6   :  { %p583_p3 = por %p582_p2, %p581_p1 }
   0x8   :  { %p584_p4 = pnand %p583_p3, %p577_p0 }
   0xa   :  { %587 = shalt.err (!%p584_p4)
}
   0xb   :  { %s634_s14 = smov 256   ;;  %s635_s15 = smov 16  }
   0xc   :  { %50 = dma.hbm_to_vmem [thread:$0]  %s808_s6, 2560, %s45_s10, [#allocation5], %s634_s14, %s634_s14, %s635_s15  }
   0xd   :  { %s596_s18 = scalar_lea.vmem %s31_s12, 2048  ;;  %p601_p6 = scmp.lt.s32.totalorder %s31_s12, %s31_s12 }
   0xe   :  { %p597_p5 = scmp.ne.s32.totalorder %s31_s12, %s596_s18  ;;  %p602_p7 = scmp.lt.s32.totalorder %s596_s18, %s596_s18 }
  0x10   :  { %p603_p8 = por %p602_p7, %p601_p6 }
  0x12   :  { %p604_p9 = pnand %p603_p8, %p597_p5 }
  0x14   :  { %607 = shalt.err (!%p604_p9)
}
  0x15   :  { %36 = dma.hbm_to_vmem [thread:$0]  %s806_s4, 2048, %s31_s12, [#allocation3], %s634_s14, %s634_s14, %s635_s15  }
  0x16   :  { %s636_s21 = smov [#allocation6]  }
  0x17   :  { %s56_s22 = sshll.u32 %s636_s21, 4  ;;  %s57_s22 = int_to_ptr.vmem [resolvable:$true] %s56_s22 }
  0x18   :  { %s616_s23 = scalar_lea.vmem %s57_s22, 2048  ;;  %p621_p11 = scmp.lt.s32.totalorder %s57_s22, %s57_s22 }
  0x19   :  { %p617_p10 = scmp.ne.s32.totalorder %s57_s22, %s616_s23  ;;  %p622_p12 = scmp.lt.s32.totalorder %s616_s23, %s616_s23 }
  0x1b   :  { %p623_p13 = por %p622_p12, %p621_p11 }
  0x1d   :  { %p624_p0 = pnand %p623_p13, %p617_p10 }
  0x1f   :  { %627 = shalt.err (!%p624_p0)
}
  0x20   :  { %62 = dma.hbm_to_vmem [thread:$0]  %s809_s7, 2048, %s57_s22, [#allocation5], %s634_s14, %s634_s14, %s635_s15  }
  0x21   :  { %628 = dma.done.wait [#allocation3], 2048  }
  0x22   :  { %629 = vsyncadd [#allocation3], 4294965248 }
  0x23   :  { %630 = dma.done.wait [#allocation5], 4608  }
  0x24   :  { %631 = vsyncadd [#allocation5], 4294962688  ;;  %v637_v0 = vmov 0   ;;  %v638_v1 = vmov 0.0   ;;  %v73_v2 = vld [vmem:[%s802_s0 + $0x8] sm:$0xff]  ;;  %v72_v3 = vld [vmem:[%s802_s0] sm:$0xff]  ;;  %v76_v36 = vlaneseq }
  0x25   :  { %567 = vset.pattern.permute.xlu1 %v637_v0  ;;  %566 = vset.pattern.permute.xlu0 %v637_v0  ;;  %v75_v4 = vld [vmem:[%s803_s1 + $0x8] sm:$0xff]  ;;  %v74_v5 = vld [vmem:[%s803_s1] sm:$0xff]  ;;  %v117_v6 = vld [vmem:[#allocation2 + $0x78] sm:$0xff]  ;;  %vm210_vm0 = vcmask 523264   ;;  %vm126_vm2 = vcmask 261120   ;;  %vm445_vm8 = vcmask 654336  }
  0x26   :  { %281 = vmatprep.mubr.f32.mxu1 %v638_v1  ;;  %197 = vmatprep.mubr.f32.mxu0 %v638_v1  ;;  %v116_v7 = vld [vmem:[#allocation2 + $0x70] sm:$0xff]  ;;  %v115_v8 = vld [vmem:[#allocation2 + $0x68] sm:$0xff]  ;;  %v114_v9 = vld [vmem:[#allocation2 + $0x60] sm:$0xff]  ;;  %v748_v37 = vand.u32 127, %v76_v36 }
  0x27   :  { %82 = vperm.xlu1 %567, %v73_v2   ;;  %79 = vperm.xlu0 %566, %v72_v3   ;;  %v113_v10 = vld [vmem:[#allocation2 + $0x58] sm:$0xff]  ;;  %v300_v11 = vld [vmem:[%s805_s3] sm:$0xff]  ;;  %v112_v14 = vld [vmem:[#allocation2 + $0x50] sm:$0xff] }
  0x28   :  { %233 = vmatprep.subr.mxu1 %v117_v6  ;;  %v298_v12 = vld [vmem:[%s804_s2] sm:$0xff]  ;;  %v125_v13 = vld [vmem:[%s807_s5 + $0x38] sm:$0xff]  ;;  %v124_v15 = vld [vmem:[%s807_s5 + $0x30] sm:$0xff] }
  0x29   :  { %234 = vmatpush1.msra.mxu1 %v116_v7  ;;  %157 = vmatprep.subr.mxu0 %v125_v13  ;;  %v111_v16 = vld [vmem:[#allocation2 + $0x48] sm:$0xff]  ;;  %v122_v18 = vld [vmem:[%s807_s5 + $0x20] sm:$0xff]  ;;  %v121_v20 = vld [vmem:[%s807_s5 + $0x18] sm:$0xff] }
  0x2a   :  { %235 = vmatprep.subr.mxu1 %v115_v8  ;;  %158 = vmatpush1.msra.mxu0 %v124_v15  ;;  %v123_v17 = vld [vmem:[%s807_s5 + $0x28] sm:$0xff]  ;;  %v110_v19 = vld [vmem:[#allocation2 + $0x40] sm:$0xff]  ;;  %v109_v23 = vld [vmem:[#allocation2 + $0x38] sm:$0xff] }
  0x2b   :  { %94 = vperm.xlu1 %567, %v75_v4   ;;  %91 = vperm.xlu0 %566, %v74_v5   ;;  %v301_v21 = vld [vmem:[%s805_s3 + $0x8] sm:$0xff]  ;;  %v120_v24 = vld [vmem:[%s807_s5 + $0x10] sm:$0xff]  ;;  %v118_v28 = vld [vmem:[%s807_s5] sm:$0xff] }
  0x2c   :  { %236 = vmatpush1.msra.mxu1 %v114_v9  ;;  %v299_v22 = vld [vmem:[%s804_s2 + $0x8] sm:$0xff]  ;;  %159 = vmatprep.subr.mxu0 %v123_v17  ;;  %v108_v25 = vld [vmem:[#allocation2 + $0x30] sm:$0xff]  ;;  %v106_v29 = vld [vmem:[#allocation2 + $0x20] sm:$0xff] }
  0x2d   :  { %237 = vmatprep.subr.mxu1 %v113_v10  ;;  %160 = vmatpush1.msra.mxu0 %v122_v18  ;;  %v119_v26 = vld [vmem:[%s807_s5 + $0x8] sm:$0xff]  ;;  %v361_v30 = vld [vmem:[#allocation6 + $0x78] sm:$0xff]  ;;  %v104_v32 = vld [vmem:[#allocation2 + $0x10] sm:$0xff] }
  0x2e   :  { %238 = vmatpush1.msra.mxu1 %v112_v14  ;;  %161 = vmatprep.subr.mxu0 %v121_v20  ;;  %v107_v27 = vld [vmem:[#allocation2 + $0x28] sm:$0xff]  ;;  %v105_v31 = vld [vmem:[#allocation2 + $0x18] sm:$0xff]  ;;  %v102_v34 = vld [vmem:[#allocation2] sm:$0xff] }
  0x2f   :  { %315 = vperm.xlu1 %567, %v300_v11   ;;  %303 = vperm.xlu0 %566, %v298_v12   ;;  %v103_v33 = vld [vmem:[#allocation2 + $0x8] sm:$0xff]  ;;  %v345_v35 = vld [vmem:[#allocation4 + $0x98] sm:$0xff]  ;;  %v344_v40 = vld [vmem:[#allocation4 + $0x90] sm:$0xff] }
  0x30   :  { %239 = vmatprep.subr.mxu1 %v111_v16  ;;  %162 = vmatpush1.msra.mxu0 %v120_v24  ;;  %v343_v42 = vld [vmem:[#allocation4 + $0x88] sm:$0xff]  ;;  %v342_v43 = vld [vmem:[#allocation4 + $0x80] sm:$0xff]  ;;  %v341_v45 = vld [vmem:[#allocation4 + $0x78] sm:$0xff] }
  0x31   :  { %240 = vmatpush1.msra.mxu1 %v110_v19  ;;  %163 = vmatprep.subr.mxu0 %v119_v26  ;;  %v360_v46 = vld [vmem:[#allocation6 + $0x70] sm:$0xff]  ;;  %v359_v50 = vld [vmem:[#allocation6 + $0x68] sm:$0xff]  ;;  %v358_v52 = vld [vmem:[#allocation6 + $0x60] sm:$0xff] }
  0x32   :  { %241 = vmatprep.subr.mxu1 %v109_v23  ;;  %164 = vmatpush1.msra.mxu0 %v118_v28  ;;  %v340_v47 = vld [vmem:[#allocation4 + $0x70] sm:$0xff]  ;;  %v339_v51 = vld [vmem:[#allocation4 + $0x68] sm:$0xff]  ;;  %v338_v53 = vld [vmem:[#allocation4 + $0x60] sm:$0xff] }
  0x33   :  { %318 = vperm.xlu1 %567, %v301_v21   ;;  %306 = vperm.xlu0 %566, %v299_v22   ;;  %v357_v54 = vld [vmem:[#allocation6 + $0x58] sm:$0xff]  ;;  %v356_v56 = vld [vmem:[#allocation6 + $0x50] sm:$0xff]  ;;  %v355_v60 = vld [vmem:[#allocation6 + $0x48] sm:$0xff] }
  0x34   :  { %242 = vmatpush1.msra.mxu1 %v108_v25  ;;  %384 = vmatprep.subr.mxu0 %v361_v30  ;;  %v337_v55 = vld [vmem:[#allocation4 + $0x58] sm:$0xff]  ;;  %v336_v58 = vld [vmem:[#allocation4 + $0x50] sm:$0xff]  ;;  %v335_v61 = vld [vmem:[#allocation4 + $0x48] sm:$0xff] }
  0x35   :  { %243 = vmatprep.subr.mxu1 %v107_v27  ;;  %v354_v62 = vld [vmem:[#allocation6 + $0x40] sm:$0xff]  ;;  %v353_v0 = vld [vmem:[#allocation6 + $0x38] sm:$0xff]  ;;  %v352_v3 = vld [vmem:[#allocation6 + $0x30] sm:$0xff] }
  0x36   :  { %244 = vmatpush1.msra.mxu1 %v106_v29  ;;  %v334_v63 = vld [vmem:[#allocation4 + $0x40] sm:$0xff]  ;;  %v333_v2 = vld [vmem:[#allocation4 + $0x38] sm:$0xff]  ;;  %v332_v4 = vld [vmem:[#allocation4 + $0x30] sm:$0xff] }
  0x37   :  { %245 = vmatprep.subr.mxu1 %v105_v31  ;;  %v351_v5 = vld [vmem:[#allocation6 + $0x28] sm:$0xff]  ;;  %v350_v8 = vld [vmem:[#allocation6 + $0x20] sm:$0xff]  ;;  %v349_v11 = vld [vmem:[#allocation6 + $0x18] sm:$0xff] }
  0x38   :  { %246 = vmatpush1.msra.mxu1 %v104_v32  ;;  %v331_v7 = vld [vmem:[#allocation4 + $0x28] sm:$0xff]  ;;  %v330_v10 = vld [vmem:[#allocation4 + $0x20] sm:$0xff]  ;;  %v329_v12 = vld [vmem:[#allocation4 + $0x18] sm:$0xff] }
  0x39   :  { %247 = vmatprep.subr.mxu1 %v103_v33  ;;  %v348_v13 = vld [vmem:[#allocation6 + $0x10] sm:$0xff]  ;;  %v347_v15 = vld [vmem:[#allocation6 + $0x8] sm:$0xff]  ;;  %v346_v17 = vld [vmem:[#allocation6] sm:$0xff] }
  0x3a   :  { %248 = vmatpush1.msra.mxu1 %v102_v34  ;;  %v328_v14 = vld [vmem:[#allocation4 + $0x10] sm:$0xff]  ;;  %v327_v16 = vld [vmem:[#allocation4 + $0x8] sm:$0xff]  ;;  %v326_v18 = vld [vmem:[#allocation4] sm:$0xff] }
  0x3b   :  { %464 = vmatprep.subr.mxu1 %v345_v35 }
  0xa2   :  { %v83_v38 = vpop.permute.xlu1 %82  ;;  %v80_v39 = vpop.permute.xlu0 %79 }
  0xa3   :  { %vm84_vm1 = vcmp.eq.s32.totalorder %v748_v37, %v80_v39  ;;  %vm85_vm5 = vcmp.eq.s32.totalorder %v748_v37, %v83_v38 }
  0xa4   :  { %v543_v41 = vsel %vm84_vm1, 1.0, %v638_v1  ;;  %v544_v59 = vsel %vm85_vm5, 1.0, %v638_v1 }
  0xa5   :  { %549 = vmatmul.mubr.msk.f32.vlgmr.msra.gmra.mxu1 %vm210_vm0, %v543_v41 }
  0xa6   :  { %465 = vmatpush1.msra.mxu1 %v344_v40  ;;  %v92_v44 = vpop.permute.xlu0 %91  ;;  %287 = vmatprep.mubr.f32.mxu1 %v638_v1  ;;  %v95_v48 = vpop.permute.xlu1 %94 }
  0xa7   :  { %466 = vmatprep.subr.mxu1 %v343_v42  ;;  %vm96_vm3 = vcmp.eq.s32.totalorder %v748_v37, %v92_v44  ;;  %vm97_vm4 = vcmp.eq.s32.totalorder %v748_v37, %v95_v48 }
  0xa8   :  { %v545_v49 = vsel %vm96_vm3, 1.0, %v638_v1  ;;  %467 = vmatpush1.msra.mxu1 %v342_v43  ;;  %v546_v57 = vsel %vm97_vm4, 1.0, %v638_v1 }
  0xa9   :  { %468 = vmatprep.subr.mxu1 %v341_v45  ;;  %547 = vmatmul.mubr.msk.f32.vlgmr.msra.gmra.mxu0 %vm126_vm2, %v545_v49 }
  0xaa   :  { %385 = vmatpush1.msra.mxu0 %v360_v46  ;;  %469 = vmatpush1.msra.mxu1 %v340_v47  ;;  %v316_v6 = vpop.permute.xlu1 %315  ;;  %v304_v9 = vpop.permute.xlu0 %303 }
  0xab   :  { %386 = vmatprep.subr.mxu0 %v359_v50  ;;  %470 = vmatprep.subr.mxu1 %v339_v51  ;;  %vm320_vm6 = vcmp.eq.s32.totalorder %v748_v37, %v316_v6  ;;  %vm308_vm7 = vcmp.eq.s32.totalorder %v748_v37, %v304_v9 }
  0xac   :  { %387 = vmatpush1.msra.mxu0 %v358_v52  ;;  %471 = vmatpush1.msra.mxu1 %v338_v53  ;;  %v553_v21 = vsel %vm320_vm6, 1.0, %v638_v1  ;;  %v551_v22 = vsel %vm308_vm7, 1.0, %v638_v1 }
  0xad   :  { %388 = vmatprep.subr.mxu0 %v357_v54  ;;  %472 = vmatprep.subr.mxu1 %v337_v55 }
  0xae   :  { %203 = vmatprep.mubr.f32.mxu0 %v638_v1  ;;  %389 = vmatpush1.msra.mxu0 %v356_v56  ;;  %v319_v19 = vpop.permute.xlu1 %318  ;;  %v307_v20 = vpop.permute.xlu0 %306 }
  0xaf   :  { %473 = vmatpush1.msra.mxu1 %v336_v58  ;;  %548 = vmatmul.mubr.msk.f32.gmra.mxu0 %vm126_vm2, %v546_v57  ;;  %vm321_vm9 = vcmp.eq.s32.totalorder %v748_v37, %v319_v19  ;;  %vm309_vm10 = vcmp.eq.s32.totalorder %v748_v37, %v307_v20 }
  0xb0   :  { %550 = vmatmul.mubr.msk.f32.gmra.mxu1 %vm210_vm0, %v544_v59  ;;  %390 = vmatprep.subr.mxu0 %v355_v60  ;;  %v554_v23 = vsel %vm321_vm9, 1.0, %v638_v1  ;;  %v552_v24 = vsel %vm309_vm10, 1.0, %v638_v1 }
  0xb1   :  { %474 = vmatprep.subr.mxu1 %v335_v61  ;;  %391 = vmatpush1.msra.mxu0 %v354_v62 }
  0xb2   :  { %475 = vmatpush1.msra.mxu1 %v334_v63  ;;  %392 = vmatprep.subr.mxu0 %v353_v0 }
  0xb3   :  { %476 = vmatprep.subr.mxu1 %v333_v2  ;;  %393 = vmatpush1.msra.mxu0 %v352_v3 }
  0xb4   :  { %477 = vmatpush1.msra.mxu1 %v332_v4  ;;  %394 = vmatprep.subr.mxu0 %v351_v5 }
  0xb5   :  { %478 = vmatprep.subr.mxu1 %v331_v7  ;;  %395 = vmatpush1.msra.mxu0 %v350_v8 }
  0xb6   :  { %479 = vmatpush1.msra.mxu1 %v330_v10  ;;  %396 = vmatprep.subr.mxu0 %v349_v11 }
  0xb7   :  { %480 = vmatprep.subr.mxu1 %v329_v12  ;;  %397 = vmatpush1.msra.mxu0 %v348_v13 }
  0xb8   :  { %481 = vmatpush1.msra.mxu1 %v328_v14  ;;  %398 = vmatprep.subr.mxu0 %v347_v15 }
  0xb9   :  { %482 = vmatprep.subr.mxu1 %v327_v16  ;;  %399 = vmatpush1.msra.mxu0 %v346_v17 }
  0xba   :  { %432 = vmatprep.mubr.f32.mxu0 %v638_v1  ;;  %483 = vmatpush1.msra.mxu1 %v326_v18 }
  0xbb   :  { %516 = vmatprep.mubr.f32.mxu1 %v638_v1  ;;  %555 = vmatmul.mubr.msk.f32.vlgmr.msra.gmra.mxu0 %vm210_vm0, %v553_v21 }
  0xbc   :  { %557 = vmatmul.mubr.msk.f32.vlgmr.msra.gmra.mxu1 %vm445_vm8, %v551_v22  ;;  %438 = vmatprep.mubr.f32.mxu0 %v638_v1 }
  0xbd   :  { %522 = vmatprep.mubr.f32.mxu1 %v638_v1 }
  0xbf   :  { %556 = vmatmul.mubr.msk.f32.gmra.mxu0 %vm210_vm0, %v554_v23 }
  0xc0   :  { %558 = vmatmul.mubr.msk.f32.gmra.mxu1 %vm445_vm8, %v552_v24 }
 0x165   :  { %v283_v25 = vpop.f32.mrf.mxu1 }
 0x167   :  { %v285_v28 = vpop.f32.mrf.mxu1 }
 0x169   :  { %v199_v26 = vpop.f32.mrf.mxu0 }
 0x16a   :  { %v284_v27 = vadd.f32 %v283_v25, %v199_v26 }
 0x16b   :  { %v201_v29 = vpop.f32.mrf.mxu0 }
 0x16c   :  { %294 = vst [vmem:[%s810_s8] sm:$0xff] %v284_v27  ;;  %v286_v30 = vadd.f32 %v285_v28, %v201_v29 }
 0x16e   :  { %295 = vst [vmem:[%s810_s8 + $0x8] sm:$0xff] %v286_v30 }
 0x16f   :  { %v205_v31 = vpop.f32.mrf.mxu0 }
 0x170   :  { %v289_v32 = vpop.f32.mrf.mxu1 }
 0x171   :  { %v290_v1 = vadd.f32 %v289_v32, %v205_v31  ;;  %v207_v33 = vpop.f32.mrf.mxu0 }
 0x172   :  { %v291_v34 = vpop.f32.mrf.mxu1 }
 0x173   :  { %296 = vst [vmem:[%s810_s8 + $0x10] sm:$0xff] %v290_v1  ;;  %v292_v35 = vadd.f32 %v291_v34, %v207_v33 }
 0x175   :  { %297 = vst [vmem:[%s810_s8 + $0x18] sm:$0xff] %v292_v35 }
 0x17b   :  { %v434_v36 = vpop.f32.mrf.mxu0 }
 0x17c   :  { %v518_v37 = vpop.f32.mrf.mxu1 }
 0x17d   :  { %v519_v38 = vadd.f32 %v518_v37, %v434_v36  ;;  %v436_v39 = vpop.f32.mrf.mxu0 }
 0x17e   :  { %v520_v40 = vpop.f32.mrf.mxu1 }
 0x17f   :  { %529 = vst [vmem:[%s811_s9] sm:$0xff] %v519_v38  ;;  %v521_v41 = vadd.f32 %v520_v40, %v436_v39  ;;  %v440_v42 = vpop.f32.mrf.mxu0 }
 0x180   :  { %v524_v43 = vpop.f32.mrf.mxu1 }
 0x181   :  { %530 = vst [vmem:[%s811_s9 + $0x8] sm:$0xff] %v521_v41  ;;  %v525_v44 = vadd.f32 %v524_v43, %v440_v42  ;;  %v442_v45 = vpop.f32.mrf.mxu0 }
 0x182   :  { %v526_v46 = vpop.f32.mrf.mxu1 }
 0x183   :  { %531 = vst [vmem:[%s811_s9 + $0x10] sm:$0xff] %v525_v44  ;;  %v527_v47 = vadd.f32 %v526_v46, %v442_v45 }
 0x185   :  { %532 = vst [vmem:[%s811_s9 + $0x18] sm:$0xff] %v527_v47 }
 0x186   :  { %541 = vsyncpa [#allocation3], 1 }
 0x187   :  { %542 = vsyncpa [#allocation5], 1 }

// kernel: speech_encoder_forward.2
= control target key start
LH: loop header
LB: loop body
LE: loop exit
PB: predicated region body
PF: predicated region fallthrough
CT: control target
= control target key end

     0   :  { %s4491_s0 = inlined_call_operand.vmem [shape: s32[1,16,1], index: 0, kind: input, shape index: {}]   ;;  %s4492_s1 = inlined_call_operand.hbm [shape: f32[1,32,256], index: 1, kind: input, shape index: {}]   ;;  %s4493_s2 = inlined_call_operand.vmem [shape: f32[1,1,128], index: 2, kind: input, shape index: {}]   ;;  %s4494_s3 = inlined_call_operand.<no memory space> [shape: f32[1,1,1], index: 3, kind: input, shape index: {}]   ;;  %s4495_s4 = inlined_call_operand.vmem [shape: f32[8,256], index: 4, kind: input, shape index: {}]   ;;  %s4496_s5 = inlined_call_operand.vmem [shape: f32[80,256], index: 5, kind: input, shape index: {}]   ;;  %s4497_s6 = inlined_call_operand.vmem [shape: f32[64,256], index: 6, kind: input, shape index: {}]   ;;  %s4498_s7 = inlined_call_operand.hbm [shape: bf16[768,256], index: 7, kind: input, shape index: {}]   ;;  %s4499_s8 = inlined_call_operand.vmem [shape: bf16[256,256], index: 8, kind: input, shape index: {}]   ;;  %s4500_s9 = inlined_call_operand.vmem [shape: bf16[256,128], index: 9, kind: input, shape index: {}]   ;;  %s4501_s10 = inlined_call_operand.vmem [shape: f32[1,34,256], index: 10, kind: output, shape index: {}]  }
   0x1   :  { %v15_v0 = vstv %s4494_s3 }
   0x2   :  { %16 = vst [vmem:[#allocation2] sm:$0x1] %v15_v0 }
   0x3   :  { %17 = vsyncpa [#allocation4], 0 }
   0x4   :  { %18 = vsyncpa [#allocation6], 0  ;;  %s3445_s15 = smov [#allocation3]  }
   0x5   :  { %s26_s16 = sshll.u32 %s3445_s15, 4  ;;  %s27_s16 = int_to_ptr.vmem [resolvable:$true] %s26_s16 }
   0x6   :  { %s3409_s17 = scalar_lea.vmem %s27_s16, 1024  ;;  %p3414_p1 = scmp.lt.s32.totalorder %s27_s16, %s27_s16 }
   0x7   :  { %p3410_p0 = scmp.ne.s32.totalorder %s27_s16, %s3409_s17  ;;  %p3415_p2 = scmp.lt.s32.totalorder %s3409_s17, %s3409_s17 }
   0x9   :  { %p3416_p3 = por %p3415_p2, %p3414_p1 }
   0xb   :  { %p3417_p4 = pnand %p3416_p3, %p3410_p0 }
   0xd   :  { %3420 = shalt.err (!%p3417_p4)
}
   0xe   :  { %s3446_s18 = smov 256   ;;  %s3447_s19 = smov 16  }
   0xf   :  { %32 = dma.hbm_to_vmem [thread:$0]  %s4492_s1, 1024, %s27_s16, [#allocation4], %s3446_s18, %s3446_s18, %s3447_s19  }
  0x10   :  { %s3448_s3 = smov [#allocation5]  }
  0x11   :  { %s48_s22 = sshll.u32 %s3448_s3, 4  ;;  %s49_s22 = int_to_ptr.vmem [resolvable:$true] %s48_s22 }
  0x12   :  { %s3429_s23 = scalar_lea.vmem %s49_s22, 12288  ;;  %p3434_p6 = scmp.lt.s32.totalorder %s49_s22, %s49_s22 }
  0x13   :  { %p3430_p5 = scmp.ne.s32.totalorder %s49_s22, %s3429_s23  ;;  %p3435_p7 = scmp.lt.s32.totalorder %s3429_s23, %s3429_s23 }
  0x15   :  { %p3436_p8 = por %p3435_p7, %p3434_p6 }
  0x17   :  { %p3437_p9 = pnand %p3436_p8, %p3430_p5 }
  0x19   :  { %3440 = shalt.err (!%p3437_p9)
}
  0x1a   :  { %s3449_s24 = smov 128   ;;  %s3450_s25 = smov 8  }
  0x1b   :  { %54 = dma.hbm_to_vmem [thread:$0]  %s4498_s7, 12288, %s49_s22, [#allocation6], %s3449_s24, %s3449_s24, %s3450_s25  }
  0x1c   :  { %3441 = dma.done.wait [#allocation4], 1024  }
  0x1d   :  { %3442 = vsyncadd [#allocation4], 4294966272 }
  0x1e   :  { %3443 = dma.done.wait [#allocation6], 12288  }
  0x1f   :  { %3444 = vsyncadd [#allocation6], 4294955008  ;;  %v3451_v1 = vmov 0   ;;  %v3452_v2 = vmov 0.0   ;;  %v228_v3 = vld [vmem:[%s4491_s0] sm:$0xff]  ;;  %v263_v4 = vld [vmem:[%s4496_s5 + $0x98] sm:$0xff]  ;;  %v230_v31 = vlaneseq }
  0x20   :  { %3041 = vset.pattern.permute.xlu0 %v3451_v1  ;;  %339 = vmatprep.mubr.f32.mxu0 %v3452_v2  ;;  %v262_v5 = vld [vmem:[%s4496_s5 + $0x90] sm:$0xff]  ;;  %v261_v6 = vld [vmem:[%s4496_s5 + $0x88] sm:$0xff]  ;;  %v260_v7 = vld [vmem:[%s4496_s5 + $0x80] sm:$0xff]  ;;  %vm268_vm0 = vcmask 654336   ;;  %vm1210_vm3 = vcmask 130048   ;;  %vm2089_vm4 = vcmask 261120  }
  0x21   :  { %3042 = vset.pattern.permute.xlu1 %v3451_v1  ;;  %233 = vperm.xlu0 %3041, %v228_v3   ;;  %v229_v8 = vld [vmem:[%s4491_s0 + $0x8] sm:$0xff]  ;;  %v259_v9 = vld [vmem:[%s4496_s5 + $0x78] sm:$0xff]  ;;  %v258_v10 = vld [vmem:[%s4496_s5 + $0x70] sm:$0xff]  ;;  %v231_v32 = vand.u32 127, %v230_v31  ;;  %vm2644_vm5 = vcmask 1040384  }
  0x22   :  { %287 = vmatprep.subr.mxu0 %v263_v4  ;;  %v257_v11 = vld [vmem:[%s4496_s5 + $0x68] sm:$0xff]  ;;  %v256_v12 = vld [vmem:[%s4496_s5 + $0x60] sm:$0xff]  ;;  %v255_v13 = vld [vmem:[%s4496_s5 + $0x58] sm:$0xff] }
  0x23   :  { %288 = vmatpush1.msra.mxu0 %v262_v5  ;;  %v254_v14 = vld [vmem:[%s4496_s5 + $0x50] sm:$0xff]  ;;  %v253_v15 = vld [vmem:[%s4496_s5 + $0x48] sm:$0xff]  ;;  %v252_v16 = vld [vmem:[%s4496_s5 + $0x40] sm:$0xff] }
  0x24   :  { %289 = vmatprep.subr.mxu0 %v261_v6  ;;  %v251_v17 = vld [vmem:[%s4496_s5 + $0x38] sm:$0xff]  ;;  %v3563_v18 = vld [vmem:[#allocation3] sm:$0xff]  ;;  %v3565_v19 = vld [vmem:[#allocation3 + $0x8] sm:$0xff] }
  0x25   :  { %290 = vmatpush1.msra.mxu0 %v260_v7  ;;  %236 = vperm.xlu0 %3041, %v229_v8   ;;  %v3567_v20 = vld [vmem:[#allocation3 + $0x10] sm:$0xff]  ;;  %v360_v22 = vadd.f32 %v3565_v19, %v3563_v18  ;;  %v3574_v23 = vld [vmem:[#allocation3 + $0x18] sm:$0xff]  ;;  %v249_v24 = vld [vmem:[%s4496_s5 + $0x28] sm:$0xff] }
  0x26   :  { %291 = vmatprep.subr.mxu0 %v259_v9  ;;  %v250_v21 = vld [vmem:[%s4496_s5 + $0x30] sm:$0xff]  ;;  %v248_v25 = vld [vmem:[%s4496_s5 + $0x20] sm:$0xff]  ;;  %v363_v26 = vadd.f32 %v3574_v23, %v3567_v20  ;;  %v247_v27 = vld [vmem:[%s4496_s5 + $0x18] sm:$0xff] }
  0x27   :  { %292 = vmatpush1.msra.mxu0 %v258_v10  ;;  %361 = vadd.xlane.f32.xlu1 %v360_v22  ;;  %v246_v28 = vld [vmem:[%s4496_s5 + $0x10] sm:$0xff]  ;;  %v245_v29 = vld [vmem:[%s4496_s5 + $0x8] sm:$0xff]  ;;  %v244_v30 = vld [vmem:[%s4496_s5] sm:$0xff] }
  0x28   :  { %293 = vmatprep.subr.mxu0 %v257_v11  ;;  %v3600_v37 = vld [vmem:[#allocation5 + $0x74] ss:$8 sps:$4 sm:$0xff]   ;;  %v3602_v38 = vld [vmem:[#allocation5 + $0x70] ss:$8 sps:$4 sm:$0xff]   ;;  %v3604_v39 = vld [vmem:[#allocation5 + $0x64] ss:$8 sps:$4 sm:$0xff]  }
  0x29   :  { %294 = vmatpush1.msra.mxu0 %v256_v12  ;;  %669 = vmatprep.subr.bf16.mxu1 %v3600_v37  ;;  %v3609_v40 = vld [vmem:[#allocation5 + $0x60] ss:$8 sps:$4 sm:$0xff]   ;;  %v3611_v41 = vld [vmem:[#allocation5 + $0x54] ss:$8 sps:$4 sm:$0xff]   ;;  %v3615_v42 = vld [vmem:[#allocation5 + $0x50] ss:$8 sps:$4 sm:$0xff]  }
  0x2a   :  { %295 = vmatprep.subr.mxu0 %v255_v13  ;;  %670 = vmatpush1.bf16.xpose.msra.mxu1 %v3602_v38  ;;  %v3617_v43 = vld [vmem:[#allocation5 + $0x44] ss:$8 sps:$4 sm:$0xff]   ;;  %v3621_v44 = vld [vmem:[#allocation5 + $0x40] ss:$8 sps:$4 sm:$0xff]   ;;  %v3623_v45 = vld [vmem:[#allocation5 + $0x34] ss:$8 sps:$4 sm:$0xff]  }
  0x2b   :  { %296 = vmatpush1.msra.mxu0 %v254_v14  ;;  %364 = vadd.xlane.f32.xlu1 %v363_v26  ;;  %v3627_v46 = vld [vmem:[#allocation5 + $0x30] ss:$8 sps:$4 sm:$0xff]   ;;  %v3629_v47 = vld [vmem:[#allocation5 + $0x24] ss:$8 sps:$4 sm:$0xff]   ;;  %v3633_v48 = vld [vmem:[#allocation5 + $0x20] ss:$8 sps:$4 sm:$0xff]  }
  0x2c   :  { %297 = vmatprep.subr.mxu0 %v253_v15  ;;  %671 = vmatprep.subr.bf16.mxu1 %v3604_v39  ;;  %v3635_v49 = vld [vmem:[#allocation5 + $0x14] ss:$8 sps:$4 sm:$0xff]   ;;  %v3639_v50 = vld [vmem:[#allocation5 + $0x10] ss:$8 sps:$4 sm:$0xff]   ;;  %v3641_v51 = vld [vmem:[#allocation5 + $0x4] ss:$8 sps:$4 sm:$0xff]  }
  0x2d   :  { %298 = vmatpush1.msra.mxu0 %v252_v16  ;;  %v3645_v52 = vld [vmem:[#allocation5] ss:$8 sps:$4 sm:$0xff]   ;;  %v3647_v53 = vld [vmem:[#allocation5 + $0xf4] ss:$8 sps:$4 sm:$0xff]   ;;  %v3651_v54 = vld [vmem:[#allocation5 + $0xf0] ss:$8 sps:$4 sm:$0xff]  }
  0x2e   :  { %299 = vmatprep.subr.mxu0 %v251_v17  ;;  %v3653_v55 = vld [vmem:[#allocation5 + $0xe4] ss:$8 sps:$4 sm:$0xff]   ;;  %v3657_v56 = vld [vmem:[#allocation5 + $0xe0] ss:$8 sps:$4 sm:$0xff]   ;;  %v3696_v16 = vld [vmem:[#allocation3 + $0x30] sm:$0xff] }
  0x2f   :  { %300 = vmatpush1.msra.mxu0 %v250_v21  ;;  %v264_v57 = vld [vmem:[%s4497_s6] sm:$0xff]  ;;  %v265_v59 = vld [vmem:[%s4497_s6 + $0x8] sm:$0xff]  ;;  %v266_v0 = vld [vmem:[%s4497_s6 + $0x10] sm:$0xff] }
  0x30   :  { %301 = vmatprep.subr.mxu0 %v249_v24  ;;  %v3682_v8 = vld [vmem:[#allocation3 + $0x20] sm:$0xff]  ;;  %v3684_v9 = vld [vmem:[#allocation3 + $0x28] sm:$0xff]  ;;  %v3698_v17 = vld [vmem:[#allocation3 + $0x38] sm:$0xff] }
  0x31   :  { %302 = vmatpush1.msra.mxu0 %v248_v25  ;;  %v366_v14 = vadd.f32 %v3684_v9, %v3682_v8  ;;  %v369_v21 = vadd.f32 %v3698_v17, %v3696_v16  ;;  %v3702_v22 = vld [vmem:[#allocation5 + $0xd4] ss:$8 sps:$4 sm:$0xff]   ;;  %v3714_v26 = vld [vmem:[#allocation5 + $0xd0] ss:$8 sps:$4 sm:$0xff]  }
  0x32   :  { %303 = vmatprep.subr.mxu0 %v247_v27  ;;  %672 = vmatpush1.bf16.xpose.msra.mxu1 %v3609_v40 }
  0x33   :  { %304 = vmatpush1.msra.mxu0 %v246_v28  ;;  %673 = vmatprep.subr.bf16.mxu1 %v3611_v41  ;;  %v3722_v28 = vld [vmem:[#allocation5 + $0xc4] ss:$8 sps:$4 sm:$0xff]  }
  0x34   :  { %305 = vmatprep.subr.mxu0 %v245_v29 }
  0x35   :  { %306 = vmatpush1.msra.mxu0 %v244_v30  ;;  %v3724_v30 = vld [vmem:[#allocation5 + $0xc0] ss:$8 sps:$4 sm:$0xff]  }
  0x3a   :  { %674 = vmatpush1.bf16.xpose.msra.mxu1 %v3615_v42 }
  0x3b   :  { %675 = vmatprep.subr.bf16.mxu1 %v3617_v43 }
  0x42   :  { %676 = vmatpush1.bf16.xpose.msra.mxu1 %v3621_v44 }
  0x43   :  { %677 = vmatprep.subr.bf16.mxu1 %v3623_v45 }
  0x4a   :  { %678 = vmatpush1.bf16.xpose.msra.mxu1 %v3627_v46 }
  0x4b   :  { %679 = vmatprep.subr.bf16.mxu1 %v3629_v47 }
  0x52   :  { %680 = vmatpush1.bf16.xpose.msra.mxu1 %v3633_v48 }
  0x53   :  { %681 = vmatprep.subr.bf16.mxu1 %v3635_v49 }
  0x5a   :  { %682 = vmatpush1.bf16.xpose.msra.mxu1 %v3639_v50 }
  0x5b   :  { %683 = vmatprep.subr.bf16.mxu1 %v3641_v51 }
  0x62   :  { %684 = vmatpush1.bf16.xpose.msra.mxu1 %v3645_v52 }
  0x63   :  { %685 = vmatprep.subr.bf16.mxu1 %v3647_v53 }
  0x6a   :  { %686 = vmatpush2.bf16.xpose.msra.mxu1 %v3651_v54 }
  0x6b   :  { %687 = vmatprep.subr.bf16.mxu1 %v3653_v55 }
  0x72   :  { %688 = vmatpush2.bf16.xpose.msra.mxu1 %v3657_v56 }
  0x73   :  { %689 = vmatprep.subr.bf16.mxu1 %v3702_v22 }
  0x7a   :  { %690 = vmatpush2.bf16.xpose.msra.mxu1 %v3714_v26 }
  0x7b   :  { %691 = vmatprep.subr.bf16.mxu1 %v3722_v28 }
  0x82   :  { %692 = vmatpush2.bf16.xpose.msra.mxu1 %v3724_v30 }
  0x9c   :  { %v234_v33 = vpop.permute.xlu0 %233 }
  0x9d   :  { %vm238_vm1 = vcmp.eq.s32.totalorder %v231_v32, %v234_v33  ;;  %v3730_v33 = vld [vmem:[#allocation5 + $0xb0] ss:$8 sps:$4 sm:$0xff]  }
  0x9e   :  { %v2695_v34 = vsel %vm238_vm1, 1.0, %v3452_v2 }
  0x9f   :  { %2697 = vmatmul.mubr.msk.f32.vlgmr.msra.gmra.mxu0 %vm268_vm0, %v2695_v34  ;;  %v3734_v34 = vld [vmem:[#allocation5 + $0xa4] ss:$8 sps:$4 sm:$0xff]  }
  0xa0   :  { %v237_v35 = vpop.permute.xlu0 %236  ;;  %345 = vmatprep.mubr.f32.mxu0 %v3452_v2 }
  0xa1   :  { %vm239_vm2 = vcmp.eq.s32.totalorder %v231_v32, %v237_v35  ;;  %v3728_v32 = vld [vmem:[#allocation5 + $0xb4] ss:$8 sps:$4 sm:$0xff]   ;;  %v3736_v35 = vld [vmem:[#allocation5 + $0xa0] ss:$8 sps:$4 sm:$0xff]  }
  0xa2   :  { %v2696_v36 = vsel %vm239_vm2, 1.0, %v3452_v2  ;;  %v267_v2 = vld [vmem:[%s4497_s6 + $0x18] sm:$0xff]  ;;  %693 = vmatprep.subr.bf16.mxu1 %v3728_v32 }
  0xa3   :  { %2698 = vmatmul.mubr.msk.f32.gmra.mxu0 %vm268_vm0, %v2696_v36  ;;  %694 = vmatpush2.bf16.xpose.msra.mxu1 %v3730_v33  ;;  %v3740_v36 = vld [vmem:[#allocation5 + $0x94] ss:$8 sps:$4 sm:$0xff]  }
  0xa4   :  { %695 = vmatprep.subr.bf16.mxu1 %v3734_v34 }
  0xab   :  { %696 = vmatpush2.bf16.xpose.msra.mxu1 %v3736_v35 }
  0xac   :  { %697 = vmatprep.subr.bf16.mxu1 %v3740_v36 }
  0xb0   :  { %v362_v61 = vpop.xlane.xlu1 %361 }
  0xb1   :  { %v373_v7 = vmul.f32 0.00390625, %v362_v61  ;;  %v3093_v61 = vld [vmem:[#allocation5 + $0x174] ss:$8 sps:$4 sm:$0xff]  }
  0xb2   :  { %1044 = vmatprep.subr.bf16.mxu0 %v3093_v61  ;;  %v3139_v61 = vld [vmem:[#allocation5 + $0x1e0] ss:$8 sps:$4 sm:$0xff]  }
  0xb3   :  { %v3689_v12 = vsub.f32 %v3563_v18, %v373_v7  ;;  %v3692_v13 = vsub.f32 %v3565_v19, %v373_v7  ;;  %v3105_v7 = vld [vmem:[#allocation5 + $0x144] ss:$8 sps:$4 sm:$0xff]  }
  0xb4   :  { %v365_v10 = vpop.xlane.xlu1 %364 }
  0xb5   :  { %v374_v15 = vmul.f32 0.00390625, %v365_v10  ;;  %v385_v24 = vmul.f32 %v3689_v12, %v3689_v12  ;;  %v386_v25 = vmul.f32 %v3692_v13, %v3692_v13  ;;  %v3103_v10 = vld [vmem:[#allocation5 + $0x140] ss:$8 sps:$4 sm:$0xff]  }
  0xb7   :  { %v3705_v18 = vsub.f32 %v3567_v20, %v374_v15  ;;  %v3708_v19 = vsub.f32 %v3574_v23, %v374_v15  ;;  %v393_v27 = vadd.f32 %v386_v25, %v385_v24  ;;  %v3117_v15 = vld [vmem:[#allocation5 + $0x124] ss:$8 sps:$4 sm:$0xff]   ;;  %v3123_v24 = vld [vmem:[#allocation5 + $0x114] ss:$8 sps:$4 sm:$0xff]   ;;  %v3121_v25 = vld [vmem:[#allocation5 + $0x110] ss:$8 sps:$4 sm:$0xff]  }
  0xb9   :  { %v387_v20 = vmul.f32 %v3705_v18, %v3705_v18  ;;  %v388_v23 = vmul.f32 %v3708_v19, %v3708_v19 }
  0xbb   :  { %v396_v29 = vadd.f32 %v388_v23, %v387_v20  ;;  %v3127_v20 = vld [vmem:[#allocation5 + $0x100] ss:$8 sps:$4 sm:$0xff]   ;;  %v3135_v23 = vld [vmem:[#allocation5 + $0x1f4] ss:$8 sps:$4 sm:$0xff]  }
 0x15f   :  { %v341_v58 = vpop.f32.mrf.mxu0 }
 0x160   :  { %v3666_v62 = vadd.f32 %v341_v58, %v264_v57  ;;  %v3743_v57 = vld [vmem:[#allocation5 + $0x90] ss:$8 sps:$4 sm:$0xff]   ;;  %v3745_v58 = vld [vmem:[#allocation5 + $0x84] ss:$8 sps:$4 sm:$0xff]  }
 0x161   :  { %v343_v60 = vpop.f32.mrf.mxu0  ;;  %698 = vmatpush2.bf16.xpose.msra.mxu1 %v3743_v57 }
 0x162   :  { %v3668_v63 = vadd.f32 %v343_v60, %v265_v59  ;;  %699 = vmatprep.subr.bf16.mxu1 %v3745_v58  ;;  %v3749_v59 = vld [vmem:[#allocation5 + $0x80] ss:$8 sps:$4 sm:$0xff]   ;;  %v3091_v60 = vld [vmem:[#allocation5 + $0x170] ss:$8 sps:$4 sm:$0xff]  }
 0x163   :  { %v347_v1 = vpop.f32.mrf.mxu0  ;;  %1045 = vmatpush1.bf16.xpose.msra.mxu0 %v3091_v60  ;;  %v3141_v60 = vld [vmem:[#allocation5 + $0x1e4] ss:$8 sps:$4 sm:$0xff]  }
 0x164   :  { %v457_v3 = vadd.f32 %v3668_v63, %v3666_v62  ;;  %v3678_v5 = vadd.f32 %v347_v1, %v266_v0  ;;  %v3096_v0 = vld [vmem:[#allocation5 + $0x164] ss:$8 sps:$4 sm:$0xff]   ;;  %v3752_v1 = vld [vmem:[#allocation5 + $0x274] ss:$8 sps:$4 sm:$0xff]  }
 0x165   :  { %v349_v4 = vpop.f32.mrf.mxu0  ;;  %1046 = vmatprep.subr.bf16.mxu0 %v3096_v0  ;;  %v3147_v0 = vld [vmem:[#allocation5 + $0x1d4] ss:$8 sps:$4 sm:$0xff]  }
 0x166   :  { %v3680_v6 = vadd.f32 %v349_v4, %v267_v2  ;;  %458 = vadd.xlane.f32.xlu0 %v457_v3  ;;  %v3094_v2 = vld [vmem:[#allocation5 + $0x160] ss:$8 sps:$4 sm:$0xff]   ;;  %v3099_v3 = vld [vmem:[#allocation5 + $0x154] ss:$8 sps:$4 sm:$0xff]   ;;  %v3097_v4 = vld [vmem:[#allocation5 + $0x150] ss:$8 sps:$4 sm:$0xff]  }
 0x168   :  { %v460_v11 = vadd.f32 %v3680_v6, %v3678_v5 }
 0x169   :  { %700 = vmatpush2.bf16.xpose.msra.mxu1 %v3749_v59 }
 0x16a   :  { %461 = vadd.xlane.f32.xlu1 %v460_v11  ;;  %1087 = vmatprep.subr.bf16.mxu1 %v3752_v1  ;;  %v3111_v11 = vld [vmem:[#allocation5 + $0x134] ss:$8 sps:$4 sm:$0xff]  }
 0x16b   :  { %1047 = vmatpush1.bf16.xpose.msra.mxu0 %v3094_v2  ;;  %v3145_v2 = vld [vmem:[#allocation5 + $0x1d0] ss:$8 sps:$4 sm:$0xff]  }
 0x16c   :  { %1048 = vmatprep.subr.bf16.mxu0 %v3099_v3 }
 0x16e   :  { %367 = vadd.xlane.f32.xlu1 %v366_v14  ;;  %v3109_v14 = vld [vmem:[#allocation5 + $0x130] ss:$8 sps:$4 sm:$0xff]  }
 0x172   :  { %370 = vadd.xlane.f32.xlu1 %v369_v21  ;;  %v3115_v21 = vld [vmem:[#allocation5 + $0x120] ss:$8 sps:$4 sm:$0xff]  }
 0x173   :  { %1049 = vmatpush1.bf16.xpose.msra.mxu0 %v3097_v4  ;;  %v3153_v4 = vld [vmem:[#allocation5 + $0x1c4] ss:$8 sps:$4 sm:$0xff]  }
 0x174   :  { %1050 = vmatprep.subr.bf16.mxu0 %v3105_v7 }
 0x176   :  { %394 = vadd.xlane.f32.xlu1 %v393_v27  ;;  %v3129_v27 = vld [vmem:[#allocation5 + $0x104] ss:$8 sps:$4 sm:$0xff]  }
 0x17a   :  { %397 = vadd.xlane.f32.xlu1 %v396_v29  ;;  %v3133_v29 = vld [vmem:[#allocation5 + $0x1f0] ss:$8 sps:$4 sm:$0xff]  }
 0x17b   :  { %1051 = vmatpush1.bf16.xpose.msra.mxu0 %v3103_v10 }
 0x17c   :  { %1052 = vmatprep.subr.bf16.mxu0 %v3111_v11 }
 0x183   :  { %1053 = vmatpush1.bf16.xpose.msra.mxu0 %v3109_v14 }
 0x184   :  { %1054 = vmatprep.subr.bf16.mxu0 %v3117_v15 }
 0x18b   :  { %1055 = vmatpush1.bf16.xpose.msra.mxu0 %v3115_v21 }
 0x18c   :  { %1056 = vmatprep.subr.bf16.mxu0 %v3123_v24 }
 0x193   :  { %1057 = vmatpush1.bf16.xpose.msra.mxu0 %v3121_v25 }
 0x194   :  { %1058 = vmatprep.subr.bf16.mxu0 %v3129_v27 }
 0x19b   :  { %1059 = vmatpush1.bf16.xpose.msra.mxu0 %v3127_v20  ;;  %v3151_v20 = vld [vmem:[#allocation5 + $0x1c0] ss:$8 sps:$4 sm:$0xff]  }
 0x19c   :  { %1060 = vmatprep.subr.bf16.mxu0 %v3135_v23 }
 0x1a3   :  { %1061 = vmatpush2.bf16.xpose.msra.mxu0 %v3133_v29 }
 0x1a4   :  { %1062 = vmatprep.subr.bf16.mxu0 %v3141_v60 }
 0x1ab   :  { %1063 = vmatpush2.bf16.xpose.msra.mxu0 %v3139_v61 }
 0x1ac   :  { %1064 = vmatprep.subr.bf16.mxu0 %v3147_v0 }
 0x1b3   :  { %1065 = vmatpush2.bf16.xpose.msra.mxu0 %v3145_v2 }
 0x1b4   :  { %1066 = vmatprep.subr.bf16.mxu0 %v3153_v4 }
 0x1bb   :  { %1067 = vmatpush2.bf16.xpose.msra.mxu0 %v3151_v20  ;;  %v3797_v20 = vld [vmem:[#allocation5 + $0x1b0] ss:$8 sps:$4 sm:$0xff]  }
 0x1bc   :  { %4526 = vst [vmem:[#allocation10_spill] sm:$0xff] %v3797_v20 }
 0x1ef   :  { %v459_v3 = vpop.xlane.xlu0 %458 }
 0x1f0   :  { %v463_v7 = vmul.f32 0.00390625, %v459_v3 }
 0x1f2   :  { %v3756_v10 = vsub.f32 %v3666_v62, %v463_v7  ;;  %v3759_v11 = vsub.f32 %v3668_v63, %v463_v7 }
 0x1f3   :  { %v462_v14 = vpop.xlane.xlu1 %461 }
 0x1f4   :  { %v464_v15 = vmul.f32 0.00390625, %v462_v14  ;;  %v469_v21 = vmul.f32 %v3756_v10, %v3756_v10  ;;  %v470_v24 = vmul.f32 %v3759_v11, %v3759_v11 }
 0x1f6   :  { %v3766_v25 = vsub.f32 %v3678_v5, %v464_v15  ;;  %v3769_v27 = vsub.f32 %v3680_v6, %v464_v15  ;;  %v473_v62 = vadd.f32 %v470_v24, %v469_v21  ;;  %v3791_v15 = vld [vmem:[#allocation5 + $0x1b4] ss:$8 sps:$4 sm:$0xff]  }
 0x1f7   :  { %v368_v63 = vpop.xlane.xlu1 %367  ;;  %4525 = vst [vmem:[#allocation9_spill] sm:$0xff] %v3791_v15  ;;  %1068 = vmatprep.subr.bf16.mxu0 %v3791_v15  ;;  %v3186_v15 = vld [vmem:[#allocation5 + $0x284] ss:$8 sps:$4 sm:$0xff]  }
 0x1f8   :  { %v375_v23 = vmul.f32 0.00390625, %v368_v63  ;;  %474 = vadd.xlane.f32.xlu1 %v473_v62  ;;  %v471_v29 = vmul.f32 %v3766_v25, %v3766_v25  ;;  %v472_v60 = vmul.f32 %v3769_v27, %v3769_v27  ;;  %1069 = vmatpush2.bf16.xpose.msra.mxu0 %v3797_v20  ;;  %v3100_v20 = vld [vmem:[#allocation5 + $0x270] ss:$8 sps:$4 sm:$0xff]  }
 0x1fa   :  { %v3776_v61 = vsub.f32 %v3682_v8, %v375_v23  ;;  %v3779_v5 = vsub.f32 %v3684_v9, %v375_v23  ;;  %v476_v0 = vadd.f32 %v472_v60, %v471_v29  ;;  %v3801_v60 = vld [vmem:[#allocation5 + $0x1a4] ss:$8 sps:$4 sm:$0xff]  }
 0x1fb   :  { %v371_v6 = vpop.xlane.xlu1 %370  ;;  %4527 = vst [vmem:[#allocation11_spill] sm:$0xff] %v3801_v60  ;;  %1070 = vmatprep.subr.bf16.mxu0 %v3801_v60 }
 0x1fc   :  { %v376_v2 = vmul.f32 0.00390625, %v371_v6  ;;  %477 = vadd.xlane.f32.xlu1 %v476_v0  ;;  %v389_v3 = vmul.f32 %v3776_v61, %v3776_v61  ;;  %v390_v4 = vmul.f32 %v3779_v5, %v3779_v5  ;;  %v3803_v0 = vld [vmem:[#allocation5 + $0x1a0] ss:$8 sps:$4 sm:$0xff]   ;;  %v3807_v6 = vshrl.u32 %v230_v31, 7 }
 0x1fd   :  { %4528 = vst [vmem:[#allocation12_spill] sm:$0xff] %v3803_v0 }
 0x1fe   :  { %v3786_v7 = vsub.f32 %v3696_v16, %v376_v2  ;;  %v3789_v8 = vsub.f32 %v3698_v17, %v376_v2  ;;  %v399_v14 = vadd.f32 %v390_v4, %v389_v3  ;;  %v3811_v2 = vsub.s32 0, %v3807_v6  ;;  %v3816_v3 = vld [vmem:[%s4495_s4] sm:$0xff]  ;;  %v3821_v4 = vld [vmem:[%s4495_s4 + $0x8] sm:$0xff] }
 0x1ff   :  { %v395_v9 = vpop.xlane.xlu1 %394 }
 0x200   :  { %v405_v21 = vmul.f32 0.00390625, %v395_v9  ;;  %400 = vadd.xlane.f32.xlu1 %v399_v14  ;;  %v391_v24 = vmul.f32 %v3786_v7, %v3786_v7  ;;  %v392_v62 = vmul.f32 %v3789_v8, %v3789_v8  ;;  %1071 = vmatpush2.bf16.xpose.msra.mxu0 %v3803_v0  ;;  %4529 = vst [vmem:[#allocation13_spill] sm:$0xff] %v3811_v2  ;;  %v3823_v14 = vld [vmem:[#allocation5 + $0x194] ss:$8 sps:$4 sm:$0xff]   ;;  %v3825_v9 = vld [vmem:[#allocation5 + $0x190] ss:$8 sps:$4 sm:$0xff]  }
 0x201   :  { %4530 = vst [vmem:[#allocation14_spill] sm:$0xff] %v3823_v14  ;;  %4531 = vst [vmem:[#allocation15_spill] sm:$0xff] %v3825_v9  ;;  %1072 = vmatprep.subr.bf16.mxu0 %v3823_v14 }
 0x202   :  { %v409_v16 = vadd.f32 1e-05, %v405_v21  ;;  %v402_v63 = vadd.f32 %v392_v62, %v391_v24  ;;  %v443_v21 = vsub.s32 1, %v3807_v6  ;;  %v3831_v24 = vrot.slane %v3816_v3, %v3811_v2 }
 0x203   :  { %v398_v17 = vpop.xlane.xlu1 %397  ;;  %v3835_v62 = vrot.slane %v3821_v4, %v3811_v2 }
 0x204   :  { %3251 = vrsqrt.f32 %v409_v16  ;;  %v406_v23 = vmul.f32 0.00390625, %v398_v17  ;;  %403 = vadd.xlane.f32.xlu0 %v402_v63 }
 0x206   :  { %v410_v29 = vadd.f32 1e-05, %v406_v23  ;;  %v3841_v23 = vrot.slane %v3816_v3, %v443_v21 }
 0x208   :  { %3253 = vrsqrt.f32 %v410_v29  ;;  %1073 = vmatpush2.bf16.xpose.msra.mxu0 %v3825_v9  ;;  %v3844_v29 = vrot.slane %v3821_v4, %v443_v21  ;;  %v3854_v9 = vld [vmem:[#allocation5 + $0x180] ss:$8 sps:$4 sm:$0xff]  }
 0x209   :  { %4533 = vst [vmem:[#allocation17_spill] sm:$0xff] %v3854_v9 }
 0x211   :  { %v3252_v31 = vpop.eup %3251 }
 0x212   :  { %v418_v16 = vmul.f32 %v3252_v31, %v3692_v13  ;;  %v417_v63 = vmul.f32 %v3252_v31, %v3689_v12  ;;  %v3850_v13 = vld [vmem:[#allocation5 + $0x184] ss:$8 sps:$4 sm:$0xff]  }
 0x213   :  { %4532 = vst [vmem:[#allocation16_spill] sm:$0xff] %v3850_v13  ;;  %1074 = vmatprep.subr.bf16.mxu0 %v3850_v13  ;;  %v3114_v13 = vld [vmem:[#allocation5 + $0x254] ss:$8 sps:$4 sm:$0xff]  }
 0x214   :  { %v434_v0 = vmul.f32 %v3835_v62, %v418_v16  ;;  %v433_v60 = vmul.f32 %v3831_v24, %v417_v63  ;;  %1075 = vmatpush2.bf16.xpose.msra.mxu0 %v3854_v9 }
 0x215   :  { %v3254_v17 = vpop.eup %3253 }
 0x216   :  { %v420_v14 = vmul.f32 %v3254_v17, %v3708_v19  ;;  %v419_v2 = vmul.f32 %v3254_v17, %v3705_v18  ;;  %v450_v21 = vadd.f32 %v3844_v29, %v434_v0  ;;  %v449_v16 = vadd.f32 %v3841_v23, %v433_v60  ;;  %v3112_v0 = vld [vmem:[#allocation5 + $0x250] ss:$8 sps:$4 sm:$0xff]   ;;  %v3118_v60 = vld [vmem:[#allocation5 + $0x240] ss:$8 sps:$4 sm:$0xff]  }
 0x218   :  { %v436_v12 = vmul.f32 %v3835_v62, %v420_v14  ;;  %v435_v31 = vmul.f32 %v3831_v24, %v419_v2  ;;  %v3108_v14 = vld [vmem:[#allocation5 + $0x264] ss:$8 sps:$4 sm:$0xff]   ;;  %v3106_v2 = vld [vmem:[#allocation5 + $0x260] ss:$8 sps:$4 sm:$0xff]  }
 0x21a   :  { %v452_v19 = vadd.f32 %v3844_v29, %v436_v12  ;;  %v451_v18 = vadd.f32 %v3841_v23, %v435_v31  ;;  %v3120_v12 = vld [vmem:[#allocation5 + $0x244] ss:$8 sps:$4 sm:$0xff]   ;;  %v3126_v31 = vld [vmem:[#allocation5 + $0x234] ss:$8 sps:$4 sm:$0xff]  }
 0x21c   :  { %v498_v63 = vpack.c.bf16 %v452_v19, %v450_v21  ;;  %v497_v17 = vpack.c.bf16 %v451_v18, %v449_v16  ;;  %v3124_v21 = vld [vmem:[#allocation5 + $0x230] ss:$8 sps:$4 sm:$0xff]   ;;  %v3132_v19 = vld [vmem:[#allocation5 + $0x224] ss:$8 sps:$4 sm:$0xff]   ;;  %v3130_v16 = vld [vmem:[#allocation5 + $0x220] ss:$8 sps:$4 sm:$0xff]  }
 0x21d   :  { %v3138_v18 = vld [vmem:[#allocation5 + $0x214] ss:$8 sps:$4 sm:$0xff]  }
 0x21e   :  { %701 = vmatprep.mubr.bf16.mxu1 %v498_v63  ;;  %v3144_v63 = vld [vmem:[#allocation5 + $0x204] ss:$8 sps:$4 sm:$0xff]  }
 0x21f   :  { %702 = vmatmul.mubr.bf16.vlgmr.msra.gmra.mxu1 %v497_v17  ;;  %v3150_v17 = vld [vmem:[#allocation5 + $0x2f4] ss:$8 sps:$4 sm:$0xff]  }
 0x220   :  { %1088 = vmatpush1.bf16.xpose.msra.mxu1 %v3100_v20  ;;  %v3136_v20 = vld [vmem:[#allocation5 + $0x210] ss:$8 sps:$4 sm:$0xff]  }
 0x221   :  { %1089 = vmatprep.subr.bf16.mxu1 %v3108_v14  ;;  %v3148_v14 = vld [vmem:[#allocation5 + $0x2f0] ss:$8 sps:$4 sm:$0xff]  }
 0x228   :  { %1090 = vmatpush1.bf16.xpose.msra.mxu1 %v3106_v2  ;;  %v3156_v2 = vld [vmem:[#allocation5 + $0x2e4] ss:$8 sps:$4 sm:$0xff]  }
 0x229   :  { %1091 = vmatprep.subr.bf16.mxu1 %v3114_v13  ;;  %v3142_v13 = vld [vmem:[#allocation5 + $0x200] ss:$8 sps:$4 sm:$0xff]  }
 0x230   :  { %1092 = vmatpush1.bf16.xpose.msra.mxu1 %v3112_v0  ;;  %v3154_v0 = vld [vmem:[#allocation5 + $0x2e0] ss:$8 sps:$4 sm:$0xff]  }
 0x231   :  { %1093 = vmatprep.subr.bf16.mxu1 %v3120_v12  ;;  %v3162_v12 = vld [vmem:[#allocation5 + $0x2d4] ss:$8 sps:$4 sm:$0xff]  }
 0x238   :  { %1094 = vmatpush1.bf16.xpose.msra.mxu1 %v3118_v60  ;;  %v3160_v60 = vld [vmem:[#allocation5 + $0x2d0] ss:$8 sps:$4 sm:$0xff]  }
 0x239   :  { %1095 = vmatprep.subr.bf16.mxu1 %v3126_v31  ;;  %v3168_v31 = vld [vmem:[#allocation5 + $0x2c4] ss:$8 sps:$4 sm:$0xff]  }
 0x240   :  { %1096 = vmatpush1.bf16.xpose.msra.mxu1 %v3124_v21  ;;  %v3166_v21 = vld [vmem:[#allocation5 + $0x2c0] ss:$8 sps:$4 sm:$0xff]  }
 0x241   :  { %1097 = vmatprep.subr.bf16.mxu1 %v3132_v19  ;;  %v3174_v19 = vld [vmem:[#allocation5 + $0x2b4] ss:$8 sps:$4 sm:$0xff]  }
 0x248   :  { %1098 = vmatpush1.bf16.xpose.msra.mxu1 %v3130_v16  ;;  %v3172_v16 = vld [vmem:[#allocation5 + $0x2b0] ss:$8 sps:$4 sm:$0xff]  }
 0x249   :  { %1099 = vmatprep.subr.bf16.mxu1 %v3138_v18  ;;  %v3180_v18 = vld [vmem:[#allocation5 + $0x2a4] ss:$8 sps:$4 sm:$0xff]  }
 0x250   :  { %1100 = vmatpush1.bf16.xpose.msra.mxu1 %v3136_v20 }
 0x251   :  { %1101 = vmatprep.subr.bf16.mxu1 %v3144_v63 }
 0x258   :  { %1102 = vmatpush1.bf16.xpose.msra.mxu1 %v3142_v13 }
 0x259   :  { %1103 = vmatprep.subr.bf16.mxu1 %v3150_v17  ;;  %v3178_v17 = vld [vmem:[#allocation5 + $0x2a0] ss:$8 sps:$4 sm:$0xff]  }
 0x260   :  { %1104 = vmatpush2.bf16.xpose.msra.mxu1 %v3148_v14 }
 0x261   :  { %1105 = vmatprep.subr.bf16.mxu1 %v3156_v2  ;;  %v3183_v2 = vld [vmem:[#allocation5 + $0x294] ss:$8 sps:$4 sm:$0xff]  }
 0x268   :  { %1106 = vmatpush2.bf16.xpose.msra.mxu1 %v3154_v0 }
 0x269   :  { %1107 = vmatprep.subr.bf16.mxu1 %v3162_v12 }
 0x270   :  { %1108 = vmatpush2.bf16.xpose.msra.mxu1 %v3160_v60 }
 0x271   :  { %1109 = vmatprep.subr.bf16.mxu1 %v3168_v31 }
 0x278   :  { %1110 = vmatpush2.bf16.xpose.msra.mxu1 %v3166_v21 }
 0x279   :  { %1111 = vmatprep.subr.bf16.mxu1 %v3174_v19  ;;  %v3181_v19 = vld [vmem:[#allocation5 + $0x290] ss:$8 sps:$4 sm:$0xff]  }
 0x280   :  { %1112 = vmatpush2.bf16.xpose.msra.mxu1 %v3172_v16 }
 0x281   :  { %v475_v20 = vpop.xlane.xlu1 %474  ;;  %1113 = vmatprep.subr.bf16.mxu1 %v3180_v18 }
 0x282   :  { %v479_v63 = vmul.f32 0.00390625, %v475_v20 }
 0x284   :  { %v481_v13 = vadd.f32 1e-05, %v479_v63 }
 0x285   :  { %v478_v14 = vpop.xlane.xlu1 %477 }
 0x286   :  { %3255 = vrsqrt.f32 %v481_v13  ;;  %v480_v0 = vmul.f32 0.00390625, %v478_v14 }
 0x288   :  { %v482_v12 = vadd.f32 1e-05, %v480_v0  ;;  %1114 = vmatpush2.bf16.xpose.msra.mxu1 %v3178_v17  ;;  %v3184_v17 = vld [vmem:[#allocation5 + $0x280] ss:$8 sps:$4 sm:$0xff]  }
 0x289   :  { %v401_v60 = vpop.xlane.xlu1 %400  ;;  %1115 = vmatprep.subr.bf16.mxu1 %v3183_v2 }
 0x28a   :  { %3257 = vrsqrt.f32 %v482_v12  ;;  %v407_v31 = vmul.f32 0.00390625, %v401_v60 }
 0x28c   :  { %v411_v21 = vadd.f32 1e-05, %v407_v31 }
 0x28d   :  { %v404_v9 = vpop.xlane.xlu0 %403 }
 0x28e   :  { %3259 = vrsqrt.f32 %v411_v21  ;;  %v408_v16 = vmul.f32 0.00390625, %v404_v9 }
 0x290   :  { %v412_v18 = vadd.f32 1e-05, %v408_v16  ;;  %1116 = vmatpush2.bf16.xpose.msra.mxu1 %v3181_v19 }
 0x291   :  { %1117 = vmatprep.subr.bf16.mxu1 %v3186_v15 }
 0x292   :  { %3261 = vrsqrt.f32 %v412_v18 }
 0x293   :  { %v3256_v20 = vpop.eup %3255 }
 0x294   :  { %v485_v63 = vmul.f32 %v3256_v20, %v3756_v10  ;;  %v486_v13 = vmul.f32 %v3256_v20, %v3759_v11 }
 0x296   :  { %v490_v2 = vmul.f32 %v486_v13, %v3835_v62  ;;  %v489_v0 = vmul.f32 %v485_v63, %v3831_v24 }
 0x297   :  { %v3258_v14 = vpop.eup %3257 }
 0x298   :  { %v487_v12 = vmul.f32 %v3258_v14, %v3766_v25  ;;  %v488_v60 = vmul.f32 %v3258_v14, %v3769_v27  ;;  %1118 = vmatpush2.bf16.xpose.msra.mxu1 %v3184_v17  ;;  %v494_v11 = vadd.f32 %v490_v2, %v3844_v29  ;;  %v493_v31 = vadd.f32 %v489_v0, %v3841_v23 }
 0x299   :  { %1849 = vmatprep.subr.bf16.mxu1 %v3600_v37 }
 0x29a   :  { %v492_v15 = vmul.f32 %v488_v60, %v3835_v62  ;;  %v491_v9 = vmul.f32 %v487_v12, %v3831_v24 }
 0x29b   :  { %v3260_v10 = vpop.eup %3259 }
 0x29c   :  { %v496_v21 = vadd.f32 %v492_v15, %v3844_v29  ;;  %v495_v19 = vadd.f32 %v491_v9, %v3841_v23  ;;  %v422_v25 = vmul.f32 %v3260_v10, %v3779_v5  ;;  %v421_v27 = vmul.f32 %v3260_v10, %v3776_v61 }
 0x29e   :  { %v723_v16 = vpack.c.bf16 %v496_v21, %v494_v11  ;;  %v722_v18 = vpack.c.bf16 %v495_v19, %v493_v31  ;;  %v438_v63 = vmul.f32 %v3835_v62, %v422_v25  ;;  %v437_v17 = vmul.f32 %v3831_v24, %v421_v27 }
 0x29f   :  { %v3262_v37 = vpop.eup %3261 }
 0x2a0   :  { %1076 = vmatprep.mubr.bf16.mxu0 %v723_v16  ;;  %v424_v20 = vmul.f32 %v3262_v37, %v3789_v8  ;;  %v423_v13 = vmul.f32 %v3262_v37, %v3786_v7  ;;  %v454_v5 = vadd.f32 %v3844_v29, %v438_v63  ;;  %v453_v0 = vadd.f32 %v3841_v23, %v437_v17 }
 0x2a1   :  { %1077 = vmatmul.mubr.bf16.vlgmr.msra.gmra.mxu0 %v722_v18 }
 0x2a2   :  { %v440_v14 = vmul.f32 %v3835_v62, %v424_v20  ;;  %v439_v2 = vmul.f32 %v3831_v24, %v423_v13 }
 0x2a4   :  { %v456_v61 = vadd.f32 %v3844_v29, %v440_v14  ;;  %v455_v12 = vadd.f32 %v3841_v23, %v439_v2 }
 0x2a6   :  { %v500_v8 = vpack.c.bf16 %v456_v61, %v454_v5  ;;  %v499_v60 = vpack.c.bf16 %v455_v12, %v453_v0 }
 0x2a8   :  { %711 = vmatprep.mubr.bf16.mxu1 %v500_v8 }
 0x2a9   :  { %712 = vmatmul.mubr.bf16.gmra.mxu1 %v499_v60 }
 0x2aa   :  { %1119 = vmatprep.mubr.bf16.mxu1 %v723_v16 }
 0x2b1   :  { %1120 = vmatmul.mubr.bf16.vlgmr.msra.gmra.mxu1 %v722_v18 }
 0x2b2   :  { %1850 = vmatpush1.bf16.xpose.msra.mxu1 %v3602_v38  ;;  %v503_v38 = vsub.s32 2, %v3807_v6 }
 0x2b3   :  { %1851 = vmatprep.subr.bf16.mxu1 %v3604_v39 }
 0x2ba   :  { %1852 = vmatpush1.bf16.xpose.msra.mxu1 %v3609_v40  ;;  %v3901_v40 = vrot.slane %v3816_v3, %v503_v38 }
 0x2bb   :  { %1853 = vmatprep.subr.bf16.mxu1 %v3611_v41 }
 0x2c2   :  { %1854 = vmatpush1.bf16.xpose.msra.mxu1 %v3615_v42 }
 0x2c3   :  { %1855 = vmatprep.subr.bf16.mxu1 %v3617_v43 }
 0x2ca   :  { %1856 = vmatpush1.bf16.xpose.msra.mxu1 %v3621_v44 }
 0x2cb   :  { %1857 = vmatprep.subr.bf16.mxu1 %v3623_v45 }
 0x2d2   :  { %1858 = vmatpush1.bf16.xpose.msra.mxu1 %v3627_v46  ;;  %v1132_v46 = vsub.s32 3, %v3807_v6 }
 0x2d3   :  { %1859 = vmatprep.subr.bf16.mxu1 %v3629_v47 }
 0x2d4   :  { %v3957_v15 = vrot.slane %v3821_v4, %v1132_v46 }
 0x2da   :  { %1860 = vmatpush1.bf16.xpose.msra.mxu1 %v3633_v48  ;;  %v3929_v48 = vrot.slane %v3816_v3, %v1132_v46 }
 0x2db   :  { %1861 = vmatprep.subr.bf16.mxu1 %v3635_v49 }
 0x2df   :  { %v703_v39 = vpop.f32.mrf.mxu1 }
 0x2e0   :  { %v704_v43 = vadd.f32 %v703_v39, %v3901_v40 }
 0x2e1   :  { %v3903_v41 = vpop.f32.mrf.mxu1 }
 0x2e2   :  { %1862 = vmatpush1.bf16.xpose.msra.mxu1 %v3639_v50 }
 0x2e3   :  { %v707_v42 = vpop.f32.mrf.mxu1  ;;  %1863 = vmatprep.subr.bf16.mxu1 %v3641_v51 }
 0x2e4   :  { %v708_v44 = vadd.f32 %v707_v42, %v3901_v40 }
 0x2e6   :  { %v1154_v45 = vpack.c.bf16 %v708_v44, %v704_v43 }
 0x2e8   :  { %2979 = vmatprep.mubr.bf16.mxu0 %v1154_v45 }
 0x2ea   :  { %1864 = vmatpush1.bf16.xpose.msra.mxu1 %v3645_v52 }
 0x2eb   :  { %1865 = vmatprep.subr.bf16.mxu1 %v3647_v53  ;;  %v3933_v53 = vpop.f32.mrf.mxu1 }
 0x2f2   :  { %1866 = vmatpush2.bf16.xpose.msra.mxu1 %v3651_v54 }
 0x2f3   :  { %1867 = vmatprep.subr.bf16.mxu1 %v3653_v55 }
 0x2fa   :  { %1868 = vmatpush2.bf16.xpose.msra.mxu1 %v3657_v56 }
 0x2fb   :  { %1869 = vmatprep.subr.bf16.mxu1 %v3702_v22 }
 0x302   :  { %1870 = vmatpush2.bf16.xpose.msra.mxu1 %v3714_v26  ;;  %v3936_v26 = vrot.slane %v3821_v4, %v503_v38 }
 0x303   :  { %1871 = vmatprep.subr.bf16.mxu1 %v3722_v28 }
 0x30a   :  { %1872 = vmatpush2.bf16.xpose.msra.mxu1 %v3724_v30 }
 0x30b   :  { %1873 = vmatprep.subr.bf16.mxu1 %v3728_v32  ;;  %v1144_v32 = vsub.s32 4, %v3807_v6 }
 0x312   :  { %1874 = vmatpush2.bf16.xpose.msra.mxu1 %v3730_v33 }
 0x313   :  { %1875 = vmatprep.subr.bf16.mxu1 %v3734_v34 }
 0x31a   :  { %1876 = vmatpush2.bf16.xpose.msra.mxu1 %v3736_v35 }
 0x31b   :  { %1877 = vmatprep.subr.bf16.mxu1 %v3740_v36 }
 0x322   :  { %1878 = vmatpush2.bf16.xpose.msra.mxu1 %v3743_v57 }
 0x323   :  { %1879 = vmatprep.subr.bf16.mxu1 %v3745_v58 }
 0x32a   :  { %1880 = vmatpush2.bf16.xpose.msra.mxu1 %v3749_v59  ;;  %v3952_v59 = vrot.slane %v3816_v3, %v1144_v32 }
 0x32b   :  { %1955 = vmatprep.subr.bf16.mxu1 %v3752_v1 }
 0x361   :  { %v1078_v47 = vpop.f32.mrf.mxu0 }
 0x362   :  { %v1138_v51 = vadd.f32 %v3929_v48, %v1078_v47 }
 0x363   :  { %v1080_v49 = vpop.f32.mrf.mxu0 }
 0x364   :  { %v1139_v21 = vadd.f32 %v3957_v15, %v1080_v49 }
 0x365   :  { %v1082_v50 = vpop.f32.mrf.mxu0 }
 0x366   :  { %v1140_v52 = vadd.f32 %v3929_v48, %v1082_v50 }
 0x367   :  { %v1084_v1 = vpop.f32.mrf.mxu0 }
 0x368   :  { %v1156_v54 = vpack.c.bf16 %v1140_v52, %v1138_v51  ;;  %v1141_v10 = vadd.f32 %v3957_v15, %v1084_v1 }
 0x369   :  { %v713_v55 = vpop.f32.mrf.mxu1 }
 0x36a   :  { %2977 = vmatprep.subr.bf16.mxu0 %v1156_v54  ;;  %v714_v28 = vadd.f32 %v713_v55, %v3901_v40  ;;  %v3963_v25 = vpack.c.bf16 %v1141_v10, %v1139_v21  ;;  %v3977_v21 = vrot.slane %v3821_v4, %v1144_v32 }
 0x36b   :  { %v715_v56 = vpop.f32.mrf.mxu1  ;;  %2978 = vmatpush3.bf16.xpose.msra.mxu0 %v1156_v54 }
 0x36c   :  { %v3942_v34 = vadd.f32 %v715_v56, %v3936_v26 }
 0x36d   :  { %v717_v22 = vpop.f32.mrf.mxu1 }
 0x36e   :  { %v718_v30 = vadd.f32 %v717_v22, %v3901_v40 }
 0x36f   :  { %v719_v33 = vpop.f32.mrf.mxu1 }
 0x370   :  { %v1155_v35 = vpack.c.bf16 %v718_v30, %v714_v28  ;;  %v3945_v36 = vadd.f32 %v719_v33, %v3936_v26 }
 0x371   :  { %v1121_v57 = vpop.f32.mrf.mxu1 }
 0x372   :  { %v1316_v58 = vpack.c.bf16 %v3945_v36, %v3942_v34  ;;  %2980 = vmatmul.mubr.bf16.vlgmr.msra.gmra.mxu0 %v1155_v35  ;;  %v1150_v11 = vadd.f32 %v3952_v59, %v1121_v57 }
 0x373   :  { %v3954_v7 = vpop.f32.mrf.mxu1 }
 0x375   :  { %v1125_v9 = vpop.f32.mrf.mxu1 }
 0x376   :  { %v1152_v31 = vadd.f32 %v3952_v59, %v1125_v9 }
 0x378   :  { %v1257_v19 = vpack.c.bf16 %v1152_v31, %v1150_v11  ;;  %v1127_v31 = vpop.f32.mrf.mxu1 }
 0x37a   :  { %2983 = vmatprep.subr.bf16.mxu0 %v1257_v19 }
 0x37b   :  { %2984 = vmatpush3.bf16.msra.mxu0 %v1257_v19 }
 0x37c   :  { %2989 = vmatprep.subr.bf16.mxu0 %v3963_v25 }
 0x432   :  { %v2981_v27 = vpop.f32.mrf.mxu0 }
 0x433   :  { %v1208_v20 = vmul.f32 0.088388346, %v2981_v27 }
 0x434   :  { %v1191_v16 = vpop.f32.mrf.mxu0 }
 0x435   :  { %v1206_v18 = vmul.f32 0.088388346, %v1191_v16  ;;  %v1217_v2 = vsel %vm1210_vm3, %v1208_v20, -inf  ;;  %v710_v16 = vadd.f32 %v3933_v53, %v3936_v26 }
 0x436   :  { %v2982_v37 = vpop.f32.mrf.mxu0 }
 0x437   :  { %v1211_v63 = vsel %vm1210_vm3, %v1206_v18, -inf  ;;  %v1209_v14 = vmul.f32 0.088388346, %v2982_v37 }
 0x438   :  { %1212 = vmax.xlane.f32.xlu1 %v1211_v63  ;;  %v1194_v13 = vpop.f32.mrf.mxu0  ;;  %v706_v63 = vadd.f32 %v3903_v41, %v3936_v26 }
 0x439   :  { %v1207_v17 = vmul.f32 0.088388346, %v1194_v13  ;;  %v1220_v61 = vsel %vm1210_vm3, %v1209_v14, -inf  ;;  %v1151_v13 = vadd.f32 %v3977_v21, %v3954_v7 }
 0x43a   :  { %v1315_v32 = vpack.c.bf16 %v710_v16, %v706_v63 }
 0x43b   :  { %v1214_v5 = vsel %vm1210_vm3, %v1207_v17, -inf }
 0x43c   :  { %1218 = vmax.xlane.f32.xlu1 %v1217_v2  ;;  %1215 = vmax.xlane.f32.xlu0 %v1214_v5 }
 0x440   :  { %1221 = vmax.xlane.f32.xlu0 %v1220_v61 }
 0x4c1   :  { %v1213_v0 = vpop.xlane.xlu1 %1212 }
 0x4c2   :  { %v1223_v12 = vsub.f32 %v1206_v18, %v1213_v0  ;;  %v1153_v18 = vadd.f32 %v3977_v21, %v1127_v31 }
 0x4c4   :  { %v1227_v8 = vmul.f32 1.442695, %v1223_v12 }
 0x4c5   :  { %v1219_v60 = vpop.xlane.xlu1 %1218  ;;  %v1216_v38 = vpop.xlane.xlu0 %1215 }
 0x4c6   :  { %3263 = vpow2.f32 %v1227_v8  ;;  %v1225_v39 = vsub.f32 %v1208_v20, %v1219_v60  ;;  %v1224_v42 = vsub.f32 %v1207_v17, %v1216_v38 }
 0x4c8   :  { %v1231_v43 = vmul.f32 1.442695, %v1225_v39  ;;  %v1229_v44 = vmul.f32 1.442695, %v1224_v42 }
 0x4c9   :  { %v1222_v45 = vpop.xlane.xlu0 %1221 }
 0x4ca   :  { %3265 = vpow2.f32 %v1231_v43  ;;  %v1226_v46 = vsub.f32 %v1209_v14, %v1222_v45  ;;  %v1417_v14 = vpack.c.bf16 %v1153_v18, %v1151_v13 }
 0x4cb   :  { %3267 = vpow2.f32 %v1229_v44 }
 0x4cc   :  { %v1233_v47 = vmul.f32 1.442695, %v1226_v46 }
 0x4ce   :  { %3269 = vpow2.f32 %v1233_v47 }
 0x4d3   :  { %v3264_v49 = vpop.eup %3263 }
 0x4d4   :  { %v1235_v50 = vsel %vm1210_vm3, %v3264_v49, 0.0 }
 0x4d5   :  { %1236 = vadd.xlane.f32.xlu1 %v1235_v50 }
 0x4d7   :  { %v3266_v51 = vpop.eup %3265 }
 0x4d8   :  { %v3268_v52 = vpop.eup %3267  ;;  %v1241_v54 = vsel %vm1210_vm3, %v3266_v51, 0.0 }
 0x4d9   :  { %1242 = vadd.xlane.f32.xlu1 %v1241_v54  ;;  %v1238_v55 = vsel %vm1210_vm3, %v3268_v52, 0.0 }
 0x4da   :  { %1239 = vadd.xlane.f32.xlu0 %v1238_v55 }
 0x4db   :  { %v3270_v56 = vpop.eup %3269 }
 0x4dc   :  { %v1244_v22 = vsel %vm1210_vm3, %v3270_v56, 0.0 }
 0x4de   :  { %1245 = vadd.xlane.f32.xlu0 %v1244_v22 }
 0x55e   :  { %v1237_v28 = vpop.xlane.xlu1 %1236 }
 0x55f   :  { %3271 = vrcp.f32 %v1237_v28 }
 0x562   :  { %v1243_v30 = vpop.xlane.xlu1 %1242 }
 0x563   :  { %v1240_v33 = vpop.xlane.xlu0 %1239 }
 0x564   :  { %3273 = vrcp.f32 %v1240_v33 }
 0x565   :  { %3275 = vrcp.f32 %v1243_v30 }
 0x567   :  { %v1246_v35 = vpop.xlane.xlu0 %1245 }
 0x568   :  { %3277 = vrcp.f32 %v1246_v35 }
 0x56c   :  { %v3272_v57 = vpop.eup %3271 }
 0x56d   :  { %v1251_v9 = vmul.f32 %v3272_v57, %v3264_v49 }
 0x571   :  { %v3274_v1 = vpop.eup %3273 }
 0x572   :  { %v1252_v10 = vmul.f32 %v3274_v1, %v3268_v52  ;;  %v3276_v11 = vpop.eup %3275 }
 0x573   :  { %v1253_v37 = vmul.f32 %v3276_v11, %v3266_v51  ;;  %v3187_v11 = vld [vmem:[%s4499_s8 + $0xf4] ss:$8 sps:$4 sm:$0xff]  }
 0x574   :  { %v1255_v19 = vpack.c.bf16 %v1252_v10, %v1251_v9 }
 0x575   :  { %v3278_v27 = vpop.eup %3277 }
 0x576   :  { %2985 = vmatprep.mubr.msk.bf16.mxu0 %vm1210_vm3, %v1255_v19  ;;  %v1254_v20 = vmul.f32 %v3278_v27, %v3270_v56 }
 0x578   :  { %v1256_v17 = vpack.c.bf16 %v1254_v20, %v1253_v37 }
 0x57a   :  { %2986 = vmatmul.mubr.msk.bf16.vlgmr.msra.gmra.mxu0 %vm1210_vm3, %v1256_v17 }
 0x57b   :  { %2990 = vmatpush3.bf16.xpose.msra.mxu0 %v3963_v25  ;;  %2991 = vmatprep.mubr.bf16.mxu0 %v1315_v32 }
 0x57c   :  { %2995 = vmatprep.subr.bf16.mxu0 %v1417_v14 }
 0x582   :  { %2992 = vmatmul.mubr.bf16.vlgmr.msra.gmra.mxu0 %v1316_v58 }
 0x583   :  { %2996 = vmatpush3.bf16.msra.mxu0 %v1417_v14 }
 0x584   :  { %2863 = vmatprep.subr.bf16.mxu0 %v3187_v11  ;;  %v4181_v11 = vld [vmem:[%s4499_s8 + $0x10] ss:$8 sps:$4 sm:$0xff]  }
 0x63a   :  { %v2987_v53 = vpop.f32.mrf.mxu0 }
 0x63c   :  { %v1298_v2 = vpop.f32.mrf.mxu0 }
 0x63e   :  { %v2988_v41 = vpop.f32.mrf.mxu0 }
 0x63f   :  { %v3992_v5 = vpack.c.bf16 %v2988_v41, %v2987_v53 }
 0x640   :  { %v1301_v7 = vpop.f32.mrf.mxu0 }
 0x641   :  { %v3994_v61 = vpack.c.bf16 %v1301_v7, %v1298_v2  ;;  %v4011_v2 = vld [vmem:[%s4499_s8 + $0x74] ss:$8 sps:$4 sm:$0xff]   ;;  %v4016_v7 = vld [vmem:[%s4499_s8 + $0xe4] ss:$8 sps:$4 sm:$0xff]  }
 0x642   :  { %v2993_v0 = vpop.f32.mrf.mxu0 }
 0x643   :  { %v1369_v25 = vmul.f32 0.088388346, %v2993_v0  ;;  %v4024_v0 = vld [vmem:[%s4499_s8 + $0x64] ss:$8 sps:$4 sm:$0xff]  }
 0x644   :  { %v1352_v12 = vpop.f32.mrf.mxu0 }
 0x645   :  { %v1367_v8 = vmul.f32 0.088388346, %v1352_v12  ;;  %v1377_v58 = vsel %vm1210_vm3, %v1369_v25, -inf  ;;  %v4029_v12 = vld [vmem:[%s4499_s8 + $0xd4] ss:$8 sps:$4 sm:$0xff]  }
 0x646   :  { %v2994_v60 = vpop.f32.mrf.mxu0 }
 0x647   :  { %v1371_v38 = vsel %vm1210_vm3, %v1367_v8, -inf  ;;  %v1370_v36 = vmul.f32 0.088388346, %v2994_v60  ;;  %v4041_v60 = vld [vmem:[%s4499_s8 + $0xc4] ss:$8 sps:$4 sm:$0xff]  }
 0x648   :  { %1372 = vmax.xlane.f32.xlu1 %v1371_v38  ;;  %v1355_v39 = vpop.f32.mrf.mxu0  ;;  %v4053_v38 = vld [vmem:[%s4499_s8 + $0xb4] ss:$8 sps:$4 sm:$0xff]  }
 0x649   :  { %v1368_v34 = vmul.f32 0.088388346, %v1355_v39  ;;  %v1380_v43 = vsel %vm1210_vm3, %v1370_v36, -inf  ;;  %v4060_v39 = vld [vmem:[%s4499_s8 + $0x34] ss:$8 sps:$4 sm:$0xff]  }
 0x64b   :  { %v1374_v42 = vsel %vm1210_vm3, %v1368_v34, -inf }
 0x64c   :  { %1378 = vmax.xlane.f32.xlu1 %v1377_v58  ;;  %1375 = vmax.xlane.f32.xlu0 %v1374_v42  ;;  %v4077_v58 = vld [vmem:[%s4499_s8 + $0x94] ss:$8 sps:$4 sm:$0xff]  }
 0x64d   :  { %v4084_v42 = vld [vmem:[%s4499_s8 + $0x14] ss:$8 sps:$4 sm:$0xff]  }
 0x64e   :  { %4534 = vst [vmem:[#allocation18_spill] sm:$0xff] %v4084_v42 }
 0x650   :  { %1381 = vmax.xlane.f32.xlu0 %v1380_v43  ;;  %v4090_v43 = vld [vmem:[%s4499_s8 + $0x84] ss:$8 sps:$4 sm:$0xff]  }
 0x651   :  { %4535 = vst [vmem:[#allocation19_spill] sm:$0xff] %v4090_v43 }
 0x6d1   :  { %v1373_v44 = vpop.xlane.xlu1 %1372 }
 0x6d2   :  { %v1383_v45 = vsub.f32 %v1367_v8, %v1373_v44  ;;  %v4036_v8 = vld [vmem:[%s4499_s8 + $0x54] ss:$8 sps:$4 sm:$0xff]   ;;  %v4095_v44 = vld [vmem:[%s4499_s8 + $0x4] ss:$8 sps:$4 sm:$0xff]  }
 0x6d3   :  { %4536 = vst [vmem:[#allocation20_spill] sm:$0xff] %v4095_v44 }
 0x6d4   :  { %v1387_v46 = vmul.f32 1.442695, %v1383_v45  ;;  %v4102_v45 = vld [vmem:[%s4499_s8 + $0xf0] ss:$8 sps:$4 sm:$0xff]  }
 0x6d5   :  { %v1379_v47 = vpop.xlane.xlu1 %1378  ;;  %v1376_v49 = vpop.xlane.xlu0 %1375 }
 0x6d6   :  { %3279 = vpow2.f32 %v1387_v46  ;;  %v1385_v50 = vsub.f32 %v1369_v25, %v1379_v47  ;;  %v1384_v51 = vsub.f32 %v1368_v34, %v1376_v49  ;;  %v4048_v25 = vld [vmem:[%s4499_s8 + $0x44] ss:$8 sps:$4 sm:$0xff]  }
 0x6d7   :  { %v4065_v34 = vld [vmem:[%s4499_s8 + $0xa4] ss:$8 sps:$4 sm:$0xff]  }
 0x6d8   :  { %v1391_v52 = vmul.f32 1.442695, %v1385_v50  ;;  %v1389_v54 = vmul.f32 1.442695, %v1384_v51 }
 0x6d9   :  { %v1382_v55 = vpop.xlane.xlu0 %1381 }
 0x6da   :  { %3281 = vpow2.f32 %v1391_v52  ;;  %v1386_v56 = vsub.f32 %v1370_v36, %v1382_v55  ;;  %v4072_v36 = vld [vmem:[%s4499_s8 + $0x24] ss:$8 sps:$4 sm:$0xff]   ;;  %v4108_v52 = vld [vmem:[%s4499_s8 + $0x70] ss:$8 sps:$4 sm:$0xff]  }
 0x6db   :  { %3283 = vpow2.f32 %v1389_v54  ;;  %v4113_v54 = vld [vmem:[%s4499_s8 + $0xe0] ss:$8 sps:$4 sm:$0xff]  }
 0x6dc   :  { %v1393_v22 = vmul.f32 1.442695, %v1386_v56  ;;  %v4120_v56 = vld [vmem:[%s4499_s8 + $0x60] ss:$8 sps:$4 sm:$0xff]  }
 0x6de   :  { %3285 = vpow2.f32 %v1393_v22  ;;  %v4125_v22 = vld [vmem:[%s4499_s8 + $0xd0] ss:$8 sps:$4 sm:$0xff]  }
 0x6e3   :  { %v3280_v28 = vpop.eup %3279 }
 0x6e4   :  { %v1395_v30 = vsel %vm1210_vm3, %v3280_v28, 0.0 }
 0x6e5   :  { %1396 = vadd.xlane.f32.xlu1 %v1395_v30  ;;  %v4138_v30 = vld [vmem:[%s4499_s8 + $0xc0] ss:$8 sps:$4 sm:$0xff]  }
 0x6e7   :  { %v3282_v33 = vpop.eup %3281 }
 0x6e8   :  { %v3284_v35 = vpop.eup %3283  ;;  %v1401_v57 = vsel %vm1210_vm3, %v3282_v33, 0.0 }
 0x6e9   :  { %1402 = vadd.xlane.f32.xlu1 %v1401_v57  ;;  %v1398_v1 = vsel %vm1210_vm3, %v3284_v35, 0.0  ;;  %v4157_v57 = vld [vmem:[%s4499_s8 + $0x30] ss:$8 sps:$4 sm:$0xff]  }
 0x6ea   :  { %1399 = vadd.xlane.f32.xlu0 %v1398_v1  ;;  %v4162_v1 = vld [vmem:[%s4499_s8 + $0xa0] ss:$8 sps:$4 sm:$0xff]  }
 0x6eb   :  { %v3286_v9 = vpop.eup %3285 }
 0x6ec   :  { %v1404_v10 = vsel %vm1210_vm3, %v3286_v9, 0.0 }
 0x6ee   :  { %1405 = vadd.xlane.f32.xlu0 %v1404_v10  ;;  %v4174_v10 = vld [vmem:[%s4499_s8 + $0x90] ss:$8 sps:$4 sm:$0xff]  }
 0x76e   :  { %v1397_v31 = vpop.xlane.xlu1 %1396 }
 0x76f   :  { %3287 = vrcp.f32 %v1397_v31  ;;  %v4186_v31 = vld [vmem:[%s4499_s8 + $0x80] ss:$8 sps:$4 sm:$0xff]  }
 0x772   :  { %v1403_v19 = vpop.xlane.xlu1 %1402 }
 0x773   :  { %v1400_v27 = vpop.xlane.xlu0 %1399 }
 0x774   :  { %3289 = vrcp.f32 %v1400_v27  ;;  %v3335_v27 = vld [vmem:[#allocation5 + $0x174] ss:$8 sps:$4 sm:$0xff]  }
 0x775   :  { %3291 = vrcp.f32 %v1403_v19  ;;  %v4193_v19 = vld [vmem:[%s4499_s8] ss:$8 sps:$4 sm:$0xff]  }
 0x777   :  { %v1406_v16 = vpop.xlane.xlu0 %1405 }
 0x778   :  { %3293 = vrcp.f32 %v1406_v16  ;;  %v3336_v16 = vld [vmem:[#allocation5 + $0x170] ss:$8 sps:$4 sm:$0xff]  }
 0x77c   :  { %v3288_v18 = vpop.eup %3287 }
 0x77d   :  { %v1411_v20 = vmul.f32 %v3288_v18, %v3280_v28  ;;  %v4133_v28 = vld [vmem:[%s4499_s8 + $0x50] ss:$8 sps:$4 sm:$0xff]  }
 0x77e   :  { %v3337_v18 = vld [vmem:[#allocation5 + $0x164] ss:$8 sps:$4 sm:$0xff]  }
 0x781   :  { %v3290_v37 = vpop.eup %3289 }
 0x782   :  { %v1412_v63 = vmul.f32 %v3290_v37, %v3284_v35  ;;  %v3292_v13 = vpop.eup %3291  ;;  %v4150_v35 = vld [vmem:[%s4499_s8 + $0xb0] ss:$8 sps:$4 sm:$0xff]   ;;  %v3338_v37 = vld [vmem:[#allocation5 + $0x160] ss:$8 sps:$4 sm:$0xff]  }
 0x783   :  { %v1413_v14 = vmul.f32 %v3292_v13, %v3282_v33  ;;  %v4145_v33 = vld [vmem:[%s4499_s8 + $0x40] ss:$8 sps:$4 sm:$0xff]  }
 0x784   :  { %v1415_v17 = vpack.c.bf16 %v1412_v63, %v1411_v20  ;;  %v3339_v20 = vld [vmem:[#allocation5 + $0x154] ss:$8 sps:$4 sm:$0xff]   ;;  %v3340_v63 = vld [vmem:[#allocation5 + $0x150] ss:$8 sps:$4 sm:$0xff]   ;;  %v3341_v13 = vld [vmem:[#allocation5 + $0x144] ss:$8 sps:$4 sm:$0xff]  }
 0x785   :  { %v3294_v32 = vpop.eup %3293 }
 0x786   :  { %2997 = vmatprep.mubr.msk.bf16.mxu0 %vm1210_vm3, %v1415_v17  ;;  %v1414_v53 = vmul.f32 %v3294_v32, %v3286_v9  ;;  %v4169_v9 = vld [vmem:[%s4499_s8 + $0x20] ss:$8 sps:$4 sm:$0xff]  }
 0x787   :  { %v3342_v17 = vld [vmem:[#allocation5 + $0x140] ss:$8 sps:$4 sm:$0xff]   ;;  %v3343_v32 = vld [vmem:[#allocation5 + $0x134] ss:$8 sps:$4 sm:$0xff]  }
 0x788   :  { %v1416_v41 = vpack.c.bf16 %v1414_v53, %v1413_v14  ;;  %v3345_v14 = vld [vmem:[#allocation5 + $0x124] ss:$8 sps:$4 sm:$0xff]   ;;  %v3346_v53 = vld [vmem:[#allocation5 + $0x120] ss:$8 sps:$4 sm:$0xff]  }
 0x78a   :  { %2998 = vmatmul.mubr.msk.bf16.vlgmr.msra.gmra.mxu0 %vm1210_vm3, %v1416_v41  ;;  %v3347_v41 = vld [vmem:[#allocation5 + $0x114] ss:$8 sps:$4 sm:$0xff]  }
 0x78b   :  { %2864 = vmatpush3.bf16.xpose.msra.mxu0 %v4011_v2 }
 0x78c   :  { %2865 = vmatprep.subr.bf16.mxu0 %v4016_v7 }
 0x793   :  { %2866 = vmatpush3.bf16.xpose.msra.mxu0 %v4024_v0 }
 0x794   :  { %2867 = vmatprep.subr.bf16.mxu0 %v4029_v12 }
 0x79b   :  { %2868 = vmatpush3.bf16.xpose.msra.mxu0 %v4036_v8 }
 0x79c   :  { %2869 = vmatprep.subr.bf16.mxu0 %v4041_v60 }
 0x7a3   :  { %2870 = vmatpush3.bf16.xpose.msra.mxu0 %v4048_v25 }
 0x7a4   :  { %2871 = vmatprep.subr.bf16.mxu0 %v4053_v38 }
 0x7ab   :  { %2872 = vmatpush3.bf16.xpose.msra.mxu0 %v4060_v39 }
 0x7ac   :  { %2873 = vmatprep.subr.bf16.mxu0 %v4065_v34 }
 0x7b3   :  { %2874 = vmatpush3.bf16.xpose.msra.mxu0 %v4072_v36 }
 0x7b4   :  { %2875 = vmatprep.subr.bf16.mxu0 %v4077_v58 }
 0x7bb   :  { %2876 = vmatpush3.bf16.xpose.msra.mxu0 %v4084_v42 }
 0x7bc   :  { %2877 = vmatprep.subr.bf16.mxu0 %v4090_v43  ;;  %v3360_v43 = vld [vmem:[#allocation3 + $0x8] sm:$0xff] }
 0x7c3   :  { %2878 = vmatpush3.bf16.xpose.msra.mxu0 %v4095_v44  ;;  %v3359_v44 = vld [vmem:[#allocation3] sm:$0xff] }
 0x7c4   :  { %2883 = vmatprep.subr.bf16.mxu0 %v4102_v45 }
 0x84a   :  { %v2999_v46 = vpop.f32.mrf.mxu0 }
 0x84c   :  { %v1458_v47 = vpop.f32.mrf.mxu0 }
 0x84e   :  { %v3000_v49 = vpop.f32.mrf.mxu0 }
 0x84f   :  { %v1474_v55 = vpack.c.bf16 %v3000_v49, %v2999_v46  ;;  %v3349_v46 = vld [vmem:[#allocation5 + $0x104] ss:$8 sps:$4 sm:$0xff]   ;;  %v3351_v49 = vld [vmem:[#allocation5 + $0x1f4] ss:$8 sps:$4 sm:$0xff]  }
 0x850   :  { %v1461_v50 = vpop.f32.mrf.mxu0 }
 0x851   :  { %v1473_v51 = vpack.c.bf16 %v1461_v50, %v1458_v47  ;;  %v3350_v47 = vld [vmem:[#allocation5 + $0x100] ss:$8 sps:$4 sm:$0xff]   ;;  %v3352_v50 = vld [vmem:[#allocation5 + $0x1f0] ss:$8 sps:$4 sm:$0xff]  }
 0x853   :  { %2879 = vmatprep.mubr.bf16.mxu0 %v1473_v51 }
 0x854   :  { %2880 = vmatmul.mubr.bf16.vlgmr.msra.gmra.mxu0 %v1473_v51  ;;  %v3353_v51 = vld [vmem:[#allocation5 + $0x1e4] ss:$8 sps:$4 sm:$0xff]  }
 0x855   :  { %2884 = vmatpush3.bf16.xpose.msra.mxu0 %v4108_v52  ;;  %2881 = vmatprep.mubr.bf16.mxu0 %v1474_v55 }
 0x856   :  { %2885 = vmatprep.subr.bf16.mxu0 %v4113_v54 }
 0x85c   :  { %2882 = vmatmul.mubr.bf16.gmra.mxu0 %v1474_v55  ;;  %v3354_v55 = vld [vmem:[#allocation5 + $0x1e0] ss:$8 sps:$4 sm:$0xff]  }
 0x85d   :  { %2886 = vmatpush3.bf16.xpose.msra.mxu0 %v4120_v56  ;;  %2899 = vmatprep.mubr.bf16.mxu0 %v3994_v61 }
 0x85e   :  { %2887 = vmatprep.subr.bf16.mxu0 %v4125_v22 }
 0x865   :  { %2888 = vmatpush3.bf16.xpose.msra.mxu0 %v4133_v28 }
 0x866   :  { %2889 = vmatprep.subr.bf16.mxu0 %v4138_v30 }
 0x86d   :  { %2890 = vmatpush3.bf16.xpose.msra.mxu0 %v4145_v33 }
 0x86e   :  { %2891 = vmatprep.subr.bf16.mxu0 %v4150_v35 }
 0x875   :  { %2892 = vmatpush3.bf16.xpose.msra.mxu0 %v4157_v57 }
 0x876   :  { %2893 = vmatprep.subr.bf16.mxu0 %v4162_v1 }
 0x87d   :  { %2894 = vmatpush3.bf16.xpose.msra.mxu0 %v4169_v9 }
 0x87e   :  { %2895 = vmatprep.subr.bf16.mxu0 %v4174_v10 }
 0x885   :  { %2896 = vmatpush3.bf16.xpose.msra.mxu0 %v4181_v11 }
 0x886   :  { %2897 = vmatprep.subr.bf16.mxu0 %v4186_v31 }
 0x88d   :  { %2898 = vmatpush3.bf16.xpose.msra.mxu0 %v4193_v19 }
 0x88e   :  { %1902 = vmatprep.subr.bf16.mxu0 %v3335_v27  ;;  %v3355_v27 = vld [vmem:[#allocation5 + $0x1d4] ss:$8 sps:$4 sm:$0xff]  }
 0x894   :  { %2900 = vmatmul.mubr.bf16.vlgmr.msra.gmra.mxu0 %v3994_v61  ;;  %v3344_v61 = vld [vmem:[#allocation5 + $0x130] ss:$8 sps:$4 sm:$0xff]  }
 0x895   :  { %2901 = vmatprep.mubr.bf16.mxu0 %v3992_v5  ;;  %1903 = vmatpush1.bf16.xpose.msra.mxu0 %v3336_v16  ;;  %v3356_v16 = vld [vmem:[#allocation5 + $0x1d0] ss:$8 sps:$4 sm:$0xff]  }
 0x896   :  { %1904 = vmatprep.subr.bf16.mxu0 %v3337_v18  ;;  %v3357_v18 = vld [vmem:[#allocation5 + $0x1c4] ss:$8 sps:$4 sm:$0xff]  }
 0x89c   :  { %2902 = vmatmul.mubr.bf16.gmra.mxu0 %v3992_v5  ;;  %v3348_v5 = vld [vmem:[#allocation5 + $0x110] ss:$8 sps:$4 sm:$0xff]  }
 0x89d   :  { %1905 = vmatpush1.bf16.xpose.msra.mxu0 %v3338_v37  ;;  %v3358_v37 = vld [vmem:[#allocation5 + $0x1c0] ss:$8 sps:$4 sm:$0xff]  }
 0x89e   :  { %1906 = vmatprep.subr.bf16.mxu0 %v3339_v20  ;;  %v4537_v20 = vld [vmem:[#allocation9_spill] sm:$0xff] }
 0x8a5   :  { %1907 = vmatpush1.bf16.xpose.msra.mxu0 %v3340_v63  ;;  %v4538_v63 = vld [vmem:[#allocation10_spill] sm:$0xff] }
 0x8a6   :  { %1908 = vmatprep.subr.bf16.mxu0 %v3341_v13  ;;  %v4539_v13 = vld [vmem:[#allocation11_spill] sm:$0xff] }
 0x8ad   :  { %1909 = vmatpush1.bf16.xpose.msra.mxu0 %v3342_v17  ;;  %v4540_v17 = vld [vmem:[#allocation12_spill] sm:$0xff] }
 0x8ae   :  { %1910 = vmatprep.subr.bf16.mxu0 %v3343_v32  ;;  %v4541_v32 = vld [vmem:[#allocation14_spill] sm:$0xff] }
 0x8b5   :  { %1911 = vmatpush1.bf16.xpose.msra.mxu0 %v3344_v61  ;;  %v4542_v61 = vld [vmem:[#allocation15_spill] sm:$0xff] }
 0x8b6   :  { %1912 = vmatprep.subr.bf16.mxu0 %v3345_v14  ;;  %v4543_v14 = vld [vmem:[#allocation16_spill] sm:$0xff] }
 0x8bd   :  { %1913 = vmatpush1.bf16.xpose.msra.mxu0 %v3346_v53  ;;  %v4544_v53 = vld [vmem:[#allocation17_spill] sm:$0xff] }
 0x8be   :  { %1914 = vmatprep.subr.bf16.mxu0 %v3347_v41 }
 0x8c5   :  { %1915 = vmatpush1.bf16.xpose.msra.mxu0 %v3348_v5 }
 0x8c6   :  { %1916 = vmatprep.subr.bf16.mxu0 %v3349_v46 }
 0x8cd   :  { %1917 = vmatpush1.bf16.xpose.msra.mxu0 %v3350_v47 }
 0x8ce   :  { %1918 = vmatprep.subr.bf16.mxu0 %v3351_v49 }
 0x8d5   :  { %1919 = vmatpush2.bf16.xpose.msra.mxu0 %v3352_v50 }
 0x8d6   :  { %1920 = vmatprep.subr.bf16.mxu0 %v3353_v51 }
 0x8dd   :  { %1921 = vmatpush2.bf16.xpose.msra.mxu0 %v3354_v55  ;;  %v1743_v55 = vsub.s32 5, %v3807_v6 }
 0x8de   :  { %1922 = vmatprep.subr.bf16.mxu0 %v3355_v27 }
 0x8e5   :  { %1923 = vmatpush2.bf16.xpose.msra.mxu0 %v3356_v16  ;;  %v4209_v16 = vrot.slane %v3816_v3, %v1743_v55 }
 0x8e6   :  { %1924 = vmatprep.subr.bf16.mxu0 %v3357_v18 }
 0x8e7   :  { %4545 = vst [vmem:[#allocation9_spill] sm:$0xff] %v4209_v16 }
 0x8ed   :  { %1925 = vmatpush2.bf16.xpose.msra.mxu0 %v3358_v37  ;;  %v4212_v37 = vrot.slane %v3821_v4, %v1743_v55 }
 0x8ee   :  { %1926 = vmatprep.subr.bf16.mxu0 %v4537_v20 }
 0x8ef   :  { %4546 = vst [vmem:[#allocation10_spill] sm:$0xff] %v4212_v37 }
 0x8f5   :  { %1927 = vmatpush2.bf16.xpose.msra.mxu0 %v4538_v63 }
 0x8f6   :  { %1928 = vmatprep.subr.bf16.mxu0 %v4539_v13 }
 0x8fd   :  { %1929 = vmatpush2.bf16.xpose.msra.mxu0 %v4540_v17 }
 0x8fe   :  { %1930 = vmatprep.subr.bf16.mxu0 %v4541_v32 }
 0x905   :  { %1931 = vmatpush2.bf16.xpose.msra.mxu0 %v4542_v61 }
 0x906   :  { %1932 = vmatprep.subr.bf16.mxu0 %v4543_v14 }
 0x90d   :  { %1933 = vmatpush2.bf16.xpose.msra.mxu0 %v4544_v53 }
 0x914   :  { %v1605_v41 = vpop.f32.mrf.mxu0 }
 0x916   :  { %v1607_v5 = vpop.f32.mrf.mxu0 }
 0x918   :  { %v1609_v46 = vpop.f32.mrf.mxu0 }
 0x91a   :  { %v1611_v47 = vpop.f32.mrf.mxu0 }
 0x91c   :  { %v1615_v49 = vpop.f32.mrf.mxu0 }
 0x91e   :  { %v1617_v50 = vpop.f32.mrf.mxu0 }
 0x920   :  { %v1619_v51 = vpop.f32.mrf.mxu0 }
 0x922   :  { %v1621_v27 = vpop.f32.mrf.mxu0 }
 0x954   :  { %v1722_v18 = vpop.f32.mrf.mxu0 }
 0x955   :  { %v1723_v20 = vadd.f32 %v1722_v18, %v1605_v41 }
 0x956   :  { %v1724_v63 = vpop.f32.mrf.mxu0 }
 0x957   :  { %v1749_v13 = vadd.f32 %v4209_v16, %v1723_v20  ;;  %v1725_v17 = vadd.f32 %v1724_v63, %v1607_v5  ;;  %v3361_v63 = vld [vmem:[#allocation3 + $0x10] sm:$0xff] }
 0x958   :  { %v1726_v32 = vpop.f32.mrf.mxu0 }
 0x959   :  { %v1750_v61 = vadd.f32 %v4212_v37, %v1725_v17  ;;  %v1727_v14 = vadd.f32 %v1726_v32, %v1609_v46  ;;  %v4216_v6 = vadd.f32 %v3359_v44, %v1749_v13  ;;  %v3362_v17 = vld [vmem:[#allocation3 + $0x18] sm:$0xff] }
 0x95a   :  { %v1728_v53 = vpop.f32.mrf.mxu0 }
 0x95b   :  { %4547 = vst [vmem:[#allocation11_spill] sm:$0xff] %v4216_v6  ;;  %v4218_v3 = vadd.f32 %v3360_v43, %v1750_v61  ;;  %v1751_v42 = vadd.f32 %v4209_v16, %v1727_v14  ;;  %v1729_v4 = vadd.f32 %v1728_v53, %v1611_v47  ;;  %v3363_v53 = vld [vmem:[#allocation3 + $0x20] sm:$0xff] }
 0x95c   :  { %v1732_v55 = vpop.f32.mrf.mxu0 }
 0x95d   :  { %4548 = vst [vmem:[#allocation12_spill] sm:$0xff] %v4218_v3  ;;  %v1752_v41 = vadd.f32 %v4212_v37, %v1729_v4  ;;  %v1733_v18 = vadd.f32 %v1732_v55, %v1615_v49  ;;  %v1765_v5 = vadd.f32 %v4218_v3, %v4216_v6  ;;  %v4224_v46 = vadd.f32 %v3361_v63, %v1751_v42  ;;  %v3364_v42 = vld [vmem:[#allocation3 + $0x28] sm:$0xff] }
 0x95e   :  { %v1734_v20 = vpop.f32.mrf.mxu0 }
 0x95f   :  { %4549 = vst [vmem:[#allocation14_spill] sm:$0xff] %v4224_v46  ;;  %v4226_v44 = vadd.f32 %v3362_v17, %v1752_v41  ;;  %v1753_v43 = vadd.f32 %v4209_v16, %v1733_v18  ;;  %v1735_v13 = vadd.f32 %v1734_v20, %v1617_v50  ;;  %1766 = vadd.xlane.f32.xlu1 %v1765_v5  ;;  %v3366_v20 = vld [vmem:[#allocation3 + $0x38] sm:$0xff] }
 0x960   :  { %v1736_v32 = vpop.f32.mrf.mxu0 }
 0x961   :  { %4550 = vst [vmem:[#allocation15_spill] sm:$0xff] %v4226_v44  ;;  %v1754_v47 = vadd.f32 %v4212_v37, %v1735_v13  ;;  %v1737_v61 = vadd.f32 %v1736_v32, %v1619_v51  ;;  %v1768_v49 = vadd.f32 %v4226_v44, %v4224_v46  ;;  %v4232_v4 = vadd.f32 %v3363_v53, %v1753_v43  ;;  %v3365_v51 = vld [vmem:[#allocation3 + $0x30] sm:$0xff] }
 0x962   :  { %v1738_v14 = vpop.f32.mrf.mxu0 }
 0x963   :  { %4551 = vst [vmem:[#allocation16_spill] sm:$0xff] %v4232_v4  ;;  %v4234_v55 = vadd.f32 %v3364_v42, %v1754_v47  ;;  %v1755_v41 = vadd.f32 %v4209_v16, %v1737_v61  ;;  %v1739_v63 = vadd.f32 %v1738_v14, %v1621_v27  ;;  %1769 = vadd.xlane.f32.xlu0 %v1768_v49 }
 0x965   :  { %4552 = vst [vmem:[#allocation17_spill] sm:$0xff] %v4234_v55  ;;  %v1756_v50 = vadd.f32 %v4212_v37, %v1739_v63  ;;  %v1771_v18 = vadd.f32 %v4234_v55, %v4232_v4  ;;  %v4240_v5 = vadd.f32 %v3365_v51, %v1755_v41 }
 0x967   :  { %4553 = vst [vmem:[#allocation21_spill] sm:$0xff] %v4240_v5  ;;  %v4242_v17 = vadd.f32 %v3366_v20, %v1756_v50  ;;  %1772 = vadd.xlane.f32.xlu1 %v1771_v18 }
 0x969   :  { %v1774_v43 = vadd.f32 %v4242_v17, %v4240_v5 }
 0x96b   :  { %1775 = vadd.xlane.f32.xlu0 %v1774_v43 }
 0x9e8   :  { %v1767_v13 = vpop.xlane.xlu1 %1766 }
 0x9e9   :  { %v1777_v32 = vmul.f32 0.00390625, %v1767_v13 }
 0x9eb   :  { %v1781_v27 = vsub.f32 %v4216_v6, %v1777_v32  ;;  %v1782_v47 = vsub.f32 %v4218_v3, %v1777_v32 }
 0x9ec   :  { %v1770_v61 = vpop.xlane.xlu0 %1769 }
 0x9ed   :  { %v1778_v49 = vmul.f32 0.00390625, %v1770_v61  ;;  %v1789_v14 = vmul.f32 %v1781_v27, %v1781_v27  ;;  %v1790_v53 = vmul.f32 %v1782_v47, %v1782_v47 }
 0x9ef   :  { %v1783_v42 = vsub.f32 %v4224_v46, %v1778_v49  ;;  %v1784_v41 = vsub.f32 %v4226_v44, %v1778_v49  ;;  %v1797_v63 = vadd.f32 %v1790_v53, %v1789_v14 }
 0x9f0   :  { %v1773_v50 = vpop.xlane.xlu1 %1772 }
 0x9f1   :  { %v1779_v18 = vmul.f32 0.00390625, %v1773_v50  ;;  %1798 = vadd.xlane.f32.xlu1 %v1797_v63  ;;  %v1791_v51 = vmul.f32 %v1783_v42, %v1783_v42  ;;  %v1792_v20 = vmul.f32 %v1784_v41, %v1784_v41 }
 0x9f3   :  { %v1785_v43 = vsub.f32 %v4232_v4, %v1779_v18  ;;  %v1786_v13 = vsub.f32 %v4234_v55, %v1779_v18  ;;  %v1800_v6 = vadd.f32 %v1792_v20, %v1791_v51 }
 0x9f4   :  { %v1776_v32 = vpop.xlane.xlu0 %1775 }
 0x9f5   :  { %v1780_v3 = vmul.f32 0.00390625, %v1776_v32  ;;  %1801 = vadd.xlane.f32.xlu0 %v1800_v6  ;;  %v1793_v61 = vmul.f32 %v1785_v43, %v1785_v43  ;;  %v1794_v37 = vmul.f32 %v1786_v13, %v1786_v13 }
 0x9f7   :  { %v1787_v46 = vsub.f32 %v4240_v5, %v1780_v3  ;;  %v1788_v49 = vsub.f32 %v4242_v17, %v1780_v3  ;;  %v1803_v14 = vadd.f32 %v1794_v37, %v1793_v61 }
 0x9f9   :  { %1804 = vadd.xlane.f32.xlu1 %v1803_v14  ;;  %v1795_v53 = vmul.f32 %v1787_v46, %v1787_v46  ;;  %v1796_v63 = vmul.f32 %v1788_v49, %v1788_v49 }
 0x9fb   :  { %v1806_v50 = vadd.f32 %v1796_v63, %v1795_v53 }
 0x9fd   :  { %1807 = vadd.xlane.f32.xlu0 %v1806_v50 }
 0xa7a   :  { %v1799_v44 = vpop.xlane.xlu1 %1798 }
 0xa7b   :  { %v1809_v4 = vmul.f32 0.00390625, %v1799_v44 }
 0xa7d   :  { %v1813_v16 = vadd.f32 1e-05, %v1809_v4 }
 0xa7e   :  { %v1802_v18 = vpop.xlane.xlu0 %1801 }
 0xa7f   :  { %3295 = vrsqrt.f32 %v1813_v16  ;;  %v1810_v51 = vmul.f32 0.00390625, %v1802_v18 }
 0xa81   :  { %v1814_v20 = vadd.f32 1e-05, %v1810_v51 }
 0xa82   :  { %v1805_v6 = vpop.xlane.xlu1 %1804 }
 0xa83   :  { %3297 = vrsqrt.f32 %v1814_v20  ;;  %v1811_v32 = vmul.f32 0.00390625, %v1805_v6 }
 0xa85   :  { %v1815_v55 = vadd.f32 1e-05, %v1811_v32 }
 0xa86   :  { %v1808_v5 = vpop.xlane.xlu0 %1807 }
 0xa87   :  { %3299 = vrsqrt.f32 %v1815_v55  ;;  %v1812_v3 = vmul.f32 0.00390625, %v1808_v5 }
 0xa89   :  { %v1816_v37 = vadd.f32 1e-05, %v1812_v3 }
 0xa8b   :  { %3301 = vrsqrt.f32 %v1816_v37 }
 0xa8c   :  { %v3296_v61 = vpop.eup %3295 }
 0xa8d   :  { %v1822_v14 = vmul.f32 %v3296_v61, %v1782_v47  ;;  %v1821_v53 = vmul.f32 %v3296_v61, %v1781_v27 }
 0xa8f   :  { %v1830_v44 = vmul.f32 %v1822_v14, %v3835_v62  ;;  %v1829_v4 = vmul.f32 %v1821_v53, %v3831_v24 }
 0xa90   :  { %v3298_v63 = vpop.eup %3297 }
 0xa91   :  { %v1824_v16 = vmul.f32 %v3298_v63, %v1784_v41  ;;  %v1823_v50 = vmul.f32 %v3298_v63, %v1783_v42  ;;  %v1838_v55 = vadd.f32 %v1830_v44, %v3844_v29  ;;  %v1837_v5 = vadd.f32 %v1829_v4, %v3841_v23  ;;  %v3367_v63 = vld [vmem:[#allocation5 + $0x270] ss:$8 sps:$4 sm:$0xff]   ;;  %v3368_v44 = vld [vmem:[#allocation5 + $0x264] ss:$8 sps:$4 sm:$0xff]  }
 0xa93   :  { %v1832_v18 = vmul.f32 %v1824_v16, %v3835_v62  ;;  %v1831_v51 = vmul.f32 %v1823_v50, %v3831_v24 }
 0xa94   :  { %v3300_v20 = vpop.eup %3299 }
 0xa95   :  { %v1840_v6 = vadd.f32 %v1832_v18, %v3844_v29  ;;  %v1839_v27 = vadd.f32 %v1831_v51, %v3841_v23  ;;  %v1826_v47 = vmul.f32 %v3300_v20, %v1786_v13  ;;  %v1825_v32 = vmul.f32 %v3300_v20, %v1785_v43  ;;  %v3373_v51 = vld [vmem:[#allocation5 + $0x240] ss:$8 sps:$4 sm:$0xff]   ;;  %v3374_v20 = vld [vmem:[#allocation5 + $0x234] ss:$8 sps:$4 sm:$0xff]  }
 0xa97   :  { %v1846_v3 = vpack.c.bf16 %v1840_v6, %v1838_v55  ;;  %v4262_v37 = vpack.c.bf16 %v1839_v27, %v1837_v5  ;;  %v1834_v42 = vmul.f32 %v1826_v47, %v3835_v62  ;;  %v1833_v53 = vmul.f32 %v1825_v32, %v3831_v24  ;;  %v3375_v55 = vld [vmem:[#allocation5 + $0x230] ss:$8 sps:$4 sm:$0xff]   ;;  %v3376_v5 = vld [vmem:[#allocation5 + $0x224] ss:$8 sps:$4 sm:$0xff]   ;;  %v3377_v6 = vld [vmem:[#allocation5 + $0x220] ss:$8 sps:$4 sm:$0xff]  }
 0xa98   :  { %v3302_v41 = vpop.eup %3301  ;;  %v3378_v27 = vld [vmem:[#allocation5 + $0x214] ss:$8 sps:$4 sm:$0xff]   ;;  %v3379_v47 = vld [vmem:[#allocation5 + $0x210] ss:$8 sps:$4 sm:$0xff]   ;;  %v3380_v32 = vld [vmem:[#allocation5 + $0x204] ss:$8 sps:$4 sm:$0xff]  }
 0xa99   :  { %1881 = vmatprep.mubr.bf16.mxu1 %v1846_v3  ;;  %1934 = vmatprep.mubr.bf16.mxu0 %v1846_v3  ;;  %v1828_v61 = vmul.f32 %v3302_v41, %v1788_v49  ;;  %v1827_v14 = vmul.f32 %v3302_v41, %v1787_v46  ;;  %v1842_v4 = vadd.f32 %v1834_v42, %v3844_v29  ;;  %v3382_v41 = vld [vmem:[#allocation5 + $0x2f4] ss:$8 sps:$4 sm:$0xff]   ;;  %v3383_v42 = vld [vmem:[#allocation5 + $0x2f0] ss:$8 sps:$4 sm:$0xff]  }
 0xa9a   :  { %1882 = vmatmul.mubr.bf16.vlgmr.msra.gmra.mxu1 %v4262_v37  ;;  %1935 = vmatmul.mubr.bf16.vlgmr.msra.gmra.mxu0 %v4262_v37  ;;  %v1841_v46 = vadd.f32 %v1833_v53, %v3841_v23  ;;  %v3386_v53 = vld [vmem:[#allocation5 + $0x2d4] ss:$8 sps:$4 sm:$0xff]  }
 0xa9b   :  { %1956 = vmatpush1.bf16.xpose.msra.mxu1 %v3367_v63  ;;  %v1836_v43 = vmul.f32 %v1828_v61, %v3835_v62  ;;  %v1835_v13 = vmul.f32 %v1827_v14, %v3831_v24  ;;  %v3369_v24 = vld [vmem:[#allocation5 + $0x260] ss:$8 sps:$4 sm:$0xff]   ;;  %v3370_v62 = vld [vmem:[#allocation5 + $0x254] ss:$8 sps:$4 sm:$0xff]   ;;  %v3384_v61 = vld [vmem:[#allocation5 + $0x2e4] ss:$8 sps:$4 sm:$0xff]  }
 0xa9c   :  { %1957 = vmatprep.subr.bf16.mxu1 %v3368_v44  ;;  %v3385_v14 = vld [vmem:[#allocation5 + $0x2e0] ss:$8 sps:$4 sm:$0xff]   ;;  %v3387_v63 = vld [vmem:[#allocation5 + $0x2d0] ss:$8 sps:$4 sm:$0xff]   ;;  %v3390_v44 = vld [vmem:[#allocation5 + $0x2b4] ss:$8 sps:$4 sm:$0xff]  }
 0xa9d   :  { %v1844_v16 = vadd.f32 %v1836_v43, %v3844_v29  ;;  %v1843_v49 = vadd.f32 %v1835_v13, %v3841_v23  ;;  %v3371_v29 = vld [vmem:[#allocation5 + $0x250] ss:$8 sps:$4 sm:$0xff]   ;;  %v3372_v23 = vld [vmem:[#allocation5 + $0x244] ss:$8 sps:$4 sm:$0xff]   ;;  %v3389_v13 = vld [vmem:[#allocation5 + $0x2c0] ss:$8 sps:$4 sm:$0xff]  }
 0xa9e   :  { %v3388_v43 = vld [vmem:[#allocation5 + $0x2c4] ss:$8 sps:$4 sm:$0xff]  }
 0xa9f   :  { %v4274_v50 = vpack.c.bf16 %v1844_v16, %v1842_v4  ;;  %v4276_v18 = vpack.c.bf16 %v1843_v49, %v1841_v46  ;;  %v3391_v4 = vld [vmem:[#allocation5 + $0x2b0] ss:$8 sps:$4 sm:$0xff]   ;;  %v3392_v16 = vld [vmem:[#allocation5 + $0x2a4] ss:$8 sps:$4 sm:$0xff]   ;;  %v3393_v46 = vld [vmem:[#allocation5 + $0x2a0] ss:$8 sps:$4 sm:$0xff]  }
 0xaa0   :  { %v3394_v49 = vld [vmem:[#allocation5 + $0x294] ss:$8 sps:$4 sm:$0xff]  }
 0xaa1   :  { %1891 = vmatprep.mubr.bf16.mxu1 %v4274_v50  ;;  %1944 = vmatprep.mubr.bf16.mxu0 %v4274_v50 }
 0xaa2   :  { %1892 = vmatmul.mubr.bf16.gmra.mxu1 %v4276_v18  ;;  %1945 = vmatmul.mubr.bf16.gmra.mxu0 %v4276_v18 }
 0xaa3   :  { %1958 = vmatpush1.bf16.xpose.msra.mxu1 %v3369_v24  ;;  %1987 = vmatprep.mubr.bf16.mxu1 %v1846_v3  ;;  %v3381_v3 = vld [vmem:[#allocation5 + $0x200] ss:$8 sps:$4 sm:$0xff]   ;;  %v3395_v24 = vld [vmem:[#allocation5 + $0x290] ss:$8 sps:$4 sm:$0xff]  }
 0xaa4   :  { %1959 = vmatprep.subr.bf16.mxu1 %v3370_v62  ;;  %v3396_v62 = vld [vmem:[#allocation5 + $0x284] ss:$8 sps:$4 sm:$0xff]  }
 0xaab   :  { %1960 = vmatpush1.bf16.xpose.msra.mxu1 %v3371_v29  ;;  %v3397_v29 = vld [vmem:[#allocation5 + $0x280] ss:$8 sps:$4 sm:$0xff]  }
 0xaac   :  { %1961 = vmatprep.subr.bf16.mxu1 %v3372_v23 }
 0xab3   :  { %1962 = vmatpush1.bf16.xpose.msra.mxu1 %v3373_v51 }
 0xab4   :  { %1963 = vmatprep.subr.bf16.mxu1 %v3374_v20 }
 0xabb   :  { %1964 = vmatpush1.bf16.xpose.msra.mxu1 %v3375_v55 }
 0xabc   :  { %1965 = vmatprep.subr.bf16.mxu1 %v3376_v5 }
 0xac3   :  { %1966 = vmatpush1.bf16.xpose.msra.mxu1 %v3377_v6 }
 0xac4   :  { %1967 = vmatprep.subr.bf16.mxu1 %v3378_v27 }
 0xacb   :  { %1968 = vmatpush1.bf16.xpose.msra.mxu1 %v3379_v47 }
 0xacc   :  { %1969 = vmatprep.subr.bf16.mxu1 %v3380_v32 }
 0xad3   :  { %1970 = vmatpush1.bf16.xpose.msra.mxu1 %v3381_v3 }
 0xad4   :  { %1971 = vmatprep.subr.bf16.mxu1 %v3382_v41 }
 0xadb   :  { %1972 = vmatpush2.bf16.xpose.msra.mxu1 %v3383_v42 }
 0xadc   :  { %1973 = vmatprep.subr.bf16.mxu1 %v3384_v61 }
 0xae3   :  { %1974 = vmatpush2.bf16.xpose.msra.mxu1 %v3385_v14 }
 0xae4   :  { %1975 = vmatprep.subr.bf16.mxu1 %v3386_v53 }
 0xaeb   :  { %1976 = vmatpush2.bf16.xpose.msra.mxu1 %v3387_v63 }
 0xaec   :  { %1977 = vmatprep.subr.bf16.mxu1 %v3388_v43 }
 0xaf3   :  { %1978 = vmatpush2.bf16.xpose.msra.mxu1 %v3389_v13 }
 0xaf4   :  { %1979 = vmatprep.subr.bf16.mxu1 %v3390_v44 }
 0xafb   :  { %1980 = vmatpush2.bf16.xpose.msra.mxu1 %v3391_v4 }
 0xafc   :  { %1981 = vmatprep.subr.bf16.mxu1 %v3392_v16 }
 0xb03   :  { %1982 = vmatpush2.bf16.xpose.msra.mxu1 %v3393_v46 }
 0xb04   :  { %1983 = vmatprep.subr.bf16.mxu1 %v3394_v49 }
 0xb0b   :  { %1984 = vmatpush2.bf16.xpose.msra.mxu1 %v3395_v24 }
 0xb0c   :  { %1985 = vmatprep.subr.bf16.mxu1 %v3396_v62 }
 0xb13   :  { %1986 = vmatpush2.bf16.xpose.msra.mxu1 %v3397_v29 }
 0xb1a   :  { %1988 = vmatmul.mubr.bf16.vlgmr.msra.gmra.mxu1 %v4262_v37 }
 0xb1b   :  { %1997 = vmatprep.mubr.bf16.mxu1 %v4274_v50 }
 0xb22   :  { %1998 = vmatmul.mubr.bf16.gmra.mxu1 %v4276_v18 }
 0xb5a   :  { %v1883_v23 = vpop.f32.mrf.mxu1  ;;  %v1936_v51 = vpop.f32.mrf.mxu0 }
 0xb5b   :  { %v2008_v27 = vadd.f32 %v1883_v23, %v3901_v40  ;;  %v2016_v13 = vadd.f32 %v1936_v51, %v3929_v48 }
 0xb5c   :  { %v1885_v20 = vpop.f32.mrf.mxu1  ;;  %v1938_v55 = vpop.f32.mrf.mxu0 }
 0xb5d   :  { %v2009_v41 = vadd.f32 %v1885_v20, %v3936_v26  ;;  %v2017_v62 = vadd.f32 %v1938_v55, %v3957_v15 }
 0xb5e   :  { %v1887_v5 = vpop.f32.mrf.mxu1  ;;  %v1940_v6 = vpop.f32.mrf.mxu0 }
 0xb5f   :  { %v2010_v47 = vadd.f32 %v1887_v5, %v3901_v40  ;;  %v2018_v53 = vadd.f32 %v1940_v6, %v3929_v48 }
 0xb60   :  { %v1889_v32 = vpop.f32.mrf.mxu1  ;;  %v1942_v3 = vpop.f32.mrf.mxu0 }
 0xb61   :  { %v2032_v42 = vpack.c.bf16 %v2010_v47, %v2008_v27  ;;  %v2011_v37 = vadd.f32 %v1889_v32, %v3936_v26  ;;  %v2019_v16 = vadd.f32 %v1942_v3, %v3957_v15  ;;  %v2034_v29 = vpack.c.bf16 %v2018_v53, %v2016_v13 }
 0xb62   :  { %v1946_v50 = vpop.f32.mrf.mxu0  ;;  %v1893_v44 = vpop.f32.mrf.mxu1 }
 0xb63   :  { %v2195_v61 = vpack.c.bf16 %v2011_v37, %v2009_v41  ;;  %3005 = vmatprep.mubr.bf16.mxu0 %v2032_v42  ;;  %v2020_v63 = vadd.f32 %v1946_v50, %v3929_v48  ;;  %v2197_v5 = vpack.c.bf16 %v2019_v16, %v2017_v62  ;;  %v2012_v27 = vadd.f32 %v1893_v44, %v3901_v40 }
 0xb64   :  { %v1948_v18 = vpop.f32.mrf.mxu0  ;;  %v1895_v20 = vpop.f32.mrf.mxu1 }
 0xb65   :  { %3021 = vmatprep.mubr.bf16.mxu1 %v2195_v61  ;;  %v2021_v46 = vadd.f32 %v1948_v18, %v3957_v15  ;;  %v2013_v55 = vadd.f32 %v1895_v20, %v3936_v26 }
 0xb66   :  { %v1950_v14 = vpop.f32.mrf.mxu0 }
 0xb67   :  { %v2022_v43 = vadd.f32 %v1950_v14, %v3929_v48  ;;  %v1897_v48 = vpop.f32.mrf.mxu1 }
 0xb68   :  { %v1952_v4 = vpop.f32.mrf.mxu0  ;;  %v2014_v6 = vadd.f32 %v1897_v48, %v3901_v40 }
 0xb69   :  { %v2035_v49 = vpack.c.bf16 %v2022_v43, %v2020_v63  ;;  %v2023_v24 = vadd.f32 %v1952_v4, %v3957_v15  ;;  %v1899_v51 = vpop.f32.mrf.mxu1 }
 0xb6a   :  { %v2015_v15 = vadd.f32 %v1899_v51, %v3936_v26  ;;  %v2033_v47 = vpack.c.bf16 %v2014_v6, %v2012_v27 }
 0xb6b   :  { %v2198_v23 = vpack.c.bf16 %v2023_v24, %v2021_v46  ;;  %3001 = vmatprep.subr.bf16.mxu0 %v2035_v49 }
 0xb6c   :  { %3002 = vmatpush3.bf16.xpose.msra.mxu0 %v2035_v49  ;;  %v2196_v32 = vpack.c.bf16 %v2015_v15, %v2013_v55 }
 0xb6d   :  { %3003 = vmatprep.subr.bf16.mxu0 %v2034_v29  ;;  %3017 = vmatprep.subr.bf16.mxu1 %v2198_v23 }
 0xb6e   :  { %3018 = vmatpush3.bf16.xpose.msra.mxu1 %v2198_v23 }
 0xb6f   :  { %3019 = vmatprep.subr.bf16.mxu1 %v2197_v5 }
 0xb74   :  { %3004 = vmatpush3.bf16.xpose.msra.mxu0 %v2034_v29 }
 0xb76   :  { %3020 = vmatpush3.bf16.xpose.msra.mxu1 %v2197_v5 }
 0xb77   :  { %2939 = vmatprep.subr.bf16.mxu1 %v4102_v45 }
 0xb7b   :  { %3006 = vmatmul.mubr.bf16.vlgmr.msra.gmra.mxu0 %v2033_v47 }
 0xb7d   :  { %3022 = vmatmul.mubr.bf16.vlgmr.msra.gmra.mxu1 %v2196_v32 }
 0xb7e   :  { %2940 = vmatpush3.bf16.xpose.msra.mxu1 %v4108_v52 }
 0xb7f   :  { %2941 = vmatprep.subr.bf16.mxu1 %v4113_v54 }
 0xb86   :  { %2942 = vmatpush3.bf16.xpose.msra.mxu1 %v4120_v56 }
 0xb87   :  { %2943 = vmatprep.subr.bf16.mxu1 %v4125_v22 }
 0xb8e   :  { %2944 = vmatpush3.bf16.xpose.msra.mxu1 %v4133_v28 }
 0xb8f   :  { %2945 = vmatprep.subr.bf16.mxu1 %v4138_v30 }
 0xb96   :  { %2946 = vmatpush3.bf16.xpose.msra.mxu1 %v4145_v33 }
 0xb97   :  { %2947 = vmatprep.subr.bf16.mxu1 %v4150_v35 }
 0xb9e   :  { %2948 = vmatpush3.bf16.xpose.msra.mxu1 %v4157_v57 }
 0xb9f   :  { %2949 = vmatprep.subr.bf16.mxu1 %v4162_v1 }
 0xba6   :  { %2950 = vmatpush3.bf16.xpose.msra.mxu1 %v4169_v9 }
 0xba7   :  { %2951 = vmatprep.subr.bf16.mxu1 %v4174_v10 }
 0xbae   :  { %2952 = vmatpush3.bf16.xpose.msra.mxu1 %v4181_v11 }
 0xbaf   :  { %2953 = vmatprep.subr.bf16.mxu1 %v4186_v31 }
 0xbb6   :  { %2954 = vmatpush3.bf16.xpose.msra.mxu1 %v4193_v19 }
 0xbda   :  { %v1989_v40 = vpop.f32.mrf.mxu1 }
 0xbdb   :  { %v2024_v10 = vadd.f32 %v1989_v40, %v3952_v59 }
 0xbdc   :  { %v1991_v26 = vpop.f32.mrf.mxu1 }
 0xbdd   :  { %v2025_v54 = vadd.f32 %v1991_v26, %v3977_v21 }
 0xbde   :  { %v1993_v45 = vpop.f32.mrf.mxu1 }
 0xbdf   :  { %v2026_v35 = vadd.f32 %v1993_v45, %v3952_v59 }
 0xbe0   :  { %v1995_v52 = vpop.f32.mrf.mxu1 }
 0xbe1   :  { %v2027_v56 = vadd.f32 %v1995_v52, %v3977_v21  ;;  %v2136_v31 = vpack.c.bf16 %v2026_v35, %v2024_v10 }
 0xbe2   :  { %v1999_v22 = vpop.f32.mrf.mxu1 }
 0xbe3   :  { %v4319_v28 = vpack.c.bf16 %v2027_v56, %v2025_v54  ;;  %v2028_v57 = vadd.f32 %v1999_v22, %v3952_v59 }
 0xbe4   :  { %v2001_v30 = vpop.f32.mrf.mxu1 }
 0xbe5   :  { %v2029_v3 = vadd.f32 %v2001_v30, %v3977_v21 }
 0xbe6   :  { %v2003_v33 = vpop.f32.mrf.mxu1 }
 0xbe7   :  { %v2030_v1 = vadd.f32 %v2003_v33, %v3952_v59 }
 0xbe8   :  { %v2005_v9 = vpop.f32.mrf.mxu1 }
 0xbe9   :  { %v2137_v11 = vpack.c.bf16 %v2030_v1, %v2028_v57  ;;  %v2031_v19 = vadd.f32 %v2005_v9, %v3977_v21 }
 0xbeb   :  { %3009 = vmatprep.subr.bf16.mxu0 %v2137_v11  ;;  %v4327_v41 = vpack.c.bf16 %v2031_v19, %v2029_v3 }
 0xbec   :  { %3010 = vmatpush3.bf16.msra.mxu0 %v2137_v11 }
 0xbed   :  { %3011 = vmatprep.subr.bf16.mxu0 %v2136_v31 }
 0xbf0   :  { %3012 = vmatpush3.bf16.msra.mxu0 %v2136_v31 }
 0xbf1   :  { %3025 = vmatprep.subr.bf16.mxu0 %v4327_v41 }
 0xc3b   :  { %v3007_v42 = vpop.f32.mrf.mxu0 }
 0xc3c   :  { %v2087_v14 = vmul.f32 0.088388346, %v3007_v42 }
 0xc3d   :  { %v2070_v37 = vpop.f32.mrf.mxu0  ;;  %v3023_v50 = vpop.f32.mrf.mxu1 }
 0xc3e   :  { %v2085_v61 = vmul.f32 0.088388346, %v2070_v37  ;;  %v2096_v4 = vsel %vm2089_vm4, %v2087_v14, -inf  ;;  %v2250_v49 = vmul.f32 0.088388346, %v3023_v50 }
 0xc3f   :  { %v3008_v18 = vpop.f32.mrf.mxu0  ;;  %v2233_v59 = vpop.f32.mrf.mxu1 }
 0xc40   :  { %v2090_v53 = vsel %vm2089_vm4, %v2085_v61, -inf  ;;  %v2088_v13 = vmul.f32 0.088388346, %v3008_v18  ;;  %v2248_v44 = vmul.f32 0.088388346, %v2233_v59  ;;  %v2258_v20 = vsel %vm2089_vm4, %v2250_v49, -inf }
 0xc41   :  { %2091 = vmax.xlane.f32.xlu1 %v2090_v53  ;;  %v2073_v63 = vpop.f32.mrf.mxu0  ;;  %v3024_v43 = vpop.f32.mrf.mxu1 }
 0xc42   :  { %v2086_v21 = vmul.f32 0.088388346, %v2073_v63  ;;  %v2099_v62 = vsel %vm2089_vm4, %v2088_v13, -inf  ;;  %v2252_v29 = vsel %vm2089_vm4, %v2248_v44, -inf  ;;  %v2251_v23 = vmul.f32 0.088388346, %v3024_v43 }
 0xc43   :  { %v2236_v46 = vpop.f32.mrf.mxu1 }
 0xc44   :  { %v2093_v16 = vsel %vm2089_vm4, %v2086_v21, -inf  ;;  %v2249_v24 = vmul.f32 0.088388346, %v2236_v46  ;;  %v2261_v48 = vsel %vm2089_vm4, %v2251_v23, -inf }
 0xc45   :  { %2097 = vmax.xlane.f32.xlu1 %v2096_v4  ;;  %2094 = vmax.xlane.f32.xlu0 %v2093_v16 }
 0xc46   :  { %v2255_v5 = vsel %vm2089_vm4, %v2249_v24, -inf }
 0xc49   :  { %2100 = vmax.xlane.f32.xlu0 %v2099_v62  ;;  %2253 = vmax.xlane.f32.xlu1 %v2252_v29 }
 0xc4d   :  { %2259 = vmax.xlane.f32.xlu1 %v2258_v20  ;;  %2256 = vmax.xlane.f32.xlu0 %v2255_v5 }
 0xc51   :  { %2262 = vmax.xlane.f32.xlu0 %v2261_v48 }
 0xcca   :  { %v2092_v51 = vpop.xlane.xlu1 %2091 }
 0xccb   :  { %v2102_v6 = vsub.f32 %v2085_v61, %v2092_v51 }
 0xccd   :  { %v2106_v27 = vmul.f32 1.442695, %v2102_v6 }
 0xcce   :  { %v2098_v15 = vpop.xlane.xlu1 %2097  ;;  %v2095_v55 = vpop.xlane.xlu0 %2094 }
 0xccf   :  { %3303 = vpow2.f32 %v2106_v27  ;;  %v2104_v47 = vsub.f32 %v2087_v14, %v2098_v15  ;;  %v2103_v32 = vsub.f32 %v2086_v21, %v2095_v55 }
 0xcd1   :  { %v2110_v40 = vmul.f32 1.442695, %v2104_v47  ;;  %v2108_v26 = vmul.f32 1.442695, %v2103_v32 }
 0xcd2   :  { %v2101_v45 = vpop.xlane.xlu0 %2100  ;;  %v2254_v52 = vpop.xlane.xlu1 %2253 }
 0xcd3   :  { %3305 = vpow2.f32 %v2110_v40  ;;  %v2105_v54 = vsub.f32 %v2088_v13, %v2101_v45  ;;  %v2264_v56 = vsub.f32 %v2248_v44, %v2254_v52 }
 0xcd4   :  { %3307 = vpow2.f32 %v2108_v26 }
 0xcd5   :  { %v2112_v22 = vmul.f32 1.442695, %v2105_v54  ;;  %v2268_v30 = vmul.f32 1.442695, %v2264_v56 }
 0xcd6   :  { %v2260_v33 = vpop.xlane.xlu1 %2259  ;;  %v2257_v35 = vpop.xlane.xlu0 %2256 }
 0xcd7   :  { %3309 = vpow2.f32 %v2112_v22  ;;  %v2266_v57 = vsub.f32 %v2250_v49, %v2260_v33  ;;  %v2265_v1 = vsub.f32 %v2249_v24, %v2257_v35 }
 0xcd8   :  { %3311 = vpow2.f32 %v2268_v30 }
 0xcd9   :  { %v2272_v9 = vmul.f32 1.442695, %v2266_v57  ;;  %v2270_v10 = vmul.f32 1.442695, %v2265_v1 }
 0xcda   :  { %v2263_v11 = vpop.xlane.xlu0 %2262 }
 0xcdb   :  { %3313 = vpow2.f32 %v2272_v9  ;;  %v2267_v31 = vsub.f32 %v2251_v23, %v2263_v11  ;;  %v3398_v9 = vld [vmem:[%s4499_s8 + $0xf4] ss:$8 sps:$4 sm:$0xff]  }
 0xcdc   :  { %v3304_v19 = vpop.eup %3303  ;;  %3315 = vpow2.f32 %v2270_v10 }
 0xcdd   :  { %v2274_v3 = vmul.f32 1.442695, %v2267_v31  ;;  %v2114_v42 = vsel %vm2089_vm4, %v3304_v19, 0.0  ;;  %v3236_v31 = vld [vmem:[%s4500_s9 + $0x38] sm:$0xff]  }
 0xcde   :  { %2115 = vadd.xlane.f32.xlu1 %v2114_v42  ;;  %v2479_v42 = vld [vmem:[%s4493_s2] sm:$0x1] }
 0xcdf   :  { %3317 = vpow2.f32 %v2274_v3 }
 0xce0   :  { %v3306_v37 = vpop.eup %3305 }
 0xce1   :  { %v3308_v50 = vpop.eup %3307  ;;  %v2120_v61 = vsel %vm2089_vm4, %v3306_v37, 0.0 }
 0xce2   :  { %2121 = vadd.xlane.f32.xlu1 %v2120_v61  ;;  %v2117_v18 = vsel %vm2089_vm4, %v3308_v50, 0.0  ;;  %v3239_v61 = vld [vmem:[%s4500_s9 + $0x68] sm:$0xff]  }
 0xce3   :  { %2118 = vadd.xlane.f32.xlu0 %v2117_v18  ;;  %v3240_v18 = vld [vmem:[%s4500_s9 + $0x28] sm:$0xff]  }
 0xce4   :  { %v3310_v59 = vpop.eup %3309 }
 0xce5   :  { %v3312_v14 = vpop.eup %3311  ;;  %v2123_v53 = vsel %vm2089_vm4, %v3310_v59, 0.0 }
 0xce6   :  { %v2276_v63 = vsel %vm2089_vm4, %v3312_v14, 0.0 }
 0xce7   :  { %2277 = vadd.xlane.f32.xlu1 %v2276_v63  ;;  %2124 = vadd.xlane.f32.xlu0 %v2123_v53  ;;  %v3243_v53 = vld [vmem:[%s4500_s9 + $0x58] sm:$0xff]  }
 0xce8   :  { %v3314_v43 = vpop.eup %3313  ;;  %v3244_v63 = vld [vmem:[%s4500_s9 + $0x18] sm:$0xff]  }
 0xce9   :  { %v3316_v21 = vpop.eup %3315  ;;  %v2282_v13 = vsel %vm2089_vm4, %v3314_v43, 0.0 }
 0xcea   :  { %v2279_v44 = vsel %vm2089_vm4, %v3316_v21, 0.0 }
 0xceb   :  { %2283 = vadd.xlane.f32.xlu1 %v2282_v13  ;;  %2280 = vadd.xlane.f32.xlu0 %v2279_v44  ;;  %v3247_v13 = vld [vmem:[%s4500_s9 + $0x48] sm:$0xff]  }
 0xcec   :  { %v3318_v4 = vpop.eup %3317  ;;  %v3248_v44 = vld [vmem:[%s4500_s9 + $0x8] sm:$0xff]  }
 0xced   :  { %v2285_v16 = vsel %vm2089_vm4, %v3318_v4, 0.0 }
 0xcef   :  { %2286 = vadd.xlane.f32.xlu0 %v2285_v16  ;;  %v3250_v16 = vld [vmem:[%s4500_s9] sm:$0xff]  }
 0xd67   :  { %v2116_v46 = vpop.xlane.xlu1 %2115 }
 0xd68   :  { %3319 = vrcp.f32 %v2116_v46 }
 0xd6b   :  { %v2122_v49 = vpop.xlane.xlu1 %2121 }
 0xd6c   :  { %v2119_v24 = vpop.xlane.xlu0 %2118 }
 0xd6d   :  { %3321 = vrcp.f32 %v2119_v24 }
 0xd6e   :  { %3323 = vrcp.f32 %v2122_v49 }
 0xd70   :  { %v2278_v62 = vpop.xlane.xlu1 %2277  ;;  %v2125_v29 = vpop.xlane.xlu0 %2124 }
 0xd71   :  { %3325 = vrcp.f32 %v2125_v29 }
 0xd72   :  { %3327 = vrcp.f32 %v2278_v62 }
 0xd74   :  { %v2284_v23 = vpop.xlane.xlu1 %2283  ;;  %v2281_v20 = vpop.xlane.xlu0 %2280 }
 0xd75   :  { %3329 = vrcp.f32 %v2281_v20  ;;  %v3320_v5 = vpop.eup %3319 }
 0xd76   :  { %3331 = vrcp.f32 %v2284_v23  ;;  %v2130_v6 = vmul.f32 %v3320_v5, %v3304_v19  ;;  %v3237_v19 = vld [vmem:[%s4500_s9 + $0x70] sm:$0xff]  }
 0xd78   :  { %v2287_v48 = vpop.xlane.xlu0 %2286 }
 0xd79   :  { %3333 = vrcp.f32 %v2287_v48  ;;  %v4557_v48 = vld [vmem:[#allocation9_spill] sm:$0xff] }
 0xd7a   :  { %v3322_v51 = vpop.eup %3321 }
 0xd7b   :  { %v2131_v27 = vmul.f32 %v3322_v51, %v3308_v50  ;;  %v3324_v15 = vpop.eup %3323  ;;  %v2480_v50 = vpack.c.bf16 %v2479_v42, %v2479_v42  ;;  %v3399_v42 = vld [vmem:[%s4495_s4] sm:$0xff] }
 0xd7c   :  { %v2132_v32 = vmul.f32 %v3324_v15, %v3306_v37  ;;  %v3238_v37 = vld [vmem:[%s4500_s9 + $0x30] sm:$0xff]  }
 0xd7d   :  { %v2134_v55 = vpack.c.bf16 %v2131_v27, %v2130_v6  ;;  %v4558_v15 = vld [vmem:[#allocation10_spill] sm:$0xff] }
 0xd7e   :  { %v3326_v47 = vpop.eup %3325 }
 0xd7f   :  { %3013 = vmatprep.mubr.msk.bf16.mxu0 %vm2089_vm4, %v2134_v55  ;;  %v2133_v40 = vmul.f32 %v3326_v47, %v3310_v59  ;;  %v3328_v26 = vpop.eup %3327  ;;  %v3241_v59 = vld [vmem:[%s4500_s9 + $0x60] sm:$0xff]  }
 0xd80   :  { %v2292_v56 = vmul.f32 %v3328_v26, %v3312_v14  ;;  %v3242_v14 = vld [vmem:[%s4500_s9 + $0x20] sm:$0xff]  }
 0xd81   :  { %v2135_v45 = vpack.c.bf16 %v2133_v40, %v2132_v32  ;;  %v4559_v32 = vld [vmem:[#allocation11_spill] sm:$0xff] }
 0xd82   :  { %v3330_v52 = vpop.eup %3329 }
 0xd83   :  { %v3332_v54 = vpop.eup %3331  ;;  %3014 = vmatmul.mubr.msk.bf16.vlgmr.msra.gmra.mxu0 %vm2089_vm4, %v2135_v45  ;;  %v2293_v22 = vmul.f32 %v3330_v52, %v3316_v21  ;;  %v3246_v21 = vld [vmem:[%s4500_s9 + $0x10] sm:$0xff]  }
 0xd84   :  { %3026 = vmatpush3.bf16.msra.mxu0 %v4327_v41  ;;  %v2294_v57 = vmul.f32 %v3332_v54, %v3314_v43  ;;  %v3245_v43 = vld [vmem:[%s4500_s9 + $0x50] sm:$0xff]  }
 0xd85   :  { %3027 = vmatprep.subr.bf16.mxu0 %v4319_v28  ;;  %v2296_v33 = vpack.c.bf16 %v2293_v22, %v2292_v56  ;;  %v4560_v22 = vld [vmem:[#allocation12_spill] sm:$0xff] }
 0xd86   :  { %v3334_v30 = vpop.eup %3333 }
 0xd87   :  { %v2295_v35 = vmul.f32 %v3334_v30, %v3318_v4  ;;  %3029 = vmatprep.mubr.msk.bf16.mxu0 %vm2089_vm4, %v2296_v33  ;;  %v3249_v4 = vld [vmem:[%s4500_s9 + $0x40] sm:$0xff]  }
 0xd88   :  { %3028 = vmatpush3.bf16.msra.mxu0 %v4319_v28 }
 0xd89   :  { %v2297_v1 = vpack.c.bf16 %v2295_v35, %v2294_v57  ;;  %2919 = vmatprep.subr.bf16.mxu0 %v3398_v9  ;;  %v4561_v35 = vld [vmem:[#allocation14_spill] sm:$0xff] }
 0xd8b   :  { %3030 = vmatmul.mubr.msk.bf16.vlgmr.msra.gmra.mxu0 %vm2089_vm4, %v2297_v1 }
 0xd8c   :  { %2920 = vmatpush3.bf16.xpose.msra.mxu0 %v4011_v2  ;;  %v4554_v2 = vld [vmem:[#allocation18_spill] sm:$0xff] }
 0xd8d   :  { %2921 = vmatprep.subr.bf16.mxu0 %v4016_v7  ;;  %v4555_v7 = vld [vmem:[#allocation19_spill] sm:$0xff] }
 0xd94   :  { %2922 = vmatpush3.bf16.xpose.msra.mxu0 %v4024_v0  ;;  %v4556_v0 = vld [vmem:[#allocation20_spill] sm:$0xff] }
 0xd95   :  { %2923 = vmatprep.subr.bf16.mxu0 %v4029_v12  ;;  %v3235_v12 = vld [vmem:[%s4500_s9 + $0x78] sm:$0xff]  }
 0xd9c   :  { %2924 = vmatpush3.bf16.xpose.msra.mxu0 %v4036_v8  ;;  %v2624_v8 = vld [vmem:[#allocation2] sm:$0x1] }
 0xd9d   :  { %2925 = vmatprep.subr.bf16.mxu0 %v4041_v60  ;;  %2627 = vperm.xlu1 %3042, %v2624_v8  }
 0xda4   :  { %2926 = vmatpush3.bf16.xpose.msra.mxu0 %v4048_v25 }
 0xda5   :  { %2927 = vmatprep.subr.bf16.mxu0 %v4053_v38 }
 0xdac   :  { %2928 = vmatpush3.bf16.xpose.msra.mxu0 %v4060_v39 }
 0xdad   :  { %2929 = vmatprep.subr.bf16.mxu0 %v4065_v34 }
 0xdb4   :  { %2930 = vmatpush3.bf16.xpose.msra.mxu0 %v4072_v36 }
 0xdb5   :  { %2931 = vmatprep.subr.bf16.mxu0 %v4077_v58 }
 0xdbc   :  { %2932 = vmatpush3.bf16.xpose.msra.mxu0 %v4554_v2 }
 0xdbd   :  { %2933 = vmatprep.subr.bf16.mxu0 %v4555_v7 }
 0xdc4   :  { %2934 = vmatpush3.bf16.xpose.msra.mxu0 %v4556_v0 }
 0xdc5   :  { %2959 = vmatprep.subr.bf16.mxu0 %v3235_v12  ;;  %v4562_v12 = vld [vmem:[#allocation13_spill] sm:$0xff] }
 0xe18   :  { %v2628_v56 = vpop.permute.xlu1 %2627 }
 0xe19   :  { %v2633_v8 = vrot.slane %v2628_v56, %v4562_v12 }
 0xe43   :  { %v3015_v60 = vpop.f32.mrf.mxu0 }
 0xe45   :  { %v2178_v25 = vpop.f32.mrf.mxu0 }
 0xe47   :  { %v3016_v38 = vpop.f32.mrf.mxu0 }
 0xe48   :  { %v2194_v58 = vpack.c.bf16 %v3016_v38, %v3015_v60 }
 0xe49   :  { %v2181_v39 = vpop.f32.mrf.mxu0 }
 0xe4a   :  { %v2193_v34 = vpack.c.bf16 %v2181_v39, %v2178_v25  ;;  %v4563_v25 = vld [vmem:[#allocation15_spill] sm:$0xff] }
 0xe4b   :  { %v3031_v36 = vpop.f32.mrf.mxu0 }
 0xe4c   :  { %2955 = vmatprep.mubr.bf16.mxu1 %v2193_v34 }
 0xe4d   :  { %v2340_v28 = vpop.f32.mrf.mxu0  ;;  %2956 = vmatmul.mubr.bf16.vlgmr.msra.gmra.mxu1 %v2193_v34 }
 0xe4e   :  { %2957 = vmatprep.mubr.bf16.mxu1 %v2194_v58 }
 0xe4f   :  { %v3032_v41 = vpop.f32.mrf.mxu0 }
 0xe50   :  { %v2356_v3 = vpack.c.bf16 %v3032_v41, %v3031_v36 }
 0xe51   :  { %v2343_v10 = vpop.f32.mrf.mxu0 }
 0xe52   :  { %v2355_v11 = vpack.c.bf16 %v2343_v10, %v2340_v28  ;;  %v4564_v10 = vld [vmem:[#allocation16_spill] sm:$0xff] }
 0xe54   :  { %2935 = vmatprep.mubr.bf16.mxu0 %v2355_v11 }
 0xe55   :  { %2936 = vmatmul.mubr.bf16.vlgmr.msra.gmra.mxu0 %v2355_v11  ;;  %2958 = vmatmul.mubr.bf16.gmra.mxu1 %v2194_v58 }
 0xe56   :  { %2960 = vmatpush3.bf16.xpose.msra.mxu0 %v3236_v31  ;;  %2937 = vmatprep.mubr.bf16.mxu0 %v2356_v3 }
 0xe57   :  { %2961 = vmatprep.subr.bf16.mxu0 %v3237_v19 }
 0xe5d   :  { %2938 = vmatmul.mubr.bf16.gmra.mxu0 %v2356_v3 }
 0xe5e   :  { %2962 = vmatpush3.bf16.xpose.msra.mxu0 %v3238_v37  ;;  %2975 = vmatprep.mubr.bf16.mxu0 %v2480_v50  ;;  %v2634_v37 = vmul.f32 %v3399_v42, %v2633_v8 }
 0xe5f   :  { %2963 = vmatprep.subr.bf16.mxu0 %v3239_v61 }
 0xe66   :  { %2964 = vmatpush3.bf16.xpose.msra.mxu0 %v3240_v18 }
 0xe67   :  { %2965 = vmatprep.subr.bf16.mxu0 %v3241_v59 }
 0xe6e   :  { %2966 = vmatpush3.bf16.xpose.msra.mxu0 %v3242_v14 }
 0xe6f   :  { %2967 = vmatprep.subr.bf16.mxu0 %v3243_v53  ;;  %v4565_v53 = vld [vmem:[#allocation17_spill] sm:$0xff] }
 0xe76   :  { %2968 = vmatpush3.bf16.xpose.msra.mxu0 %v3244_v63 }
 0xe77   :  { %2969 = vmatprep.subr.bf16.mxu0 %v3245_v43 }
 0xe7e   :  { %2970 = vmatpush3.bf16.xpose.msra.mxu0 %v3246_v21 }
 0xe7f   :  { %2971 = vmatprep.subr.bf16.mxu0 %v3247_v13 }
 0xe86   :  { %2972 = vmatpush3.bf16.xpose.msra.mxu0 %v3248_v44 }
 0xe87   :  { %2973 = vmatprep.subr.bf16.mxu0 %v3249_v4 }
 0xe8e   :  { %2974 = vmatpush3.bf16.xpose.msra.mxu0 %v3250_v16  ;;  %v4566_v16 = vld [vmem:[#allocation21_spill] sm:$0xff] }
 0xe95   :  { %2976 = vmatmul.mubr.bf16.vlgmr.msra.gmra.mxu0 %v2480_v50  ;;  %v3400_v50 = vld [vmem:[%s4495_s4 + $0x8] sm:$0xff] }
 0xe96   :  { %v2635_v61 = vmul.f32 %v3400_v50, %v2633_v8 }
 0xf0d   :  { %v2444_v46 = vpop.f32.mrf.mxu1 }
 0xf0f   :  { %v2446_v49 = vpop.f32.mrf.mxu1 }
 0xf11   :  { %v2448_v24 = vpop.f32.mrf.mxu1 }
 0xf13   :  { %v2450_v62 = vpop.f32.mrf.mxu1 }
 0xf15   :  { %v2391_v29 = vpop.f32.mrf.mxu0  ;;  %v2454_v20 = vpop.f32.mrf.mxu1 }
 0xf16   :  { %v2445_v23 = vadd.f32 %v2444_v46, %v2391_v29 }
 0xf17   :  { %v2393_v5 = vpop.f32.mrf.mxu0  ;;  %v2456_v26 = vpop.f32.mrf.mxu1 }
 0xf18   :  { %v2463_v51 = vadd.f32 %v2445_v23, %v4557_v48  ;;  %v2447_v6 = vadd.f32 %v2446_v49, %v2393_v5  ;;  %v2671_v49 = vrot.slane %v2634_v37, 6 }
 0xf19   :  { %v2395_v27 = vpop.f32.mrf.mxu0  ;;  %v2458_v7 = vpop.f32.mrf.mxu1 }
 0xf1a   :  { %v2464_v55 = vadd.f32 %v2447_v6, %v4558_v15  ;;  %v2449_v47 = vadd.f32 %v2448_v24, %v2395_v27  ;;  %v4425_v40 = vadd.f32 %v2463_v51, %v4559_v32  ;;  %v2579_v6 = vrot.slane %v3399_v42, 6 }
 0xf1b   :  { %v2397_v45 = vpop.f32.mrf.mxu0  ;;  %v2460_v19 = vpop.f32.mrf.mxu1  ;;  %v2580_v27 = vrot.slane %v3400_v50, 6 }
 0xf1c   :  { %v2465_v52 = vadd.f32 %v2449_v47, %v4557_v48  ;;  %v2451_v54 = vadd.f32 %v2450_v62, %v2397_v45  ;;  %v4429_v30 = vadd.f32 %v2464_v55, %v4560_v22  ;;  %v2645_v2 = vrot.slane %v4425_v40, 7 }
 0xf1d   :  { %v2401_v33 = vpop.f32.mrf.mxu0  ;;  %v2672_v62 = vrot.slane %v2635_v61, 6 }
 0xf1e   :  { %v2473_v57 = vadd.f32 %v2465_v52, %v4561_v35  ;;  %v2466_v1 = vadd.f32 %v2451_v54, %v4558_v15  ;;  %v2455_v9 = vadd.f32 %v2454_v20, %v2401_v33  ;;  %v2646_v36 = vrot.slane %v4429_v30, 7 }
 0xf1f   :  { %v2403_v0 = vpop.f32.mrf.mxu0 }
 0xf20   :  { %v2647_v60 = vrot.slane %v2473_v57, 7  ;;  %v2474_v38 = vadd.f32 %v2466_v1, %v4563_v25  ;;  %v2467_v39 = vadd.f32 %v2455_v9, %v4557_v48  ;;  %v2457_v34 = vadd.f32 %v2456_v26, %v2403_v0 }
 0xf21   :  { %v2405_v58 = vpop.f32.mrf.mxu0 }
 0xf22   :  { %v2648_v28 = vsel %vm2644_vm5, %v2645_v2, %v2647_v60  ;;  %v2649_v41 = vrot.slane %v2474_v38, 7  ;;  %v2475_v11 = vadd.f32 %v2467_v39, %v4564_v10  ;;  %v2468_v31 = vadd.f32 %v2457_v34, %v4558_v15 }
 0xf23   :  { %2681 = vst [vmem:[%s4501_s10 + $0x10] sm:$0xff] %v2648_v28  ;;  %v2459_v3 = vadd.f32 %v2458_v7, %v2405_v58  ;;  %v2407_v18 = vpop.f32.mrf.mxu0 }
 0xf24   :  { %v2650_v59 = vsel %vm2644_vm5, %v2646_v36, %v2649_v41  ;;  %v2651_v14 = vrot.slane %v2475_v11, 7  ;;  %v2476_v63 = vadd.f32 %v2468_v31, %v4565_v53  ;;  %v2461_v43 = vadd.f32 %v2460_v19, %v2407_v18 }
 0xf25   :  { %2682 = vst [vmem:[%s4501_s10 + $0x18] sm:$0xff] %v2650_v59  ;;  %v2469_v21 = vadd.f32 %v2459_v3, %v4557_v48 }
 0xf26   :  { %v2652_v13 = vsel %vm2644_vm5, %v2647_v60, %v2651_v14  ;;  %v2653_v44 = vrot.slane %v2476_v63, 7  ;;  %v2470_v4 = vadd.f32 %v2461_v43, %v4558_v15 }
 0xf27   :  { %2683 = vst [vmem:[%s4501_s10 + $0x20] sm:$0xff] %v2652_v13  ;;  %v2477_v46 = vadd.f32 %v2469_v21, %v4566_v16 }
 0xf28   :  { %v2654_v24 = vsel %vm2644_vm5, %v2649_v41, %v2653_v44  ;;  %v2478_v29 = vadd.f32 %v2470_v4, %v4242_v17 }
 0xf29   :  { %2684 = vst [vmem:[%s4501_s10 + $0x28] sm:$0xff] %v2654_v24  ;;  %v2655_v23 = vrot.slane %v2477_v46, 7 }
 0xf2a   :  { %v2657_v20 = vrot.slane %v2478_v29, 7 }
 0xf2b   :  { %v2656_v5 = vsel %vm2644_vm5, %v2651_v14, %v2655_v23  ;;  %v2677_v48 = vsel %vm2644_vm5, %v2655_v23, %v2671_v49 }
 0xf2c   :  { %2685 = vst [vmem:[%s4501_s10 + $0x30] sm:$0xff] %v2656_v5  ;;  %2687 = vst [vmem:[%s4501_s10 + $0x40] sm:$0x3] %v2677_v48  ;;  %v2658_v17 = vsel %vm2644_vm5, %v2653_v44, %v2657_v20  ;;  %v2678_v51 = vsel %vm2644_vm5, %v2657_v20, %v2672_v62 }
 0xf2d   :  { %2686 = vst [vmem:[%s4501_s10 + $0x38] sm:$0xff] %v2658_v17  ;;  %2688 = vst [vmem:[%s4501_s10 + $0x48] sm:$0x3] %v2678_v51 }
 0xf55   :  { %v2617_v15 = vpop.f32.mrf.mxu0 }
 0xf56   :  { %v2618_v55 = vadd.f32 %v2617_v15, %v2579_v6 }
 0xf57   :  { %v2619_v47 = vpop.f32.mrf.mxu0 }
 0xf58   :  { %v2675_v32 = vsel %vm2644_vm5, %v2618_v55, %v2645_v2  ;;  %v2620_v40 = vadd.f32 %v2619_v47, %v2580_v27 }
 0xf59   :  { %2679 = vst [vmem:[%s4501_s10] sm:$0xff] %v2675_v32  ;;  %v2621_v26 = vpop.f32.mrf.mxu0 }
 0xf5a   :  { %v2676_v45 = vsel %vm2644_vm5, %v2620_v40, %v2646_v36 }
 0xf5b   :  { %2680 = vst [vmem:[%s4501_s10 + $0x8] sm:$0xff] %v2676_v45  ;;  %v2622_v52 = vpop.f32.mrf.mxu0 }
 0xf5c   :  { %2693 = vsyncpa [#allocation4], 1 }
 0xf5d   :  { %2694 = vsyncpa [#allocation6], 1 }

</bundles_post_ra>
